<compile_context>
chip_gen: v7x
topology: tpu7x:2x2x1
jax: 0.10.0
libtpu: 0.0.40
codegen_flags: <defaults>
</compile_context>

<pallas_src>
import functools

import jax
import jax.numpy as jnp
import numpy as np
from jax.experimental import pallas as pl
from jax.experimental.pallas import tpu as pltpu


def _round_up(x, m):
    return ((x + m - 1) // m) * m


# ---------------------------------------------------------------------------
# Fused kernel: block-Toeplitz depthwise conv (MXU) + squash, per batch tile
# ---------------------------------------------------------------------------
def _primary_caps_kernel(x_ref, wt_ref, b_ref, s_ref, o_ref, *, eps_sq):
    # x_ref : (tB, C*H*W)   batch-on-sublane input tile          (VMEM)
    # wt_ref: (C*H*W, F)    static block-Toeplitz conv weight    (VMEM, resident)
    # b_ref : (1, F)        per-output bias (channel-repeated)   (VMEM, resident)
    # s_ref : (F, F)        block-diagonal capsule-group indicator
    # o_ref : (tB, F)       squashed capsules, F = num_caps * dim_caps
    hi = jax.lax.Precision.HIGHEST

    # Depthwise conv for every output element of every image in the tile:
    # ONE MXU matmul instead of 72 shifted-window VPU taps.
    y = jnp.dot(x_ref[...], wt_ref[...],
                preferred_element_type=jnp.float32, precision=hi) + b_ref[...]

    # Per-capsule sum of squares, already broadcast back to every lane of the
    # capsule by the block-diagonal ones matrix S (stays lane-dense).
    ss = jnp.dot(y * y, s_ref[...],
                 preferred_element_type=jnp.float32, precision=hi)
    n = jnp.sqrt(ss)
    # squash scale: (1 - 1/(exp(n)+eps)) / (n+eps) == (1-exp(-n)) * rsqrt(ss)
    # up to eps ~ 1e-20 (below f32 resolution); no overflow/NaN hazard.
    scale = (1.0 - jnp.exp(-n)) * jax.lax.rsqrt(ss + eps_sq)
    o_ref[...] = (y * scale).astype(o_ref.dtype)


# ---------------------------------------------------------------------------
# PrimaryCapsLayer forward
# ---------------------------------------------------------------------------
def primary_caps_forward(x, w, b, num_capsules, dim_capsules, *,
                         batch_tile=256, eps_sq=1e-20):
    # x: (B, C, H, W) f32, w: (C, KH, KW), b: (C,). stride=1, padding='valid'.
    B, C, H, W = x.shape
    KH, KW = int(w.shape[-2]), int(w.shape[-1])
    Ho, Wo = H - KH + 1, W - KW + 1
    F_in, F_out = C * H * W, C * Ho * Wo
    assert F_out == num_capsules * dim_capsules, "capsule view mismatch"
    D = dim_capsules

    # --- static block-Toeplitz depthwise weight (F_in, F_out), unique slots.
    rows, cols, taps = [], [], []
    for c in range(C):
        for oh in range(Ho):
            for ow in range(Wo):
                col = c * Ho * Wo + oh * Wo + ow
                for i in range(KH):
                    for j in range(KW):
                        rows.append(c * H * W + (oh + i) * W + (ow + j))
                        cols.append(col)
                        taps.append(c * KH * KW + i * KW + j)
    rows = np.asarray(rows, np.int32)
    cols = np.asarray(cols, np.int32)
    taps = np.asarray(taps, np.int32)
    wt = jnp.zeros((F_in, F_out), jnp.float32).at[rows, cols].set(
        w.reshape(-1).astype(jnp.float32)[taps])
    bias = jnp.repeat(b.astype(jnp.float32), Ho * Wo).reshape(1, F_out)

    # --- static block-diagonal capsule-group indicator (F_out, F_out):
    # S[f, f2] = 1 iff f and f2 belong to the same capsule.
    s_np = (np.arange(F_out)[:, None] // D ==
            np.arange(F_out)[None, :] // D).astype(np.float32)
    s = jnp.asarray(s_np)

    # --- batch on sublanes: free reshape, no HBM transpose passes.
    x_flat = x.reshape(B, F_in).astype(jnp.float32)
    tB = max(8, min(batch_tile, _round_up(B, 8)))
    B_pad = _round_up(B, tB)
    if B_pad != B:
        x_flat = jnp.pad(x_flat, ((0, B_pad - B), (0, 0)))

    kernel = functools.partial(_primary_caps_kernel, eps_sq=eps_sq)
    out = pl.pallas_call(
        kernel,
        out_shape=jax.ShapeDtypeStruct((B_pad, F_out), jnp.float32),
        grid=(B_pad // tB,),
        in_specs=[
            pl.BlockSpec((tB, F_in), lambda bi: (bi, 0)),
            pl.BlockSpec((F_in, F_out), lambda bi: (0, 0)),
            pl.BlockSpec((1, F_out), lambda bi: (0, 0)),
            pl.BlockSpec((F_out, F_out), lambda bi: (0, 0)),
        ],
        out_specs=pl.BlockSpec((tB, F_out), lambda bi: (bi, 0)),
        compiler_params=pltpu.CompilerParams(
            dimension_semantics=("parallel",)),
    )(x_flat, wt, bias, s)

    # (B_pad, F_out) -> (B, N, D): flat index f = c*Ho*Wo + oh*Wo + ow matches
    # the PyTorch .view flattening of the (C, Ho, Wo) conv output.
    return out[:B].reshape(B, num_capsules, dim_capsules)


# ---------------------------------------------------------------------------
# Pure-JAX reference (correctness check)
# ---------------------------------------------------------------------------
def reference_forward(x, w, b, num_capsules, dim_capsules, eps=1e-20):
    C = x.shape[1]
    conv = jax.lax.conv_general_dilated(
        x, w[:, None, :, :], window_strides=(1, 1), padding="VALID",
        dimension_numbers=("NCHW", "OIHW", "NCHW"), feature_group_count=C,
    ) + b.reshape(1, C, 1, 1)
    caps = conv.reshape(conv.shape[0], num_capsules, dim_capsules)
    n = jnp.linalg.norm(caps, axis=-1, keepdims=True)
    return (1.0 - 1.0 / (jnp.exp(n) + eps)) * (caps / (n + eps))


if __name__ == "__main__":
    # Shapes consistent with the module: in_channels=8, kernel=3, input 6x6
    # -> conv out 4x4, C*Ho*Wo = 128 = num_capsules(16) * dim_capsules(8).
    # Batch 200 with batch_tile=128 exercises a 2-step "parallel" grid
    # (both v7x TensorCores) plus batch padding.
    B, C, H, W = 200, 8, 6, 6
    K = 3
    num_capsules, dim_capsules = 16, 8

    key = jax.random.PRNGKey(0)
    kx, kw, kb = jax.random.split(key, 3)
    x = jax.random.normal(kx, (B, C, H, W), dtype=jnp.float32)
    bound = 1.0 / np.sqrt(K * K)  # PyTorch Conv2d-like init (fan_in = 1*K*K)
    w = jax.random.uniform(kw, (C, K, K), minval=-bound, maxval=bound,
                           dtype=jnp.float32)
    b = jax.random.uniform(kb, (C,), minval=-bound, maxval=bound,
                           dtype=jnp.float32)

    out = primary_caps_forward(x, w, b, num_capsules, dim_capsules,
                               batch_tile=128)
    out = jax.block_until_ready(out)

    ref = reference_forward(x, w, b, num_capsules, dim_capsules)
    np.testing.assert_allclose(np.asarray(out), np.asarray(ref),
                               rtol=1e-3, atol=1e-3)
    assert out.shape == (B, num_capsules, dim_capsules)
    print("KERNEL_OK")
</pallas_src>

<mosaic_0001>
module attributes {stable_mosaic.version = 11 : i64} {
  func.func @_primary_caps_kernel(%arg0: i32, %arg1: memref<128x288xf32, #tpu.memory_space<vmem>>, %arg2: memref<288x128xf32, #tpu.memory_space<vmem>>, %arg3: memref<1x128xf32, #tpu.memory_space<vmem>>, %arg4: memref<128x128xf32, #tpu.memory_space<vmem>>, %arg5: memref<128x128xf32, #tpu.memory_space<vmem>>) attributes {dimension_semantics = [#tpu.dimension_semantics<parallel>], iteration_bounds = array<i64: 2>, scalar_prefetch = 0 : i64, scratch_operands = 0 : i64, tpu.core_type = #tpu.core_type<tc>, window_params = [{transform_indices = @transform_0, window_bounds = array<i64: 128, 288>}, {pipeline_mode = #tpu.pipeline_mode<synchronous>, transform_indices = @transform_1, window_bounds = array<i64: 288, 128>}, {pipeline_mode = #tpu.pipeline_mode<synchronous>, transform_indices = @transform_2, window_bounds = array<i64: 1, 128>}, {pipeline_mode = #tpu.pipeline_mode<synchronous>, transform_indices = @transform_3, window_bounds = array<i64: 128, 128>}, {transform_indices = @transform_4, window_bounds = array<i64: 128, 128>}]} {
    %c0 = arith.constant 0 : index
    %c0_0 = arith.constant 0 : index
    %0 = vector.load %arg1[%c0, %c0_0] : memref<128x288xf32, #tpu.memory_space<vmem>>, vector<128x288xf32>
    %c0_1 = arith.constant 0 : index
    %c0_2 = arith.constant 0 : index
    %1 = vector.load %arg2[%c0_1, %c0_2] : memref<288x128xf32, #tpu.memory_space<vmem>>, vector<288x128xf32>
    %cst = arith.constant dense<0.000000e+00> : vector<128x128xf32>
    %2 = tpu.matmul %0, %1, %cst {dimension_numbers = #tpu.dot_dimension_numbers<[1], [0], [0], [1], [0, 0, 1, 1], [], []>, precision = #tpu.contract_precision<fp32>} : vector<128x288xf32>, vector<288x128xf32>, vector<128x128xf32> -> vector<128x128xf32>
    %c0_3 = arith.constant 0 : index
    %c0_4 = arith.constant 0 : index
    %3 = vector.load %arg3[%c0_3, %c0_4] : memref<1x128xf32, #tpu.memory_space<vmem>>, vector<1x128xf32>
    %4 = vector.broadcast %3 : vector<1x128xf32> to vector<128x128xf32>
    %5 = arith.addf %2, %4 : vector<128x128xf32>
    %6 = arith.mulf %5, %5 : vector<128x128xf32>
    %c0_5 = arith.constant 0 : index
    %c0_6 = arith.constant 0 : index
    %7 = vector.load %arg4[%c0_5, %c0_6] : memref<128x128xf32, #tpu.memory_space<vmem>>, vector<128x128xf32>
    %cst_7 = arith.constant dense<0.000000e+00> : vector<128x128xf32>
    %8 = tpu.matmul %6, %7, %cst_7 {dimension_numbers = #tpu.dot_dimension_numbers<[1], [0], [0], [1], [0, 0, 1, 1], [], []>, precision = #tpu.contract_precision<fp32>} : vector<128x128xf32>, vector<128x128xf32>, vector<128x128xf32> -> vector<128x128xf32>
    %9 = math.sqrt %8 : vector<128x128xf32>
    %cst_8 = arith.constant 0.000000e+00 : f32
    %10 = vector.broadcast %cst_8 : f32 to vector<128x128xf32>
    %11 = arith.subf %10, %9 : vector<128x128xf32>
    %12 = math.exp %11 : vector<128x128xf32>
    %cst_9 = arith.constant 1.000000e+00 : f32
    %13 = vector.broadcast %cst_9 : f32 to vector<128x128xf32>
    %14 = arith.subf %13, %12 : vector<128x128xf32>
    %cst_10 = arith.constant 9.99999968E-21 : f32
    %15 = vector.broadcast %cst_10 : f32 to vector<128x128xf32>
    %16 = arith.addf %8, %15 : vector<128x128xf32>
    %17 = math.rsqrt %16 : vector<128x128xf32>
    %18 = arith.mulf %14, %17 : vector<128x128xf32>
    %19 = arith.mulf %5, %18 : vector<128x128xf32>
    %c0_11 = arith.constant 0 : index
    %c0_12 = arith.constant 0 : index
    %20 = vector.load %arg5[%c0_11, %c0_12] : memref<128x128xf32, #tpu.memory_space<vmem>>, vector<128x128xf32>
    tpu.vector_store %arg5[%c0_11, %c0_12], %19 {strides = array<i32>} : memref<128x128xf32, #tpu.memory_space<vmem>>, vector<128x128xf32>,
    return
  }
  func.func @transform_0(%arg0: i32) -> (i32, i32) {
    %c0_i32 = arith.constant 0 : i32
    %c0_i32_0 = arith.constant 0 : i32
    return %arg0, %c0_i32 : i32, i32
  }
  func.func @transform_1(%arg0: i32) -> (i32, i32) {
    %c0_i32 = arith.constant 0 : i32
    %c0_i32_0 = arith.constant 0 : i32
    %c0_i32_1 = arith.constant 0 : i32
    return %c0_i32, %c0_i32_0 : i32, i32
  }
  func.func @transform_2(%arg0: i32) -> (i32, i32) {
    %c0_i32 = arith.constant 0 : i32
    %c0_i32_0 = arith.constant 0 : i32
    %c0_i32_1 = arith.constant 0 : i32
    return %c0_i32, %c0_i32_0 : i32, i32
  }
  func.func @transform_3(%arg0: i32) -> (i32, i32) {
    %c0_i32 = arith.constant 0 : i32
    %c0_i32_0 = arith.constant 0 : i32
    %c0_i32_1 = arith.constant 0 : i32
    return %c0_i32, %c0_i32_0 : i32, i32
  }
  func.func @transform_4(%arg0: i32) -> (i32, i32) {
    %c0_i32 = arith.constant 0 : i32
    %c0_i32_0 = arith.constant 0 : i32
    return %arg0, %c0_i32 : i32, i32
  }
}

</mosaic_0001>

<bundles_post_ra>
// kernel: tpu_custom_call.1
= control target key start
LH: loop header
LB: loop body
LE: loop exit
PB: predicated region body
PF: predicated region fallthrough
CT: control target
= control target key end

     0   :  { %9 = vsyncpa [#allocation3], 0  ;;  %s9556_s0 = inlined_call_operand.vmem [shape: f32[256,288], index: 0, kind: input, shape index: {}]   ;;  %s9557_s1 = inlined_call_operand.vmem [shape: f32[288,128], index: 1, kind: input, shape index: {}]   ;;  %s9558_s2 = inlined_call_operand.vmem [shape: f32[1,128], index: 2, kind: input, shape index: {}]   ;;  %s9559_s3 = inlined_call_operand.vmem [shape: f32[128,128], index: 3, kind: input, shape index: {}]   ;;  %s9560_s4 = inlined_call_operand.hbm [shape: f32[256,128], index: 4, kind: output, shape index: {}]  }
   0x1   :  { %11 = vsyncpa [#allocation3 + $0x1], 0  ;;  %s6996_s15 = smov 0   ;;  %s6998_s16 = smov 0  }
   0x2   :  { %s7000_s17 = smov 0   ;;  %s7002_s18 = smov 0  }
   0x3 LB: > { %s7017_s19 = sadd.s32 4294967295, %s6966_s18   ;;  %s4824_s20 = sadd.s32 4294967294, %s6966_s18   ;;  %s6966_s18 = sphi %s7002_s18, %s10188_s18   ;;  %s6962_s17 = sphi %s7000_s17, %s10187_s17   ;;  %s6958_s16 = sphi %s6998_s16, %s10186_s16   ;;  %s6954_s15 = sphi %s6996_s15, %s10185_s15  }
   0x4   : > { %s7021_s21 = sadd.s32 1, %s6966_s18   ;;  %s113_s22 = sadd.s32 1, %s6962_s17 }
   0x5   : > { %s110_s23 = ssub.s32 %s6966_s18, %s7021_s21  ;;  %p123_p0 = scmp.ne.s32.totalorder %s6962_s17, %s6958_s16 }
   0x6   : > { %p111_p1 = scmp.eq.s32.totalorder %s110_s23, 0  ;;  %p124_p2 = scmp.eq.s32.totalorder %s7017_s19, 1 }
   0x7   : > { %p129_p3 = scmp.ne.s32.totalorder %s6958_s16, %s6954_s15  ;;  %p130_p4 = scmp.eq.s32.totalorder %s4824_s20, 1 }
   0x8   : > { %s7032_s24 = scalar_select %p111_p1, %s6962_s17, %s113_s22  }
   0x9   : > { %p7034_p5 = por %p124_p2, %p123_p0  ;;  %p7038_p6 = por %p130_p4, %p129_p3 }
   0xa   : > { %p4827_p7 = scmp.ge.s32.totalorder %s6966_s18, 1  ;;  %p167_p8 = scmp.lt.s32.totalorder %s6966_s18, 3 }
   0xc   : > { %p168_p9 = pnand %p4827_p7, %p167_p8 }
   0xe   : > { %171 = sbr.rel (%p168_p9) target bundleno = 1129 (0x469), region = 36 }
  0x15   : > { %v266_v0 = vld [vmem:[%s9557_s1 + $0x80] sm:$0xff]  ;;  %v267_v1 = vld [vmem:[%s9557_s1 + $0x88] sm:$0xff]  ;;  %v268_v7 = vld [vmem:[%s9557_s1 + $0x90] sm:$0xff]  ;;  %s4829_s11 = sshll.u32 %s7017_s19, 4  ;;  %vm293_vm0 = vcmask 261120   ;;  %s191_s12 = sand.u32 1, %s6958_s16  }
  0x16   : > { %v250_v2 = vld [vmem:[%s9557_s1] sm:$0xff]  ;;  %v391_v3 = vand.u32 4294901760, %v266_v0  ;;  %v394_v4 = vand.u32 4294901760, %v267_v1  ;;  %v251_v5 = vld [vmem:[%s9557_s1 + $0x8] sm:$0xff]  ;;  %v269_v8 = vld [vmem:[%s9557_s1 + $0x98] sm:$0xff]  ;;  %v397_v10 = vand.u32 4294901760, %v268_v7 }
  0x17   : > { %v343_v6 = vand.u32 4294901760, %v250_v2  ;;  %v346_v9 = vand.u32 4294901760, %v251_v5  ;;  %v400_v11 = vand.u32 4294901760, %v269_v8  ;;  %v252_v12 = vld [vmem:[%s9557_s1 + $0x10] sm:$0xff]  ;;  %v253_v13 = vld [vmem:[%s9557_s1 + $0x18] sm:$0xff]  ;;  %v270_v18 = vld [vmem:[%s9557_s1 + $0xa0] sm:$0xff] }
  0x18   : > { %v7068_v14 = vpack.c.bf16 %v394_v4, %v391_v3  ;;  %v349_v16 = vand.u32 4294901760, %v252_v12  ;;  %v352_v17 = vand.u32 4294901760, %v253_v13  ;;  %v271_v19 = vld [vmem:[%s9557_s1 + $0xa8] sm:$0xff]  ;;  %v7084_v23 = vsub.f32 %v268_v7, %v397_v10  ;;  %v254_v24 = vld [vmem:[%s9557_s1 + $0x20] sm:$0xff]  ;;  %v272_v38 = vld [vmem:[%s9557_s1 + $0xb0] sm:$0xff]  ;;  %p7236_p10 = scmp.lt.s32.totalorder %s4829_s11, 31 }
  0x19   : > { %v7070_v15 = vsub.f32 %v250_v2, %v343_v6  ;;  %v7078_v20 = vpack.c.bf16 %v346_v9, %v343_v6  ;;  %v7080_v21 = vsub.f32 %v251_v5, %v346_v9  ;;  %v7082_v22 = vpack.c.bf16 %v400_v11, %v397_v10  ;;  %v255_v25 = vld [vmem:[%s9557_s1 + $0x28] sm:$0xff]  ;;  %v273_v43 = vld [vmem:[%s9557_s1 + $0xb8] sm:$0xff]  ;;  %v256_v56 = vld [vmem:[%s9557_s1 + $0x30] sm:$0xff]  ;;  %s4828_s13 = sshll.u32 %s191_s12, 7  ;;  %s4837_s14 = sshll.u32 %s7017_s19, 11 }
  0x1a   : > { %6159 = vmatprep.subr.bf16.mxu0 %v7068_v14  ;;  %v7093_v26 = vsub.f32 %v269_v8, %v400_v11  ;;  %v7095_v27 = vpack.c.bf16 %v352_v17, %v349_v16  ;;  %v7097_v28 = vsub.f32 %v252_v12, %v349_v16  ;;  %v7099_v29 = vsub.f32 %v253_v13, %v352_v17  ;;  %v257_v57 = vld [vmem:[%s9557_s1 + $0x38] sm:$0xff]  ;;  %v274_v6 = vld [vmem:[%s9557_s1 + $0xc0] sm:$0xff]  ;;  %v275_v7 = vld [vmem:[%s9557_s1 + $0xc8] sm:$0xff]  ;;  %s10190_s11 = smov (!%p7236_p10, %s4829_s11), 31  ;;  %s9506_s27 = scalar_lea.hbm %s9560_s4, %s4837_s14 }
  0x1b   : > { %9828 = vst [vmem:[#allocation5_spill] sm:$0xff] %v7070_v15  ;;  %9829 = vst [vmem:[#allocation6_spill] sm:$0xff] %v7078_v20  ;;  %6161 = vmatpush3.bf16.msra.mxu0 %v7078_v20  ;;  %v403_v30 = vand.u32 4294901760, %v270_v18  ;;  %v406_v31 = vand.u32 4294901760, %v271_v19  ;;  %v7102_v32 = vsub.f32 %v266_v0, %v391_v3  ;;  %v7104_v33 = vsub.f32 %v267_v1, %v394_v4  ;;  %v258_v12 = vld [vmem:[%s9557_s1 + $0x40] sm:$0xff]  ;;  %s6766_s8 = smul.u32 24, %s10190_s11 }
  0x1c   : > { %9830 = vst [vmem:[#allocation7_spill] sm:$0xff] %v7080_v21  ;;  %9831 = vst [vmem:[#allocation8_spill] sm:$0xff] %v7082_v22  ;;  %6163 = vmatprep.subr.bf16.mxu0 %v7082_v22  ;;  %v355_v34 = vand.u32 4294901760, %v254_v24  ;;  %v358_v35 = vand.u32 4294901760, %v255_v25  ;;  %v9574_v36 = vand.u32 4294901760, %v7070_v15  ;;  %v9573_v37 = vand.u32 4294901760, %v7080_v21 }
  0x1d   : > { %9832 = vst [vmem:[#allocation9_spill] sm:$0xff] %v7095_v27  ;;  %9833 = vst [vmem:[#allocation10_spill] sm:$0xff] %v7099_v29  ;;  %v7112_v39 = vpack.c.bf16 %v406_v31, %v403_v30  ;;  %v7114_v40 = vsub.f32 %v270_v18, %v403_v30  ;;  %v7116_v41 = vsub.f32 %v271_v19, %v406_v31  ;;  %v9580_v42 = vand.u32 4294901760, %v7102_v32  ;;  %v259_v31 = vld [vmem:[%s9557_s1 + $0x48] sm:$0xff]  ;;  %s7334_s28 = scalar_lea.vmem %s9556_s0, %s6766_s8  ;;  %s9426_s11 = scalar_lea.vmem [#allocation2], %s4828_s13 }
  0x1e   : > { %9834 = vst [vmem:[#allocation11_spill] sm:$0xff] %v7102_v32  ;;  %9835 = vst [vmem:[#allocation12_spill] sm:$0xff] %v7104_v33  ;;  %v9579_v44 = vand.u32 4294901760, %v7104_v33  ;;  %v7123_v45 = vpack.c.bf16 %v358_v35, %v355_v34  ;;  %v7125_v46 = vsub.f32 %v254_v24, %v355_v34  ;;  %v7127_v47 = vsub.f32 %v255_v25, %v358_v35  ;;  %s4762_s20 = sshll.u32 %s9426_s11, 4  ;;  %s9515_s19 = scalar_lea.sflag [#allocation3], %s191_s12  ;;  %s9508_s20 = int_to_ptr.vmem [resolvable:$true] %s4762_s20 }
  0x1f   : > { %9836 = vst [vmem:[#allocation13_spill] sm:$0xff] %v7112_v39  ;;  %9837 = vst [vmem:[#allocation14_spill] sm:$0xff] %v7116_v41  ;;  %6165 = vmatpush3.bf16.msra.mxu0 %v7095_v27  ;;  %v795_v48 = vsub.f32 %v7102_v32, %v9580_v42  ;;  %v683_v49 = vsub.f32 %v7070_v15, %v9574_v36  ;;  %v690_v50 = vsub.f32 %v7080_v21, %v9573_v37  ;;  %v202_v42 = vld [vmem:[%s7334_s28] sm:$0xff]  ;;  %s6968_s29 = smov [#allocation2]  }
  0x20   : > { %9838 = vst [vmem:[#allocation15_spill] sm:$0xff] %v7123_v45  ;;  %9839 = vst [vmem:[#allocation16_spill] sm:$0xff] %v7125_v46  ;;  %v409_v51 = vand.u32 4294901760, %v272_v38  ;;  %6167 = vmatprep.subr.bf16.mxu0 %v7112_v39  ;;  %v802_v52 = vsub.f32 %v7104_v33, %v9579_v44  ;;  %v412_v53 = vand.u32 4294901760, %v273_v43  ;;  %v9572_v54 = vand.u32 4294901760, %v7084_v23  ;;  %v203_v44 = vld [vmem:[%s7334_s28 + $0x8] sm:$0xff] }
  0x21   : > { %9840 = vst [vmem:[#allocation17_spill] sm:$0xff] %v7127_v47  ;;  %v9571_v55 = vand.u32 4294901760, %v7093_v26  ;;  %v796_v58 = vand.u32 4294901760, %v795_v48  ;;  %v684_v59 = vand.u32 4294901760, %v683_v49  ;;  %v691_v60 = vand.u32 4294901760, %v690_v50  ;;  %s6908_s30 = sshll.u32 %s6968_s29, 4  ;;  %s6909_s30 = int_to_ptr.vmem [resolvable:$false] %s6908_s30 }
  0x22   : > { %v7151_v61 = vsub.f32 %v272_v38, %v409_v51  ;;  %v803_v62 = vand.u32 4294901760, %v802_v52  ;;  %v7153_v63 = vpack.c.bf16 %v412_v53, %v409_v51  ;;  %v7155_v0 = vsub.f32 %v273_v43, %v412_v53  ;;  %s6910_s5 = scalar_lea.vmem %s6909_s30, 4096  ;;  %p6911_p0 = scmp.lt.s32.totalorder %s9508_s20, %s6909_s30 }
  0x23   : > { %v809_v1 = vsub.f32 %v7084_v23, %v9572_v54  ;;  %6169 = vmatpush3.bf16.msra.mxu0 %v7123_v45  ;;  %v6192_v2 = vpack.c.bf16 %v691_v60, %v684_v59  ;;  %v816_v3 = vsub.f32 %v7093_v26, %v9571_v55  ;;  %v361_v4 = vand.u32 4294901760, %v256_v56  ;;  %v277_v59 = vld [vmem:[%s9557_s1 + $0xd8] sm:$0xff] }
  0x24   : > { %9841 = vst [vmem:[#allocation18_spill] sm:$0xff] %v7153_v63  ;;  %v364_v5 = vand.u32 4294901760, %v257_v57  ;;  %v6190_v8 = vpack.c.bf16 %v803_v62, %v796_v58  ;;  %6171 = vmatprep.subr.bf16.mxu0 %v7153_v63  ;;  %v9570_v10 = vand.u32 4294901760, %v7097_v28  ;;  %v9569_v11 = vand.u32 4294901760, %v7099_v29  ;;  %v276_v58 = vld [vmem:[%s9557_s1 + $0xd0] sm:$0xff] }
  0x25   : > { %v810_v9 = vand.u32 4294901760, %v809_v1  ;;  %v817_v13 = vand.u32 4294901760, %v816_v3  ;;  %v7178_v17 = vsub.f32 %v256_v56, %v361_v4  ;;  %v415_v25 = vand.u32 4294901760, %v274_v6  ;;  %v260_v3 = vld [vmem:[%s9557_s1 + $0x50] sm:$0xff] }
  0x26   : > { %v7176_v16 = vpack.c.bf16 %v364_v5, %v361_v4  ;;  %v7180_v18 = vsub.f32 %v257_v57, %v364_v5  ;;  %6191 = vmatprep.subr.bf16.mxu1 %v6190_v8  ;;  %v697_v19 = vsub.f32 %v7097_v28, %v9570_v10  ;;  %v704_v24 = vsub.f32 %v7099_v29, %v9569_v11 }
  0x27   : > { %v418_v30 = vand.u32 4294901760, %v275_v7  ;;  %6193 = vmatpush3.bf16.msra.mxu1 %v6192_v2  ;;  %v6194_v34 = vpack.c.bf16 %v817_v13, %v810_v9  ;;  %v9568_v35 = vand.u32 4294901760, %v7114_v40  ;;  %v9566_v38 = vand.u32 4294901760, %v7116_v41 }
  0x28   : > { %9842 = vst [vmem:[#allocation19_spill] sm:$0xff] %v7176_v16  ;;  %6173 = vmatpush3.bf16.msra.mxu0 %v7176_v16  ;;  %v367_v43 = vand.u32 4294901760, %v258_v12  ;;  %v698_v48 = vand.u32 4294901760, %v697_v19  ;;  %v705_v49 = vand.u32 4294901760, %v704_v24  ;;  %v7196_v51 = vsub.f32 %v274_v6, %v415_v25  ;;  %v261_v19 = vld [vmem:[%s9557_s1 + $0x58] sm:$0xff] }
  0x29   : > { %v7194_v50 = vpack.c.bf16 %v418_v30, %v415_v25  ;;  %6195 = vmatprep.subr.bf16.mxu1 %v6194_v34  ;;  %v7198_v52 = vsub.f32 %v275_v7, %v418_v30  ;;  %v823_v53 = vsub.f32 %v7114_v40, %v9568_v35  ;;  %v830_v56 = vsub.f32 %v7116_v41, %v9566_v38 }
  0x2a   : > { %v370_v57 = vand.u32 4294901760, %v259_v31  ;;  %v6196_v60 = vpack.c.bf16 %v705_v49, %v698_v48  ;;  %v7214_v62 = vsub.f32 %v258_v12, %v367_v43  ;;  %v9565_v1 = vand.u32 4294901760, %v7125_v46 }
  0x2b   : > { %9843 = vst [vmem:[#allocation20_spill] sm:$0xff] %v7194_v50  ;;  %6175 = vmatprep.subr.bf16.mxu0 %v7194_v50  ;;  %v9563_v2 = vand.u32 4294901760, %v7127_v47  ;;  %v824_v4 = vand.u32 4294901760, %v823_v53  ;;  %v831_v5 = vand.u32 4294901760, %v830_v56  ;;  %v421_v12 = vand.u32 4294901760, %v276_v58 }
  0x2c   : > { %v7221_v6 = vpack.c.bf16 %v370_v57, %v367_v43  ;;  %v7223_v7 = vsub.f32 %v259_v31, %v370_v57  ;;  %6197 = vmatpush3.bf16.msra.mxu1 %v6196_v60  ;;  %v711_v8 = vsub.f32 %v7125_v46, %v9565_v1  ;;  %v424_v13 = vand.u32 4294901760, %v277_v59 }
  0x2d   : > { %v718_v9 = vsub.f32 %v7127_v47, %v9563_v2  ;;  %v6198_v24 = vpack.c.bf16 %v831_v5, %v824_v4  ;;  %v9562_v25 = vand.u32 4294901760, %v7151_v61  ;;  %v9561_v30 = vand.u32 4294901760, %v7155_v0  ;;  %v278_v4 = vld [vmem:[%s9557_s1 + $0xe0] sm:$0xff] }
  0x2e   : > { %9844 = vst [vmem:[#allocation21_spill] sm:$0xff] %v7221_v6  ;;  %6177 = vmatpush3.bf16.msra.mxu0 %v7221_v6  ;;  %v373_v31 = vand.u32 4294901760, %v260_v3  ;;  %v712_v34 = vand.u32 4294901760, %v711_v8  ;;  %v7243_v48 = vpack.c.bf16 %v424_v13, %v421_v12  ;;  %v7245_v49 = vsub.f32 %v276_v58, %v421_v12  ;;  %v279_v58 = vld [vmem:[%s9557_s1 + $0xe8] sm:$0xff]  ;;  %v262_v12 = vld [vmem:[%s9557_s1 + $0x60] sm:$0xff] }
  0x2f   : > { %v719_v43 = vand.u32 4294901760, %v718_v9  ;;  %6199 = vmatprep.subr.bf16.mxu1 %v6198_v24  ;;  %v7247_v53 = vsub.f32 %v277_v59, %v424_v13  ;;  %v837_v56 = vsub.f32 %v7151_v61, %v9562_v25  ;;  %v844_v57 = vsub.f32 %v7155_v0, %v9561_v30 }
  0x30   : > { %9846 = vst [vmem:[#allocation22_spill] sm:$0xff] %v7243_v48  ;;  %v376_v60 = vand.u32 4294901760, %v261_v19  ;;  %6179 = vmatprep.subr.bf16.mxu0 %v7243_v48  ;;  %v7262_v59 = vsub.f32 %v260_v3, %v373_v31  ;;  %v9564_v8 = vand.u32 4294901760, %v7178_v17  ;;  %v9567_v9 = vand.u32 4294901760, %v7180_v18 }
  0x31   : > { %v6200_v5 = vpack.c.bf16 %v719_v43, %v712_v34  ;;  %v838_v13 = vand.u32 4294901760, %v837_v56  ;;  %v845_v24 = vand.u32 4294901760, %v844_v57  ;;  %v427_v25 = vand.u32 4294901760, %v278_v4  ;;  %v263_v56 = vld [vmem:[%s9557_s1 + $0x68] sm:$0xff] }
  0x32   : > { %v7275_v30 = vpack.c.bf16 %v376_v60, %v373_v31  ;;  %v7277_v34 = vsub.f32 %v261_v19, %v376_v60  ;;  %v725_v3 = vsub.f32 %v7178_v17, %v9564_v8  ;;  %v732_v43 = vsub.f32 %v7180_v18, %v9567_v9 }
  0x33   : > { %6201 = vmatpush3.bf16.msra.mxu1 %v6200_v5  ;;  %v430_v2 = vand.u32 4294901760, %v279_v58  ;;  %v6202_v31 = vpack.c.bf16 %v845_v24, %v838_v13  ;;  %v9578_v19 = vand.u32 4294901760, %v7196_v51  ;;  %v9577_v57 = vand.u32 4294901760, %v7198_v52 }
  0x34   : > { %9847 = vst [vmem:[#allocation23_spill] sm:$0xff] %v7275_v30  ;;  %6181 = vmatpush3.bf16.msra.mxu0 %v7275_v30  ;;  %v379_v60 = vand.u32 4294901760, %v262_v12  ;;  %v726_v5 = vand.u32 4294901760, %v725_v3  ;;  %v733_v8 = vand.u32 4294901760, %v732_v43  ;;  %v7293_v38 = vsub.f32 %v278_v4, %v427_v25  ;;  %v280_v3 = vld [vmem:[%s9557_s1 + $0xf0] sm:$0xff]  ;;  %v209_v30 = vld [vmem:[%s7334_s28 + $0x38] sm:$0xff] }
  0x35   : > { %v7291_v1 = vpack.c.bf16 %v430_v2, %v427_v25  ;;  %6203 = vmatprep.subr.bf16.mxu1 %v6202_v31  ;;  %v7296_v9 = vsub.f32 %v279_v58, %v430_v2  ;;  %v851_v13 = vsub.f32 %v7196_v51, %v9578_v19  ;;  %v858_v24 = vsub.f32 %v7198_v52, %v9577_v57  ;;  %v281_v25 = vld [vmem:[%s9557_s1 + $0xf8] sm:$0xff]  ;;  %v264_v31 = vld [vmem:[%s9557_s1 + $0x70] sm:$0xff] }
  0x36   : > { %v382_v35 = vand.u32 4294901760, %v263_v56  ;;  %v6204_v4 = vpack.c.bf16 %v733_v8, %v726_v5  ;;  %v7311_v2 = vsub.f32 %v262_v12, %v379_v60  ;;  %v9576_v58 = vand.u32 4294901760, %v7214_v62 }
  0x37   : > { %9848 = vst [vmem:[#allocation24_spill] sm:$0xff] %v7291_v1  ;;  %6183 = vmatprep.subr.bf16.mxu0 %v7291_v1  ;;  %v9575_v43 = vand.u32 4294901760, %v7223_v7  ;;  %v852_v11 = vand.u32 4294901760, %v851_v13  ;;  %v859_v10 = vand.u32 4294901760, %v858_v24  ;;  %v433_v5 = vand.u32 4294901760, %v280_v3  ;;  %v265_v13 = vld [vmem:[%s9557_s1 + $0x78] sm:$0xff] }
  0x38   : > { %v7318_v55 = vpack.c.bf16 %v382_v35, %v379_v60  ;;  %v7320_v54 = vsub.f32 %v263_v56, %v382_v35  ;;  %6205 = vmatpush3.bf16.msra.mxu1 %v6204_v4  ;;  %v739_v8 = vsub.f32 %v7214_v62, %v9576_v58  ;;  %v436_v37 = vand.u32 4294901760, %v281_v25 }
  0x39   : > { %v746_v12 = vsub.f32 %v7223_v7, %v9575_v43  ;;  %v6206_v35 = vpack.c.bf16 %v859_v10, %v852_v11  ;;  %v9581_v56 = vand.u32 4294901760, %v7245_v49  ;;  %v9582_v60 = vand.u32 4294901760, %v7247_v53 }
  0x3a   : > { %9849 = vst [vmem:[#allocation25_spill] sm:$0xff] %v7318_v55  ;;  %6185 = vmatpush3.bf16.msra.mxu0 %v7318_v55  ;;  %v385_v24 = vand.u32 4294901760, %v264_v31  ;;  %v740_v4 = vand.u32 4294901760, %v739_v8  ;;  %v7339_v43 = vpack.c.bf16 %v436_v37, %v433_v5  ;;  %v7341_v58 = vsub.f32 %v280_v3, %v433_v5 }
  0x3b   : > { %v747_v36 = vand.u32 4294901760, %v746_v12  ;;  %6207 = vmatprep.subr.bf16.mxu1 %v6206_v35  ;;  %v7343_v57 = vsub.f32 %v281_v25, %v436_v37  ;;  %v865_v10 = vsub.f32 %v7245_v49, %v9581_v56  ;;  %v872_v11 = vsub.f32 %v7247_v53, %v9582_v60 }
  0x3c   : > { %9850 = vst [vmem:[#allocation26_spill] sm:$0xff] %v7339_v43  ;;  %v388_v19 = vand.u32 4294901760, %v265_v13  ;;  %6187 = vmatprep.subr.bf16.mxu0 %v7339_v43  ;;  %v7354_v12 = vsub.f32 %v264_v31, %v385_v24  ;;  %v9586_v3 = vand.u32 4294901760, %v7262_v59  ;;  %v9585_v37 = vand.u32 4294901760, %v7277_v34 }
  0x3d   : > { %v6208_v8 = vpack.c.bf16 %v747_v36, %v740_v4  ;;  %v866_v25 = vand.u32 4294901760, %v865_v10  ;;  %v873_v5 = vand.u32 4294901760, %v872_v11  ;;  %v7368_v31 = vand.u32 4294901760, %v203_v44 }
  0x3e   : > { %v7358_v35 = vpack.c.bf16 %v388_v19, %v385_v24  ;;  %v7360_v56 = vsub.f32 %v265_v13, %v388_v19  ;;  %v753_v60 = vsub.f32 %v7262_v59, %v9586_v3  ;;  %v760_v36 = vsub.f32 %v7277_v34, %v9585_v37  ;;  %v205_v3 = vld [vmem:[%s7334_s28 + $0x18] sm:$0xff] }
  0x3f   : > { %6209 = vmatpush3.bf16.msra.mxu1 %v6208_v8  ;;  %9852 = vst [vmem:[#allocation28_spill] sm:$0xff] %v7368_v31  ;;  %v7370_v4 = vand.u32 4294901760, %v202_v42  ;;  %v6210_v43 = vpack.c.bf16 %v873_v5, %v866_v25  ;;  %v9589_v19 = vand.u32 4294901760, %v7293_v38  ;;  %v9594_v13 = vand.u32 4294901760, %v7296_v9  ;;  %904 = vmatprep.mubr.f32.mxu1 %v7368_v31 }
  0x40   : > { %9851 = vst [vmem:[#allocation27_spill] sm:$0xff] %v7358_v35  ;;  %6189 = vmatpush3.bf16.msra.mxu0 %v7358_v35  ;;  %v6222_v24 = vpack.c.bf16 %v7104_v33, %v7102_v32  ;;  %v754_v10 = vand.u32 4294901760, %v753_v60  ;;  %v761_v11 = vand.u32 4294901760, %v760_v36  ;;  %v7378_v8 = vsub.f32 %v203_v44, %v7368_v31  ;;  %v206_v36 = vld [vmem:[%s7334_s28 + $0x20] sm:$0xff] }
  0x41   : > { %9853 = vst [vmem:[#allocation29_spill] sm:$0xff] %v7370_v4  ;;  %v7381_v37 = vsub.f32 %v202_v42, %v7370_v4  ;;  %6211 = vmatprep.subr.bf16.mxu1 %v6210_v43  ;;  %v879_v25 = vsub.f32 %v7293_v38, %v9589_v19  ;;  %v886_v5 = vsub.f32 %v7296_v9, %v9594_v13  ;;  %v9596_v60 = vand.u32 4294901760, %v7311_v2  ;;  %v214_v32 = vld [vmem:[%s7334_s28 + $0x60] sm:$0xff] }
  0x42   : > { %9854 = vst [vmem:[#allocation30_spill] sm:$0xff] %v7378_v8  ;;  %6223 = vmatprep.subr.bf16.mxu0 %v6222_v24  ;;  %v9602_v44 = vand.u32 4294901760, %v7320_v54  ;;  %v6212_v42 = vpack.c.bf16 %v761_v11, %v754_v10  ;;  %v9605_v35 = vand.u32 4294901760, %v7378_v8  ;;  %v6224_v19 = vpack.c.bf16 %v7080_v21, %v7070_v15 }
  0x43   : > { %9855 = vst [vmem:[#allocation31_spill] sm:$0xff] %v7381_v37  ;;  %v9608_v43 = vand.u32 4294901760, %v7381_v37  ;;  %v880_v31 = vand.u32 4294901760, %v879_v25  ;;  %v887_v55 = vand.u32 4294901760, %v886_v5  ;;  %v767_v24 = vsub.f32 %v7311_v2, %v9596_v60 }
  0x44   : > { %v774_v13 = vsub.f32 %v7320_v54, %v9602_v44  ;;  %6213 = vmatpush3.bf16.msra.mxu1 %v6212_v42  ;;  %v441_v10 = vsub.f32 %v7378_v8, %v9605_v35  ;;  %v7410_v25 = vand.u32 4294901760, %v206_v36  ;;  %v7412_v5 = vand.u32 4294901760, %v205_v3  ;;  %v208_v8 = vld [vmem:[%s7334_s28 + $0x30] sm:$0xff] }
  0x45   : > { %v447_v11 = vsub.f32 %v7381_v37, %v9608_v43  ;;  %v6214_v21 = vpack.c.bf16 %v887_v55, %v880_v31  ;;  %v768_v60 = vand.u32 4294901760, %v767_v24  ;;  %v9611_v1 = vand.u32 4294901760, %v7341_v58  ;;  %v215_v37 = vld [vmem:[%s7334_s28 + $0x68] sm:$0xff] }
  0x46   : > { %9856 = vst [vmem:[#allocation32_spill] sm:$0xff] %v7410_v25  ;;  %9857 = vst [vmem:[#allocation33_spill] sm:$0xff] %v7412_v5  ;;  %v775_v15 = vand.u32 4294901760, %v774_v13  ;;  %v442_v44 = vand.u32 4294901760, %v441_v10  ;;  %v7417_v48 = vsub.f32 %v206_v36, %v7410_v25  ;;  %v7420_v35 = vsub.f32 %v205_v3, %v7412_v5 }
  0x47   : > { %v448_v42 = vand.u32 4294901760, %v447_v11  ;;  %6215 = vmatprep.subr.bf16.mxu1 %v6214_v21  ;;  %v893_v55 = vsub.f32 %v7341_v58, %v9611_v1  ;;  %v9610_v31 = vand.u32 4294901760, %v7343_v57  ;;  %v9609_v13 = vand.u32 4294901760, %v7354_v12 }
  0x48   : > { %9858 = vst [vmem:[#allocation34_spill] sm:$0xff] %v7417_v48  ;;  %9859 = vst [vmem:[#allocation35_spill] sm:$0xff] %v7420_v35  ;;  %v6216_v43 = vpack.c.bf16 %v775_v15, %v768_v60  ;;  %443 = vmatprep.mubr.f32.mxu0 %v442_v44  ;;  %v9612_v24 = vand.u32 4294901760, %v7417_v48  ;;  %v9617_v36 = vand.u32 4294901760, %v7420_v35  ;;  %v9621_v3 = vand.u32 4294901760, %v7360_v56 }
  0x49   : > { %v7431_v10 = vand.u32 4294901760, %v209_v30  ;;  %449 = vmatmul.mubr.f32.vlgmr.msra.gmra.mrb[0].mxu0 %v448_v42  ;;  %v894_v15 = vand.u32 4294901760, %v893_v55  ;;  %v900_v21 = vsub.f32 %v7343_v57, %v9610_v31  ;;  %v781_v60 = vsub.f32 %v7354_v12, %v9609_v13  ;;  %v212_v13 = vld [vmem:[%s7334_s28 + $0x50] sm:$0xff] }
  0x4a   : > { %6217 = vmatpush3.bf16.msra.mxu1 %v6216_v43  ;;  %v7439_v44 = vand.u32 4294901760, %v208_v8  ;;  %6225 = vmatpush3.bf16.msra.mxu0 %v6224_v19  ;;  %v456_v11 = vsub.f32 %v7417_v48, %v9612_v24  ;;  %v462_v43 = vsub.f32 %v7420_v35, %v9617_v36  ;;  %v788_v42 = vsub.f32 %v7360_v56, %v9621_v3  ;;  %v211_v48 = vld [vmem:[%s7334_s28 + $0x48] sm:$0xff] }
  0x4b   : > { %9860 = vst [vmem:[#allocation36_spill] sm:$0xff] %v7431_v10  ;;  %v7451_v55 = vsub.f32 %v209_v30, %v7431_v10  ;;  %v901_v31 = vand.u32 4294901760, %v900_v21  ;;  %v782_v1 = vand.u32 4294901760, %v781_v60  ;;  %v6226_v24 = vpack.c.bf16 %v7093_v26, %v7084_v23 }
  0x4c   : > { %9861 = vst [vmem:[#allocation37_spill] sm:$0xff] %v7439_v44  ;;  %v7455_v19 = vsub.f32 %v208_v8, %v7439_v44  ;;  %v457_v36 = vand.u32 4294901760, %v456_v11  ;;  %v463_v35 = vand.u32 4294901760, %v462_v43  ;;  %v789_v33 = vand.u32 4294901760, %v788_v42 }
  0x4d   : > { %9862 = vst [vmem:[#allocation38_spill] sm:$0xff] %v7451_v55  ;;  %v9625_v3 = vand.u32 4294901760, %v7451_v55  ;;  %v6218_v30 = vpack.c.bf16 %v901_v31, %v894_v15  ;;  %6227 = vmatprep.subr.bf16.mxu0 %v6226_v24  ;;  %v6228_v8 = vpack.c.bf16 %v7099_v29, %v7097_v28  ;;  %v7466_v21 = vand.u32 4294901760, %v212_v13  ;;  %v218_v31 = vld [vmem:[%s7334_s28 + $0x80] sm:$0xff] }
  0x4e   : > { %9863 = vst [vmem:[#allocation39_spill] sm:$0xff] %v7455_v19  ;;  %v9628_v6 = vand.u32 4294901760, %v7455_v19  ;;  %458 = vmatprep.mubr.f32.mxu0 %v457_v36  ;;  %v6220_v60 = vpack.c.bf16 %v789_v33, %v782_v1  ;;  %v7471_v43 = vand.u32 4294901760, %v211_v48  ;;  %v7473_v42 = vand.u32 4294901760, %v215_v37  ;;  %v217_v36 = vld [vmem:[%s7334_s28 + $0x78] sm:$0xff] }
  0x4f   : > { %9864 = vst [vmem:[#allocation40_spill] sm:$0xff] %v7466_v21  ;;  %v471_v11 = vsub.f32 %v7451_v55, %v9625_v3  ;;  %464 = vmatmul.mubr.f32.gmra.mrb[2].mxu0 %v463_v35  ;;  %6219 = vmatprep.subr.bf16.mxu1 %v6218_v30  ;;  %v7480_v15 = vsub.f32 %v212_v13, %v7466_v21  ;;  %v7482_v33 = vand.u32 4294901760, %v214_v32  ;;  %v221_v3 = vld [vmem:[%s7334_s28 + $0x98] sm:$0xff] }
  0x50   : > { %9865 = vst [vmem:[#allocation41_spill] sm:$0xff] %v7471_v43  ;;  %9866 = vst [vmem:[#allocation42_spill] sm:$0xff] %v7473_v42  ;;  %v477_v24 = vsub.f32 %v7455_v19, %v9628_v6  ;;  %v6230_v1 = vpack.c.bf16 %v7116_v41, %v7114_v40  ;;  %6221 = vmatpush3.bf16.msra.mxu1 %v6220_v60  ;;  %6229 = vmatpush3.bf16.msra.mxu0 %v6228_v8  ;;  %v220_v6 = vld [vmem:[%s7334_s28 + $0x90] sm:$0xff]  ;;  %v7501_v60 = vand.u32 4294901760, %v218_v31 }
  0x51   : > { %9867 = vst [vmem:[#allocation43_spill] sm:$0xff] %v7480_v15  ;;  %9868 = vst [vmem:[#allocation44_spill] sm:$0xff] %v7482_v33  ;;  %v472_v55 = vand.u32 4294901760, %v471_v11  ;;  %v7489_v35 = vsub.f32 %v211_v48, %v7471_v43  ;;  %v7492_v30 = vsub.f32 %v215_v37, %v7473_v42  ;;  %v6232_v13 = vpack.c.bf16 %v7127_v47, %v7125_v46  ;;  %v224_v8 = vld [vmem:[%s7334_s28 + $0xb0] sm:$0xff] }
  0x52   : > { %v478_v19 = vand.u32 4294901760, %v477_v24  ;;  %v9636_v29 = vand.u32 4294901760, %v7480_v15  ;;  %v7499_v41 = vsub.f32 %v214_v32, %v7482_v33  ;;  %6231 = vmatprep.subr.bf16.mxu0 %v6230_v1  ;;  %9872 = vst [vmem:[#allocation48_spill] sm:$0xff] %v7501_v60  ;;  %6255 = vmatprep.subr.bf16.mxu1 %v7068_v14  ;;  %v7507_v11 = vand.u32 4294901760, %v217_v36 }
  0x53   : > { %9869 = vst [vmem:[#allocation45_spill] sm:$0xff] %v7489_v35  ;;  %9870 = vst [vmem:[#allocation46_spill] sm:$0xff] %v7492_v30  ;;  %473 = vmatprep.mubr.f32.mxu0 %v472_v55  ;;  %v9642_v48 = vand.u32 4294901760, %v7489_v35  ;;  %v9643_v37 = vand.u32 4294901760, %v7492_v30  ;;  %v7509_v47 = vand.u32 4294901760, %v221_v3  ;;  %906 = vmatmul.mubr.f32.vlgmr.msra.gmra.mrb[0].mxu1 %v7370_v4  ;;  %v7517_v1 = vsub.f32 %v218_v31, %v7501_v60 }
  0x54   : > { %9871 = vst [vmem:[#allocation47_spill] sm:$0xff] %v7499_v41  ;;  %9873 = vst [vmem:[#allocation49_spill] sm:$0xff] %v7507_v11  ;;  %479 = vmatmul.mubr.f32.gmra.mrb[4].mxu0 %v478_v19  ;;  %v486_v32 = vsub.f32 %v7480_v15, %v9636_v29  ;;  %v7519_v55 = vand.u32 4294901760, %v220_v6  ;;  %911 = vmatprep.mubr.f32.mxu1 %v7410_v25  ;;  %v7529_v29 = vsub.f32 %v217_v36, %v7507_v11  ;;  %v226_v36 = vld [vmem:[%s7334_s28 + $0xc0] sm:$0xff] }
  0x55   : > { %9874 = vst [vmem:[#allocation50_spill] sm:$0xff] %v7509_v47  ;;  %9875 = vst [vmem:[#allocation51_spill] sm:$0xff] %v7517_v1  ;;  %v492_v19 = vsub.f32 %v7489_v35, %v9642_v48  ;;  %v501_v4 = vsub.f32 %v7492_v30, %v9643_v37  ;;  %6233 = vmatpush3.bf16.msra.mxu0 %v6232_v13  ;;  %v7531_v31 = vand.u32 4294901760, %v224_v8  ;;  %v9879_v15 = vand.u32 4294901760, %v7499_v41  ;;  %v227_v35 = vld [vmem:[%s7334_s28 + $0xc8] sm:$0xff] }
  0x56   : > { %9876 = vst [vmem:[#allocation52_spill] sm:$0xff] %v7519_v55  ;;  %9877 = vst [vmem:[#allocation53_spill] sm:$0xff] %v7529_v29  ;;  %v487_v24 = vand.u32 4294901760, %v486_v32  ;;  %v9648_v46 = vand.u32 4294901760, %v7517_v1  ;;  %v7538_v48 = vsub.f32 %v221_v3, %v7509_v47  ;;  %6257 = vmatpush3.bf16.msra.mxu1 %v7078_v20  ;;  %v7543_v30 = vsub.f32 %v220_v6, %v7519_v55  ;;  %v223_v32 = vld [vmem:[%s7334_s28 + $0xa8] sm:$0xff] }
  0x57   : > { %9878 = vst [vmem:[#allocation54_spill] sm:$0xff] %v7531_v31  ;;  %v507_v25 = vsub.f32 %v7499_v41, %v9879_v15  ;;  %v493_v37 = vand.u32 4294901760, %v492_v19  ;;  %v502_v13 = vand.u32 4294901760, %v501_v4  ;;  %6259 = vmatprep.subr.bf16.mxu1 %v7082_v22  ;;  %913 = vmatmul.mubr.f32.gmra.mrb[2].mxu1 %v7412_v5  ;;  %v6234_v4 = vpack.c.bf16 %v7155_v0, %v7151_v61  ;;  %v9912_v20 = vld [vmem:[#allocation22_spill] sm:$0xff] }
  0x58   : > { %9880 = vst [vmem:[#allocation55_spill] sm:$0xff] %v7538_v48  ;;  %9881 = vst [vmem:[#allocation56_spill] sm:$0xff] %v7543_v30  ;;  %488 = vmatprep.mubr.f32.mxu0 %v487_v24  ;;  %v516_v3 = vsub.f32 %v7517_v1, %v9648_v46  ;;  %918 = vmatprep.mubr.f32.mxu1 %v7431_v10  ;;  %v9882_v6 = vand.u32 4294901760, %v7529_v29  ;;  %v6236_v46 = vpack.c.bf16 %v7180_v18, %v7178_v17 }
  0x59   : > { %v508_v15 = vand.u32 4294901760, %v507_v25  ;;  %494 = vmatmul.mubr.f32.gmra.mrb[6].mxu0 %v493_v37  ;;  %v9661_v25 = vand.u32 4294901760, %v7543_v30  ;;  %v7564_v19 = vsub.f32 %v224_v8, %v7531_v31  ;;  %v9884_v37 = vand.u32 4294901760, %v7538_v48  ;;  %6235 = vmatprep.subr.bf16.mxu0 %v6234_v4 }
  0x5a   : > { %v522_v24 = vsub.f32 %v7529_v29, %v9882_v6  ;;  %503 = vmatprep.mubr.f32.mxu0 %v502_v13  ;;  %v517_v5 = vand.u32 4294901760, %v516_v3  ;;  %v7569_v10 = vand.u32 4294901760, %v223_v32  ;;  %v7571_v41 = vand.u32 4294901760, %v227_v35  ;;  %6237 = vmatpush3.bf16.msra.mxu0 %v6236_v46  ;;  %v230_v13 = vld [vmem:[%s7334_s28 + $0xe0] sm:$0xff]  ;;  %v229_v3 = vld [vmem:[%s7334_s28 + $0xd8] sm:$0xff] }
  0x5b   : > { %9883 = vst [vmem:[#allocation57_spill] sm:$0xff] %v7564_v19  ;;  %v531_v1 = vsub.f32 %v7538_v48, %v9884_v37  ;;  %v537_v6 = vsub.f32 %v7543_v30, %v9661_v25  ;;  %v7577_v29 = vand.u32 4294901760, %v226_v36  ;;  %6261 = vmatpush3.bf16.msra.mxu1 %v7095_v27  ;;  %v6238_v46 = vpack.c.bf16 %v7198_v52, %v7196_v51  ;;  %v233_v25 = vld [vmem:[%s7334_s28 + $0xf8] sm:$0xff]  ;;  %v232_v30 = vld [vmem:[%s7334_s28 + $0xf0] sm:$0xff] }
  0x5c   : > { %9885 = vst [vmem:[#allocation58_spill] sm:$0xff] %v7569_v10  ;;  %920 = vmatmul.mubr.f32.gmra.mrb[4].mxu1 %v7439_v44  ;;  %v523_v4 = vand.u32 4294901760, %v522_v24  ;;  %v7584_v37 = vsub.f32 %v223_v32, %v7569_v10  ;;  %v7587_v48 = vsub.f32 %v227_v35, %v7571_v41  ;;  %6263 = vmatprep.subr.bf16.mxu1 %v7112_v39  ;;  %v9889_v44 = vand.u32 4294901760, %v7564_v19 }
  0x5d   : > { %9886 = vst [vmem:[#allocation59_spill] sm:$0xff] %v7577_v29  ;;  %509 = vmatmul.mubr.f32.gmra.mrb[8].mxu0 %v508_v15  ;;  %925 = vmatprep.mubr.f32.mxu1 %v7466_v21  ;;  %v532_v8 = vand.u32 4294901760, %v531_v1  ;;  %v7598_v32 = vsub.f32 %v226_v36, %v7577_v29  ;;  %v6240_v35 = vpack.c.bf16 %v7223_v7, %v7214_v62  ;;  %v7605_v15 = vand.u32 4294901760, %v230_v13 }
  0x5e   : > { %9887 = vst [vmem:[#allocation60_spill] sm:$0xff] %v7584_v37  ;;  %9888 = vst [vmem:[#allocation61_spill] sm:$0xff] %v7587_v48  ;;  %v546_v24 = vsub.f32 %v7564_v19, %v9889_v44  ;;  %518 = vmatprep.mubr.f32.mxu0 %v517_v5  ;;  %v9677_v27 = vand.u32 4294901760, %v7584_v37  ;;  %6239 = vmatprep.subr.bf16.mxu0 %v6238_v46  ;;  %v7607_v1 = vand.u32 4294901760, %v229_v3  ;;  %v7609_v21 = vand.u32 4294901760, %v233_v25  ;;  %v236_v44 = vld [vmem:[%s7334_s28 + $0x110] sm:$0xff] }
  0x5f   : > { %9890 = vst [vmem:[#allocation62_spill] sm:$0xff] %v7598_v32  ;;  %9891 = vst [vmem:[#allocation63_spill] sm:$0xff] %v7605_v15  ;;  %6241 = vmatpush3.bf16.msra.mxu0 %v6240_v35  ;;  %6265 = vmatpush3.bf16.msra.mxu1 %v7123_v45  ;;  %v7616_v36 = vsub.f32 %v230_v13, %v7605_v15  ;;  %v7618_v46 = vand.u32 4294901760, %v232_v30  ;;  %v538_v35 = vand.u32 4294901760, %v537_v6  ;;  %v9894_v5 = vand.u32 4294901760, %v7587_v48  ;;  %v238_v45 = vld [vmem:[%s7334_s28 + $0x120] sm:$0xff] }
  0x60   : > { %927 = vmatmul.mubr.f32.gmra.mrb[6].mxu1 %v7471_v43  ;;  %v547_v39 = vand.u32 4294901760, %v546_v24  ;;  %v552_v19 = vsub.f32 %v7584_v37, %v9677_v27  ;;  %v7625_v43 = vsub.f32 %v229_v3, %v7607_v1  ;;  %v7634_v6 = vand.u32 4294901760, %v236_v44  ;;  %v235_v24 = vld [vmem:[%s7334_s28 + $0x108] sm:$0xff]  ;;  %6267 = vmatprep.subr.bf16.mxu1 %v7153_v63 }
  0x61   : > { %9892 = vst [vmem:[#allocation64_spill] sm:$0xff] %v7616_v36  ;;  %524 = vmatmul.mubr.f32.gmra.mrb[10].mxu0 %v523_v4  ;;  %932 = vmatprep.mubr.f32.mxu1 %v7473_v42  ;;  %v561_v13 = vsub.f32 %v7587_v48, %v9894_v5  ;;  %v7632_v4 = vsub.f32 %v233_v25, %v7609_v21  ;;  %v239_v42 = vld [vmem:[%s7334_s28 + $0x128] sm:$0xff] }
  0x62   : > { %9893 = vst [vmem:[#allocation65_spill] sm:$0xff] %v7625_v43  ;;  %533 = vmatprep.mubr.f32.mxu0 %v532_v8  ;;  %v6242_v3 = vpack.c.bf16 %v7247_v53, %v7245_v49  ;;  %v9896_v8 = vand.u32 4294901760, %v7598_v32  ;;  %v7647_v25 = vsub.f32 %v232_v30, %v7618_v46  ;;  %v6244_v27 = vpack.c.bf16 %v7277_v34, %v7262_v59 }
  0x63   : > { %9895 = vst [vmem:[#allocation66_spill] sm:$0xff] %v7632_v4  ;;  %6269 = vmatpush3.bf16.msra.mxu1 %v7176_v16  ;;  %v553_v48 = vand.u32 4294901760, %v552_v19  ;;  %v7654_v16 = vand.u32 4294901760, %v235_v24  ;;  %v242_v19 = vld [vmem:[%s7334_s28 + $0x140] sm:$0xff] }
  0x64   : > { %934 = vmatmul.mubr.f32.gmra.mrb[8].mxu1 %v7482_v33  ;;  %v567_v5 = vsub.f32 %v7598_v32, %v9896_v8  ;;  %9897 = vst [vmem:[#allocation67_spill] sm:$0xff] %v7647_v25  ;;  %v7656_v33 = vand.u32 4294901760, %v239_v42  ;;  %v562_v8 = vand.u32 4294901760, %v561_v13  ;;  %v9898_v32 = vand.u32 4294901760, %v7616_v36  ;;  %6243 = vmatprep.subr.bf16.mxu0 %v6242_v3 }
  0x65   : > { %539 = vmatmul.mubr.f32.gmra.mrb[12].mxu0 %v538_v35  ;;  %939 = vmatprep.mubr.f32.mxu1 %v7501_v60  ;;  %v7663_v35 = vsub.f32 %v236_v44, %v7634_v6  ;;  %v7667_v37 = vsub.f32 %v235_v24, %v7654_v16  ;;  %v7672_v13 = vand.u32 4294901760, %v238_v45  ;;  %v6248_v44 = vpack.c.bf16 %v7320_v54, %v7311_v2  ;;  %v245_v60 = vld [vmem:[%s7334_s28 + $0x158] sm:$0xff] }
  0x66   : > { %548 = vmatprep.mubr.f32.mxu0 %v547_v39  ;;  %v576_v30 = vsub.f32 %v7616_v36, %v9898_v32  ;;  %6245 = vmatpush3.bf16.msra.mxu0 %v6244_v27  ;;  %v7670_v39 = vsub.f32 %v239_v42, %v7656_v33  ;;  %v6246_v32 = vpack.c.bf16 %v7296_v9, %v7293_v38  ;;  %v568_v27 = vand.u32 4294901760, %v567_v5 }
  0x67   : > { %9899 = vst [vmem:[#allocation68_spill] sm:$0xff] %v7663_v35  ;;  %9900 = vst [vmem:[#allocation69_spill] sm:$0xff] %v7667_v37  ;;  %6271 = vmatprep.subr.bf16.mxu1 %v7194_v50  ;;  %v9902_v24 = vand.u32 4294901760, %v7625_v43  ;;  %v7685_v63 = vand.u32 4294901760, %v242_v19  ;;  %v9903_v50 = vand.u32 4294901760, %v7632_v4  ;;  %v7696_v3 = vsub.f32 %v238_v45, %v7672_v13 }
  0x68   : > { %9901 = vst [vmem:[#allocation70_spill] sm:$0xff] %v7670_v39  ;;  %941 = vmatmul.mubr.f32.gmra.mrb[10].mxu1 %v7507_v11  ;;  %v241_v11 = vld [vmem:[%s7334_s28 + $0x138] sm:$0xff]  ;;  %v577_v36 = vand.u32 4294901760, %v576_v30  ;;  %6247 = vmatprep.subr.bf16.mxu0 %v6246_v32  ;;  %v7701_v30 = vand.u32 4294901760, %v245_v60 }
  0x69   : > { %554 = vmatmul.mubr.f32.gmra.mrb[14].mxu0 %v553_v48  ;;  %946 = vmatprep.mubr.f32.mxu1 %v7509_v47  ;;  %v582_v42 = vsub.f32 %v7625_v43, %v9902_v24  ;;  %v591_v48 = vsub.f32 %v7632_v4, %v9903_v50  ;;  %v9707_v47 = vand.u32 4294901760, %v7663_v35  ;;  %v244_v43 = vld [vmem:[%s7334_s28 + $0x150] sm:$0xff]  ;;  %v6250_v50 = vpack.c.bf16 %v7343_v57, %v7341_v58 }
  0x6a   : > { %563 = vmatprep.mubr.f32.mxu0 %v562_v8  ;;  %6249 = vmatpush3.bf16.msra.mxu0 %v6248_v44  ;;  %v7699_v8 = vand.u32 4294901760, %v241_v11  ;;  %v9904_v24 = vand.u32 4294901760, %v7647_v25  ;;  %v7711_v44 = vsub.f32 %v242_v19, %v7685_v63  ;;  %v248_v4 = vld [vmem:[%s7334_s28 + $0x170] sm:$0xff] }
  0x6b   : > { %v583_v32 = vand.u32 4294901760, %v582_v42  ;;  %v592_v5 = vand.u32 4294901760, %v591_v48  ;;  %6251 = vmatprep.subr.bf16.mxu0 %v6250_v50  ;;  %v9905_v42 = vand.u32 4294901760, %v7667_v37  ;;  %v7726_v48 = vand.u32 4294901760, %v244_v43 }
  0x6c   : > { %948 = vmatmul.mubr.f32.gmra.mrb[12].mxu1 %v7519_v55  ;;  %v597_v45 = vsub.f32 %v7647_v25, %v9904_v24  ;;  %v606_v55 = vsub.f32 %v7663_v35, %v9707_v47  ;;  %v9906_v24 = vand.u32 4294901760, %v7670_v39  ;;  %v9907_v25 = vld [vmem:[#allocation21_spill] sm:$0xff]  ;;  %v7731_v50 = vsub.f32 %v241_v11, %v7699_v8  ;;  %v9910_v35 = vld [vmem:[#allocation12_spill] sm:$0xff] }
  0x6d   : > { %569 = vmatmul.mubr.f32.gmra.mrb[16].mxu0 %v568_v27  ;;  %953 = vmatprep.mubr.f32.mxu1 %v7531_v31  ;;  %v6252_v27 = vpack.c.bf16 %v7360_v56, %v7354_v12  ;;  %v612_v31 = vsub.f32 %v7667_v37, %v9905_v42  ;;  %v7734_v47 = vsub.f32 %v245_v60, %v7701_v30  ;;  %v9908_v42 = vld [vmem:[#allocation11_spill] sm:$0xff]  ;;  %v7742_v22 = vand.u32 4294901760, %v248_v4 }
  0x6e   : > { %578 = vmatprep.mubr.f32.mxu0 %v577_v36  ;;  %v621_v19 = vsub.f32 %v7670_v39, %v9906_v24  ;;  %6273 = vmatpush3.bf16.msra.mxu1 %v9907_v25  ;;  %v9909_v37 = vand.u32 4294901760, %v9908_v42  ;;  %v9911_v24 = vand.u32 4294901760, %v9910_v35  ;;  %v598_v36 = vand.u32 4294901760, %v597_v45  ;;  %v9915_v42 = vld [vmem:[#allocation24_spill] sm:$0xff] }
  0x6f   : > { %6253 = vmatpush3.bf16.msra.mxu0 %v6252_v27  ;;  %v9718_v25 = vand.u32 4294901760, %v7711_v44  ;;  %v607_v11 = vand.u32 4294901760, %v606_v55  ;;  %6275 = vmatprep.subr.bf16.mxu1 %v9912_v20  ;;  %v9913_v60 = vand.u32 4294901760, %v7696_v3  ;;  %v7750_v35 = vsub.f32 %v244_v43, %v7726_v48 }
  0x70   : > { %955 = vmatmul.mubr.f32.gmra.mrb[14].mxu1 %v7569_v10  ;;  %v6286_v39 = vpack.c.bf16 %v9911_v24, %v9909_v37  ;;  %v247_v10 = vld [vmem:[%s7334_s28 + $0x168] sm:$0xff]  ;;  %v9914_v37 = vld [vmem:[#allocation23_spill] sm:$0xff]  ;;  %v622_v45 = vand.u32 4294901760, %v621_v19  ;;  %v7762_v24 = vsub.f32 %v248_v4, %v7742_v22  ;;  %v9917_v19 = vand.u32 4294901760, %v7198_v52 }
  0x71   : > { %584 = vmatmul.mubr.f32.gmra.mrb[18].mxu0 %v583_v32  ;;  %960 = vmatprep.mubr.f32.mxu1 %v7571_v41  ;;  %v627_v27 = vsub.f32 %v7696_v3, %v9913_v60  ;;  %v613_v32 = vand.u32 4294901760, %v612_v31  ;;  %v636_v43 = vsub.f32 %v7711_v44, %v9718_v25  ;;  %v9916_v31 = vand.u32 4294901760, %v7196_v51 }
  0x72   : > { %593 = vmatprep.mubr.f32.mxu0 %v592_v5  ;;  %6277 = vmatpush3.bf16.msra.mxu1 %v9914_v37  ;;  %v9919_v55 = vand.u32 4294901760, %v7223_v7  ;;  %v9920_v25 = vand.u32 4294901760, %v7245_v49  ;;  %v9921_v4 = vand.u32 4294901760, %v7247_v53  ;;  %v9923_v51 = vand.u32 4294901760, %v7277_v34  ;;  %v9926_v7 = vld [vmem:[#allocation25_spill] sm:$0xff] }
  0x73   : > { %6287 = vmatprep.subr.bf16.mxu0 %v6286_v39  ;;  %6279 = vmatprep.subr.bf16.mxu1 %v9915_v42  ;;  %v7764_v39 = vand.u32 4294901760, %v247_v10  ;;  %v7770_v60 = vpack.c.bf16 %v9917_v19, %v9916_v31  ;;  %v9927_v49 = vand.u32 4294901760, %v7311_v2  ;;  %v9928_v53 = vand.u32 4294901760, %v7320_v54 }
  0x74   : > { %962 = vmatmul.mubr.f32.gmra.mrb[16].mxu1 %v7577_v29  ;;  %v9922_v29 = vand.u32 4294901760, %v7262_v59  ;;  %v9929_v59 = vand.u32 4294901760, %v7341_v58  ;;  %v9930_v34 = vand.u32 4294901760, %v7343_v57  ;;  %v628_v54 = vand.u32 4294901760, %v627_v27 }
  0x75   : > { %599 = vmatmul.mubr.f32.gmra.mrb[20].mxu0 %v598_v36  ;;  %967 = vmatprep.mubr.f32.mxu1 %v7605_v15  ;;  %v9918_v36 = vand.u32 4294901760, %v7214_v62  ;;  %v7782_v15 = vpack.c.bf16 %v9921_v4, %v9920_v25  ;;  %v9925_v62 = vand.u32 4294901760, %v7296_v9  ;;  %v7801_v25 = vpack.c.bf16 %v9928_v53, %v9927_v49 }
  0x76   : > { %608 = vmatprep.mubr.f32.mxu0 %v607_v11  ;;  %v7788_v52 = vpack.c.bf16 %v9923_v51, %v9922_v29  ;;  %v9924_v11 = vand.u32 4294901760, %v7293_v38  ;;  %6281 = vmatpush3.bf16.msra.mxu1 %v9926_v7  ;;  %v7807_v29 = vpack.c.bf16 %v9930_v34, %v9929_v59  ;;  %v9931_v38 = vld [vmem:[#allocation26_spill] sm:$0xff]  ;;  %v9932_v9 = vand.u32 4294901760, %v7354_v12  ;;  %v9936_v51 = vld [vmem:[#allocation27_spill] sm:$0xff]  ;;  %v9938_v34 = vld [vmem:[#allocation5_spill] sm:$0xff] }
  0x77   : > { %v7776_v5 = vpack.c.bf16 %v9919_v55, %v9918_v36  ;;  %6283 = vmatprep.subr.bf16.mxu1 %v9931_v38  ;;  %v9933_v55 = vand.u32 4294901760, %v7360_v56  ;;  %v9934_v2 = vand.u32 4294901760, %v7731_v50  ;;  %v656_v58 = vand.u32 4294901760, %v7750_v35  ;;  %v9937_v59 = vld [vmem:[#allocation30_spill] sm:$0xff] }
  0x78   : > { %v7794_v31 = vpack.c.bf16 %v9925_v62, %v9924_v11  ;;  %969 = vmatmul.mubr.f32.gmra.mrb[18].mxu1 %v7607_v1  ;;  %v7823_v36 = vsub.f32 %v247_v10, %v7764_v39  ;;  %v637_v4 = vand.u32 4294901760, %v636_v43  ;;  %v9935_v12 = vand.u32 4294901760, %v7734_v47 }
  0x79   : > { %v7815_v19 = vpack.c.bf16 %v9933_v55, %v9932_v9  ;;  %614 = vmatmul.mubr.f32.gmra.mrb[22].mxu0 %v613_v32  ;;  %974 = vmatprep.mubr.f32.mxu1 %v7609_v21  ;;  %v642_v57 = vsub.f32 %v7731_v50, %v9934_v2  ;;  %v665_v32 = vand.u32 4294901760, %v7762_v24  ;;  %v657_v10 = vsub.f32 %v7750_v35, %v656_v58  ;;  %v9940_v55 = vld [vmem:[#allocation7_spill] sm:$0xff] }
  0x7a   : > { %623 = vmatprep.mubr.f32.mxu0 %v622_v45  ;;  %v651_v56 = vsub.f32 %v7734_v47, %v9935_v12  ;;  %6285 = vmatpush3.bf16.msra.mxu1 %v9936_v51  ;;  %v671_v45 = vand.u32 4294901760, %v7823_v36  ;;  %v9939_v9 = vand.u32 4294901760, %v9938_v34  ;;  %v9953_v34 = vand.u32 4294901760, %v9937_v59 }
  0x7b   : > { %6319 = vmatprep.subr.bf16.mxu1 %v7068_v14  ;;  %v643_v27 = vand.u32 4294901760, %v642_v57  ;;  %v666_v11 = vsub.f32 %v7762_v24, %v665_v32  ;;  %v658_v14 = vand.u32 4294901760, %v657_v10  ;;  %v9942_v57 = vand.u32 4294901760, %v7084_v23 }
  0x7c   : > { %976 = vmatmul.mubr.f32.gmra.mrb[20].mxu1 %v7618_v46  ;;  %v652_v43 = vand.u32 4294901760, %v651_v56  ;;  %v672_v62 = vsub.f32 %v7823_v36, %v671_v45  ;;  %v9944_v56 = vld [vmem:[#allocation31_spill] sm:$0xff]  ;;  %v9946_v10 = vand.u32 4294901760, %v7097_v28  ;;  %v9949_v23 = vand.u32 4294901760, %v7114_v40  ;;  %v9955_v28 = vld [vmem:[#allocation16_spill] sm:$0xff] }
  0x7d   : > { %629 = vmatmul.mubr.f32.gmra.mrb[24].mxu0 %v628_v54  ;;  %981 = vmatprep.mubr.f32.mxu1 %v7634_v6  ;;  %v667_v49 = vand.u32 4294901760, %v666_v11  ;;  %v9941_v54 = vand.u32 4294901760, %v9940_v55  ;;  %v9956_v55 = vand.u32 4294901760, %v9955_v28  ;;  %v9959_v40 = vand.u32 4294901760, %v7151_v61  ;;  %v9967_v61 = vld [vmem:[#allocation6_spill] sm:$0xff] }
  0x7e   : > { %638 = vmatprep.mubr.f32.mxu0 %v637_v4  ;;  %v673_v53 = vand.u32 4294901760, %v672_v62  ;;  %v9943_v4 = vand.u32 4294901760, %v7093_v26  ;;  %v9950_v62 = vld [vmem:[#allocation14_spill] sm:$0xff] }
  0x7f   : > { %v6288_v2 = vpack.c.bf16 %v9941_v54, %v9939_v9  ;;  %v9951_v26 = vand.u32 4294901760, %v9950_v62  ;;  %v9954_v9 = vld [vmem:[#allocation38_spill] sm:$0xff]  ;;  %v9957_v54 = vld [vmem:[#allocation17_spill] sm:$0xff] }
  0x80   : > { %983 = vmatmul.mubr.f32.gmra.mrb[22].mxu1 %v7654_v16  ;;  %v6290_v12 = vpack.c.bf16 %v9943_v4, %v9942_v57  ;;  %v9960_v4 = vand.u32 4294901760, %v7155_v0 }
  0x81   : > { %644 = vmatmul.mubr.f32.gmra.mrb[26].mxu0 %v643_v27  ;;  %988 = vmatprep.mubr.f32.mxu1 %v7656_v33  ;;  %v9945_v27 = vld [vmem:[#allocation34_spill] sm:$0xff] }
  0x82   : > { %653 = vmatprep.mubr.f32.mxu0 %v652_v43  ;;  %v9947_v43 = vld [vmem:[#allocation10_spill] sm:$0xff] }
  0x83   : > { %v9948_v11 = vand.u32 4294901760, %v9947_v43  ;;  %v9962_v43 = vld [vmem:[#allocation39_spill] sm:$0xff] }
  0x84   : > { %990 = vmatmul.mubr.f32.gmra.mrb[24].mxu1 %v7672_v13 }
  0x85   : > { %659 = vmatmul.mubr.f32.gmra.mrb[28].mxu0 %v658_v14  ;;  %995 = vmatprep.mubr.f32.mxu1 %v7685_v63  ;;  %v6292_v14 = vpack.c.bf16 %v9948_v11, %v9946_v10  ;;  %v9961_v10 = vand.u32 4294901760, %v9944_v56  ;;  %v9964_v11 = vld [vmem:[#allocation43_spill] sm:$0xff] }
  0x86   : > { %668 = vmatprep.mubr.f32.mxu0 %v667_v49  ;;  %v6294_v49 = vpack.c.bf16 %v9951_v26, %v9949_v23  ;;  %v9966_v23 = vand.u32 4294901760, %v7180_v18  ;;  %v9970_v26 = vld [vmem:[#allocation45_spill] sm:$0xff]  ;;  %v9974_v18 = vand.u32 4294901760, %v9962_v43  ;;  %v9977_v28 = vand.u32 4294901760, %v9964_v11 }
  0x88   : > { %997 = vmatmul.mubr.f32.gmra.mrb[26].mxu1 %v7699_v8 }
  0x89   : > { %674 = vmatmul.mubr.f32.gmra.mrb[30].mxu0 %v673_v53  ;;  %1002 = vmatprep.mubr.f32.mxu1 %v7701_v30  ;;  %v9952_v53 = vld [vmem:[#allocation35_spill] sm:$0xff] }
  0x8a   : > { %1146 = vmatprep.mubr.f32.mxu0 %v9937_v59  ;;  %v9963_v59 = vand.u32 4294901760, %v9945_v27  ;;  %v9968_v0 = vand.u32 4294901760, %v9952_v53 }
  0x8c   : > { %1004 = vmatmul.mubr.f32.gmra.mrb[28].mxu1 %v7726_v48 }
  0x8d   : > { %1149 = vmatmul.mubr.f32.vlgmr.msra.gmra.mrb[32].mxu0 %v9944_v56  ;;  %1009 = vmatprep.mubr.f32.mxu1 %v7742_v22  ;;  %v9969_v56 = vld [vmem:[#allocation8_spill] sm:$0xff] }
  0x8e   : > { %6289 = vmatpush3.bf16.msra.mxu0 %v6288_v2  ;;  %1155 = vmatprep.mubr.f32.mxu0 %v9945_v27  ;;  %v9958_v2 = vand.u32 4294901760, %v9957_v54  ;;  %v9971_v27 = vand.u32 4294901760, %v9954_v9  ;;  %v9981_v54 = vld [vmem:[#allocation18_spill] sm:$0xff] }
  0x8f   : > { %6291 = vmatprep.subr.bf16.mxu0 %v6290_v12  ;;  %v6298_v12 = vpack.c.bf16 %v9960_v4, %v9959_v40  ;;  %v9982_v40 = vld [vmem:[#allocation53_spill] sm:$0xff]  ;;  %v9985_v4 = vld [vmem:[#allocation19_spill] sm:$0xff] }
  0x90   : > { %1011 = vmatmul.mubr.f32.gmra.mrb[30].mxu1 %v7764_v39  ;;  %v6296_v57 = vpack.c.bf16 %v9958_v2, %v9956_v55  ;;  %v9978_v55 = vld [vmem:[#allocation51_spill] sm:$0xff]  ;;  %v282_v2 = vld [vmem:[%s9557_s1 + $0x100] sm:$0xff] }
  0x91   : > { %1158 = vmatmul.mubr.f32.gmra.mrb[34].mxu0 %v9952_v53  ;;  %1388 = vmatprep.mubr.f32.mxu1 %v9953_v34  ;;  %v9975_v34 = vld [vmem:[#allocation13_spill] sm:$0xff]  ;;  %v9976_v53 = vld [vmem:[#allocation47_spill] sm:$0xff] }
  0x92   : > { %1164 = vmatprep.mubr.f32.mxu0 %v9954_v9  ;;  %6293 = vmatpush3.bf16.msra.mxu0 %v6292_v14  ;;  %v9965_v14 = vand.u32 4294901760, %v7178_v17  ;;  %v9973_v17 = vld [vmem:[#allocation9_spill] sm:$0xff]  ;;  %v9979_v9 = vld [vmem:[#allocation15_spill] sm:$0xff] }
  0x93   : > { %6295 = vmatprep.subr.bf16.mxu0 %v6294_v49  ;;  %v9972_v49 = vld [vmem:[#allocation46_spill] sm:$0xff] }
  0x94   : > { %1392 = vmatmul.mubr.f32.vlgmr.msra.gmra.mrb[32].mxu1 %v9961_v10  ;;  %v6300_v62 = vpack.c.bf16 %v9966_v23, %v9965_v14  ;;  %v9989_v14 = vand.u32 4294901760, %v9978_v55  ;;  %v9990_v23 = vld [vmem:[#allocation57_spill] sm:$0xff] }
  0x95   : > { %1167 = vmatmul.mubr.f32.gmra.mrb[36].mxu0 %v9962_v43  ;;  %1399 = vmatprep.mubr.f32.mxu1 %v9963_v59  ;;  %v9986_v43 = vand.u32 4294901760, %v9976_v53  ;;  %v9987_v59 = vld [vmem:[#allocation20_spill] sm:$0xff] }
  0x96   : > { %1173 = vmatprep.mubr.f32.mxu0 %v9964_v11  ;;  %6297 = vmatpush3.bf16.msra.mxu0 %v6296_v57  ;;  %v283_v57 = vld [vmem:[%s9557_s1 + $0x108] sm:$0xff]  ;;  %v9988_v11 = vld [vmem:[#allocation56_spill] sm:$0xff] }
  0x97   : > { %6299 = vmatprep.subr.bf16.mxu0 %v6298_v12  ;;  %6321 = vmatpush3.bf16.msra.mxu1 %v9967_v61  ;;  %v2045_v12 = vand.u32 4294901760, %v282_v2  ;;  %v2048_v10 = vand.u32 4294901760, %v283_v57  ;;  %v9993_v61 = vld [vmem:[#allocation60_spill] sm:$0xff] }
  0x98   : > { %1403 = vmatmul.mubr.f32.gmra.mrb[34].mxu1 %v9968_v0  ;;  %6323 = vmatprep.subr.bf16.mxu1 %v9969_v56  ;;  %v9995_v56 = vld [vmem:[#allocation61_spill] sm:$0xff] }
  0x99   : > { %1176 = vmatmul.mubr.f32.gmra.mrb[38].mxu0 %v9970_v26  ;;  %1410 = vmatprep.mubr.f32.mxu1 %v9971_v27  ;;  %v7958_v27 = vsub.f32 %v282_v2, %v2045_v12 }
  0x9a   : > { %1182 = vmatprep.mubr.f32.mxu0 %v9972_v49  ;;  %6301 = vmatpush3.bf16.msra.mxu0 %v6300_v62  ;;  %v9992_v62 = vand.u32 4294901760, %v9982_v40 }
  0x9b   : > { %6303 = vmatprep.subr.bf16.mxu0 %v7770_v60  ;;  %6325 = vmatpush3.bf16.msra.mxu1 %v9973_v17  ;;  %v9980_v60 = vand.u32 4294901760, %v9970_v26  ;;  %v9999_v26 = vld [vmem:[#allocation64_spill] sm:$0xff]  ;;  %v10002_v17 = vand.u32 4294901760, %v9995_v56 }
  0x9c   : > { %1414 = vmatmul.mubr.f32.gmra.mrb[36].mxu1 %v9974_v18  ;;  %6327 = vmatprep.subr.bf16.mxu1 %v9975_v34  ;;  %v10003_v18 = vld [vmem:[#allocation66_spill] sm:$0xff]  ;;  %v10005_v34 = vld [vmem:[#allocation67_spill] sm:$0xff] }
  0x9d   : > { %1185 = vmatmul.mubr.f32.gmra.mrb[40].mxu0 %v9976_v53  ;;  %1421 = vmatprep.mubr.f32.mxu1 %v9977_v28  ;;  %v10007_v53 = vld [vmem:[#allocation68_spill] sm:$0xff] }
  0x9e   : > { %1191 = vmatprep.mubr.f32.mxu0 %v9978_v55  ;;  %6305 = vmatpush3.bf16.msra.mxu0 %v7776_v5  ;;  %v9983_v5 = vand.u32 4294901760, %v9972_v49  ;;  %v7960_v49 = vsub.f32 %v283_v57, %v2048_v10  ;;  %v10009_v55 = vld [vmem:[#allocation69_spill] sm:$0xff] }
  0x9f   : > { %6307 = vmatprep.subr.bf16.mxu0 %v7782_v15  ;;  %6329 = vmatpush3.bf16.msra.mxu1 %v9979_v9  ;;  %v9984_v15 = vld [vmem:[#allocation55_spill] sm:$0xff]  ;;  %v10010_v9 = vand.u32 4294901760, %v10003_v18  ;;  %v10014_v2 = vand.u32 4294901760, %v10009_v55 }
  0xa0   : > { %1425 = vmatmul.mubr.f32.gmra.mrb[38].mxu1 %v9980_v60  ;;  %6331 = vmatprep.subr.bf16.mxu1 %v9981_v54  ;;  %v9994_v0 = vand.u32 4294901760, %v9984_v15  ;;  %v10011_v60 = vld [vmem:[#allocation70_spill] sm:$0xff]  ;;  %v10013_v54 = vand.u32 4294901760, %v10007_v53 }
  0xa1   : > { %1194 = vmatmul.mubr.f32.gmra.mrb[42].mxu0 %v9982_v40  ;;  %1432 = vmatprep.mubr.f32.mxu1 %v9983_v5  ;;  %v10015_v57 = vand.u32 4294901760, %v10011_v60  ;;  %v9742_v40 = vand.u32 4294901760, %v7958_v27  ;;  %v9741_v5 = vand.u32 4294901760, %v7960_v49 }
  0xa2   : > { %1200 = vmatprep.mubr.f32.mxu0 %v9984_v15  ;;  %6309 = vmatpush3.bf16.msra.mxu0 %v7788_v52  ;;  %v9991_v52 = vld [vmem:[#allocation21_spill] sm:$0xff]  ;;  %v10016_v15 = vand.u32 4294901760, %v7696_v3 }
  0xa3   : > { %6311 = vmatprep.subr.bf16.mxu0 %v7794_v31  ;;  %6333 = vmatpush3.bf16.msra.mxu1 %v9985_v4  ;;  %v7939_v31 = vpack.c.bf16 %v2048_v10, %v2045_v12  ;;  %v8006_v4 = vld [vmem:[%s9557_s1 + $0x110] sm:$0xff]  ;;  %v8011_v12 = vld [vmem:[%s9557_s1 + $0x118] sm:$0xff]  ;;  %v10017_v10 = vand.u32 4294901760, %v7711_v44 }
  0xa4   : > { %1436 = vmatmul.mubr.f32.gmra.mrb[40].mxu1 %v9986_v43  ;;  %6335 = vmatprep.subr.bf16.mxu1 %v9987_v59  ;;  %v2054_v43 = vand.u32 4294901760, %v8011_v12  ;;  %v2277_v59 = vsub.f32 %v7958_v27, %v9742_v40 }
  0xa5   : > { %1203 = vmatmul.mubr.f32.gmra.mrb[44].mxu0 %v9988_v11  ;;  %1443 = vmatprep.mubr.f32.mxu1 %v9989_v14  ;;  %v10018_v14 = vand.u32 4294901760, %v7731_v50 }
  0xa6   : > { %1209 = vmatprep.mubr.f32.mxu0 %v9990_v23  ;;  %6313 = vmatpush3.bf16.msra.mxu0 %v7801_v25  ;;  %v9996_v25 = vand.u32 4294901760, %v9988_v11  ;;  %v2284_v11 = vsub.f32 %v7960_v49, %v9741_v5 }
  0xa7   : > { %6315 = vmatprep.subr.bf16.mxu0 %v7807_v29  ;;  %6337 = vmatpush3.bf16.msra.mxu1 %v9991_v52  ;;  %v9997_v29 = vld [vmem:[#allocation62_spill] sm:$0xff] }
  0xa8   : > { %1447 = vmatmul.mubr.f32.gmra.mrb[42].mxu1 %v9992_v62  ;;  %6339 = vmatprep.subr.bf16.mxu1 %v9912_v20  ;;  %v9998_v20 = vand.u32 4294901760, %v9990_v23  ;;  %v10020_v23 = vld [vmem:[#allocation28_spill] sm:$0xff]  ;;  %v2278_v62 = vand.u32 4294901760, %v2277_v59  ;;  %v8123_v59 = vsub.f32 %v8011_v12, %v2054_v43 }
  0xa9   : > { %1212 = vmatmul.mubr.f32.gmra.mrb[46].mxu0 %v9993_v61  ;;  %1454 = vmatprep.mubr.f32.mxu1 %v9994_v0 }
  0xaa   : > { %1218 = vmatprep.mubr.f32.mxu0 %v9995_v56  ;;  %6317 = vmatpush3.bf16.msra.mxu0 %v7815_v19  ;;  %v10001_v19 = vld [vmem:[#allocation65_spill] sm:$0xff] }
  0xab   : > { %6341 = vmatpush3.bf16.msra.mxu1 %v9914_v37  ;;  %6351 = vmatprep.subr.bf16.mxu0 %v7939_v31  ;;  %v10000_v37 = vand.u32 4294901760, %v9993_v61  ;;  %v10008_v28 = vand.u32 4294901760, %v10001_v19  ;;  %v2285_v61 = vand.u32 4294901760, %v2284_v11  ;;  %v10023_v56 = vld [vmem:[#allocation33_spill] sm:$0xff] }
  0xac   : > { %1458 = vmatmul.mubr.f32.gmra.mrb[44].mxu1 %v9996_v25  ;;  %6343 = vmatprep.subr.bf16.mxu1 %v9915_v42  ;;  %v7968_v42 = vpack.c.bf16 %v7960_v49, %v7958_v27  ;;  %v10030_v25 = vld [vmem:[#allocation48_spill] sm:$0xff] }
  0xad   : > { %1221 = vmatmul.mubr.f32.gmra.mrb[48].mxu0 %v9997_v29  ;;  %1465 = vmatprep.mubr.f32.mxu1 %v9998_v20  ;;  %v8045_v0 = vpack.c.bf16 %v2285_v61, %v2278_v62  ;;  %v10032_v20 = vld [vmem:[#allocation50_spill] sm:$0xff]  ;;  %v9738_v62 = vand.u32 4294901760, %v8123_v59 }
  0xae   : > { %1227 = vmatprep.mubr.f32.mxu0 %v9999_v26 }
  0xaf   : > { %6345 = vmatpush3.bf16.msra.mxu1 %v9926_v7  ;;  %v10004_v7 = vand.u32 4294901760, %v9997_v29  ;;  %v10031_v29 = vld [vmem:[#allocation49_spill] sm:$0xff] }
  0xb0   : > { %1469 = vmatmul.mubr.f32.gmra.mrb[46].mxu1 %v10000_v37  ;;  %6347 = vmatprep.subr.bf16.mxu1 %v9931_v38  ;;  %v10006_v38 = vand.u32 4294901760, %v9999_v26  ;;  %v10033_v26 = vld [vmem:[#allocation52_spill] sm:$0xff]  ;;  %v10034_v37 = vld [vmem:[#allocation54_spill] sm:$0xff] }
  0xb1   : > { %1230 = vmatmul.mubr.f32.gmra.mrb[50].mxu0 %v10001_v19  ;;  %1476 = vmatprep.mubr.f32.mxu1 %v10002_v17  ;;  %v10035_v19 = vld [vmem:[#allocation58_spill] sm:$0xff]  ;;  %v10036_v17 = vld [vmem:[#allocation59_spill] sm:$0xff] }
  0xb2   : > { %1236 = vmatprep.mubr.f32.mxu0 %v10003_v18  ;;  %v10037_v18 = vld [vmem:[#allocation63_spill] sm:$0xff] }
  0xb3   : > { %6349 = vmatpush3.bf16.msra.mxu1 %v9936_v51  ;;  %v10012_v51 = vand.u32 4294901760, %v10005_v34 }
  0xb4   : > { %1480 = vmatmul.mubr.f32.gmra.mrb[48].mxu1 %v10004_v7  ;;  %v204_v7 = vld [vmem:[%s7334_s28 + $0x10] sm:$0xff] }
  0xb5   : > { %1239 = vmatmul.mubr.f32.gmra.mrb[52].mxu0 %v10005_v34  ;;  %1487 = vmatprep.mubr.f32.mxu1 %v10006_v38  ;;  %v295_v34 = vsel %vm293_vm0, %v204_v7, 0  ;;  %v207_v38 = vld [vmem:[%s7334_s28 + $0x28] sm:$0xff] }
  0xb6   : > { %1245 = vmatprep.mubr.f32.mxu0 %v10007_v53  ;;  %v210_v53 = vld [vmem:[%s7334_s28 + $0x40] sm:$0xff] }
  0xb8   : > { %1491 = vmatmul.mubr.f32.gmra.mrb[50].mxu1 %v10008_v28  ;;  %v8094_v28 = vand.u32 4294901760, %v295_v34 }
  0xb9   : > { %1248 = vmatmul.mubr.f32.gmra.mrb[54].mxu0 %v10009_v55  ;;  %1498 = vmatprep.mubr.f32.mxu1 %v10010_v9  ;;  %v301_v55 = vsel %vm293_vm0, %v210_v53, 0  ;;  %v213_v9 = vld [vmem:[%s7334_s28 + $0x58] sm:$0xff] }
  0xba   : > { %1254 = vmatprep.mubr.f32.mxu0 %v10011_v60  ;;  %v216_v60 = vld [vmem:[%s7334_s28 + $0x70] sm:$0xff] }
  0xbc   : > { %1502 = vmatmul.mubr.f32.gmra.mrb[52].mxu1 %v10012_v51 }
  0xbd   : > { %1257 = vmatmul.mubr.f32.gmra.mrb[56].mxu0 %v7696_v3  ;;  %1509 = vmatprep.mubr.f32.mxu1 %v10013_v54  ;;  %v2051_v3 = vand.u32 4294901760, %v8006_v4  ;;  %v8107_v54 = vsub.f32 %v295_v34, %v8094_v28 }
  0xbe   : > { %1263 = vmatprep.mubr.f32.mxu0 %v7711_v44  ;;  %v10019_v44 = vand.u32 4294901760, %v7734_v47 }
  0xbf   : > { %v8035_v52 = vpack.c.bf16 %v2054_v43, %v2051_v3  ;;  %v9740_v12 = vand.u32 4294901760, %v8107_v54  ;;  %v225_v43 = vld [vmem:[%s7334_s28 + $0xb8] sm:$0xff] }
  0xc0   : > { %1513 = vmatmul.mubr.f32.gmra.mrb[54].mxu1 %v10014_v2  ;;  %v8109_v2 = vand.u32 4294901760, %v301_v55 }
  0xc1   : > { %1266 = vmatmul.mubr.f32.gmra.mrb[58].mxu0 %v7731_v50  ;;  %1520 = vmatprep.mubr.f32.mxu1 %v10015_v57  ;;  %v10021_v50 = vld [vmem:[#allocation29_spill] sm:$0xff]  ;;  %v304_v57 = vsel %vm293_vm0, %v213_v9, 0 }
  0xc2   : > { %1272 = vmatprep.mubr.f32.mxu0 %v7734_v47  ;;  %v10022_v47 = vld [vmem:[#allocation32_spill] sm:$0xff] }
  0xc4   : > { %1524 = vmatmul.mubr.f32.gmra.mrb[56].mxu1 %v10016_v15  ;;  %v219_v15 = vld [vmem:[%s7334_s28 + $0x88] sm:$0xff] }
  0xc5   : > { %1275 = vmatmul.mubr.f32.gmra.mrb[60].mxu0 %v7750_v35  ;;  %1531 = vmatprep.mubr.f32.mxu1 %v10017_v10  ;;  %v10024_v35 = vld [vmem:[#allocation36_spill] sm:$0xff]  ;;  %v222_v10 = vld [vmem:[%s7334_s28 + $0xa0] sm:$0xff] }
  0xc6   : > { %1281 = vmatprep.mubr.f32.mxu0 %v7762_v24  ;;  %v10025_v24 = vld [vmem:[#allocation37_spill] sm:$0xff] }
  0xc8   : > { %1535 = vmatmul.mubr.f32.gmra.mrb[58].mxu1 %v10018_v14  ;;  %v8131_v14 = vand.u32 4294901760, %v304_v57 }
  0xc9   : > { %1284 = vmatmul.mubr.f32.gmra.mrb[62].mxu0 %v7823_v36  ;;  %1542 = vmatprep.mubr.f32.mxu1 %v10019_v44  ;;  %v10027_v36 = vld [vmem:[#allocation41_spill] sm:$0xff]  ;;  %v310_v44 = vsel %vm293_vm0, %v219_v15, 0 }
  0xca   : > { %1723 = vmatprep.mubr.f32.mxu0 %v10020_v23  ;;  %v8147_v61 = vand.u32 4294901760, %v310_v44 }
  0xcc   : > { %1546 = vmatmul.mubr.f32.gmra.mrb[60].mxu1 %v656_v58  ;;  %v10026_v58 = vld [vmem:[#allocation40_spill] sm:$0xff] }
  0xcd   : > { %1725 = vmatmul.mubr.f32.vlgmr.msra.gmra.mrb[64].mxu0 %v10021_v50  ;;  %1553 = vmatprep.mubr.f32.mxu1 %v665_v32  ;;  %v10028_v32 = vld [vmem:[#allocation42_spill] sm:$0xff] }
  0xce   : > { %6353 = vmatpush3.bf16.msra.mxu0 %v7939_v31  ;;  %1730 = vmatprep.mubr.f32.mxu0 %v10022_v47 }
  0xcf   : > { %6355 = vmatprep.subr.bf16.mxu0 %v8035_v52 }
  0xd0   : > { %1557 = vmatmul.mubr.f32.gmra.mrb[62].mxu1 %v671_v45  ;;  %v10029_v45 = vld [vmem:[#allocation44_spill] sm:$0xff] }
  0xd1   : > { %1732 = vmatmul.mubr.f32.gmra.mrb[66].mxu0 %v10023_v56  ;;  %1932 = vmatprep.mubr.f32.mxu1 %v10020_v23 }
  0xd2   : > { %1737 = vmatprep.mubr.f32.mxu0 %v10024_v35  ;;  %6357 = vmatpush3.bf16.msra.mxu0 %v8035_v52 }
  0xd3   : > { %6359 = vmatprep.subr.bf16.mxu0 %v8045_v0 }
  0xd4   : > { %1934 = vmatmul.mubr.f32.vlgmr.msra.gmra.mrb[64].mxu1 %v10021_v50 }
  0xd5   : > { %1739 = vmatmul.mubr.f32.gmra.mrb[68].mxu0 %v10025_v24  ;;  %1939 = vmatprep.mubr.f32.mxu1 %v10022_v47 }
  0xd6   : > { %1744 = vmatprep.mubr.f32.mxu0 %v10026_v58 }
  0xd8   : > { %1941 = vmatmul.mubr.f32.gmra.mrb[66].mxu1 %v10023_v56  ;;  %v8155_v56 = vsub.f32 %v304_v57, %v8131_v14  ;;  %v240_v57 = vld [vmem:[%s7334_s28 + $0x130] sm:$0xff] }
  0xd9   : > { %1746 = vmatmul.mubr.f32.gmra.mrb[70].mxu0 %v10027_v36  ;;  %1946 = vmatprep.mubr.f32.mxu1 %v10024_v35  ;;  %v316_v35 = vsel %vm293_vm0, %v225_v43, 0 }
  0xda   : > { %1751 = vmatprep.mubr.f32.mxu0 %v10028_v32 }
  0xdc   : > { %1948 = vmatmul.mubr.f32.gmra.mrb[68].mxu1 %v10025_v24 }
  0xdd   : > { %1753 = vmatmul.mubr.f32.gmra.mrb[72].mxu0 %v10029_v45  ;;  %1953 = vmatprep.mubr.f32.mxu1 %v10026_v58 }
  0xde   : > { %1758 = vmatprep.mubr.f32.mxu0 %v10030_v25 }
  0xe0   : > { %1955 = vmatmul.mubr.f32.gmra.mrb[70].mxu1 %v10027_v36  ;;  %v231_v36 = vld [vmem:[%s7334_s28 + $0xe8] sm:$0xff] }
  0xe1   : > { %1760 = vmatmul.mubr.f32.gmra.mrb[74].mxu0 %v10031_v29  ;;  %1960 = vmatprep.mubr.f32.mxu1 %v10028_v32 }
  0xe2   : > { %1765 = vmatprep.mubr.f32.mxu0 %v10032_v20 }
  0xe4   : > { %1962 = vmatmul.mubr.f32.gmra.mrb[72].mxu1 %v10029_v45  ;;  %v2298_v45 = vsub.f32 %v8123_v59, %v9738_v62 }
  0xe5   : > { %1767 = vmatmul.mubr.f32.gmra.mrb[76].mxu0 %v10033_v26  ;;  %1967 = vmatprep.mubr.f32.mxu1 %v10030_v25  ;;  %v8176_v25 = vsub.f32 %v310_v44, %v8147_v61 }
  0xe6   : > { %1772 = vmatprep.mubr.f32.mxu0 %v10034_v37 }
  0xe8   : > { %1969 = vmatmul.mubr.f32.gmra.mrb[74].mxu1 %v10031_v29 }
  0xe9   : > { %1774 = vmatmul.mubr.f32.gmra.mrb[78].mxu0 %v10035_v19  ;;  %1974 = vmatprep.mubr.f32.mxu1 %v10032_v20  ;;  %v8181_v20 = vand.u32 4294901760, %v316_v35 }
  0xea   : > { %1779 = vmatprep.mubr.f32.mxu0 %v7571_v41 }
  0xec   : > { %1976 = vmatmul.mubr.f32.gmra.mrb[76].mxu1 %v10033_v26  ;;  %v234_v26 = vld [vmem:[%s7334_s28 + $0x100] sm:$0xff] }
  0xed   : > { %1781 = vmatmul.mubr.f32.gmra.mrb[80].mxu0 %v10036_v17  ;;  %1981 = vmatprep.mubr.f32.mxu1 %v10034_v37  ;;  %v325_v53 = vsel %vm293_vm0, %v234_v26, 0 }
  0xee   : > { %1786 = vmatprep.mubr.f32.mxu0 %v10037_v18  ;;  %v8220_v43 = vand.u32 4294901760, %v325_v53 }
  0xf0   : > { %1983 = vmatmul.mubr.f32.gmra.mrb[78].mxu1 %v10035_v19  ;;  %10040 = vst [vmem:[#allocation22_spill] sm:$0xff] %v8220_v43 }
  0xf1   : > { %1788 = vmatmul.mubr.f32.gmra.mrb[82].mxu0 %v7607_v1  ;;  %1988 = vmatprep.mubr.f32.mxu1 %v7571_v41  ;;  %v298_v41 = vsel %vm293_vm0, %v207_v38, 0  ;;  %v2299_v38 = vand.u32 4294901760, %v2298_v45  ;;  %v246_v45 = vld [vmem:[%s7334_s28 + $0x160] sm:$0xff] }
  0xf2   : > { %1793 = vmatprep.mubr.f32.mxu0 %v7609_v21  ;;  %v8103_v51 = vand.u32 4294901760, %v298_v41 }
  0xf4   : > { %1990 = vmatmul.mubr.f32.gmra.mrb[80].mxu1 %v10036_v17  ;;  %v8129_v11 = vsub.f32 %v298_v41, %v8103_v51  ;;  %v237_v41 = vld [vmem:[%s7334_s28 + $0x118] sm:$0xff] }
  0xf5   : > { %1795 = vmatmul.mubr.f32.gmra.mrb[84].mxu0 %v7618_v46  ;;  %1995 = vmatprep.mubr.f32.mxu1 %v10037_v18 }
  0xf6   : > { %1800 = vmatprep.mubr.f32.mxu0 %v7634_v6  ;;  %v9737_v47 = vand.u32 4294901760, %v8129_v11 }
  0xf8   : > { %1997 = vmatmul.mubr.f32.gmra.mrb[82].mxu1 %v7607_v1  ;;  %v307_v1 = vsel %vm293_vm0, %v216_v60, 0  ;;  %v2126_v37 = vsub.f32 %v8129_v11, %v9737_v47  ;;  %v8204_v60 = vsub.f32 %v316_v35, %v8181_v20  ;;  %v331_v35 = vsel %vm293_vm0, %v240_v57, 0  ;;  %v249_v57 = vld [vmem:[%s7334_s28 + $0x178] sm:$0xff] }
  0xf9   : > { %1802 = vmatmul.mubr.f32.gmra.mrb[86].mxu0 %v7654_v16  ;;  %2002 = vmatprep.mubr.f32.mxu1 %v7609_v21  ;;  %v8118_v21 = vsub.f32 %v8006_v4, %v2051_v3  ;;  %v313_v4 = vsel %vm293_vm0, %v222_v10, 0  ;;  %v8138_v3 = vsub.f32 %v301_v55, %v8109_v2  ;;  %v9730_v55 = vand.u32 4294901760, %v8176_v25 }
  0xfa   : > { %1807 = vmatprep.mubr.f32.mxu0 %v7656_v33  ;;  %v8149_v50 = vand.u32 4294901760, %v313_v4  ;;  %v2127_v15 = vand.u32 4294901760, %v2126_v37 }
  0xfb   : > { %v9739_v23 = vand.u32 4294901760, %v8118_v21  ;;  %v9736_v24 = vand.u32 4294901760, %v8138_v3 }
  0xfc   : > { %2004 = vmatmul.mubr.f32.gmra.mrb[84].mxu1 %v7618_v46  ;;  %v8140_v46 = vand.u32 4294901760, %v307_v1  ;;  %v8179_v29 = vsub.f32 %v313_v4, %v8149_v50 }
  0xfd   : > { %1809 = vmatmul.mubr.f32.gmra.mrb[88].mxu0 %v7672_v13  ;;  %2009 = vmatprep.mubr.f32.mxu1 %v7634_v6  ;;  %v228_v6 = vld [vmem:[%s7334_s28 + $0xd0] sm:$0xff]  ;;  %v2291_v32 = vsub.f32 %v8118_v21, %v9739_v23  ;;  %v2136_v18 = vsub.f32 %v8138_v3, %v9736_v24 }
  0xfe   : > { %1814 = vmatprep.mubr.f32.mxu0 %v7685_v63  ;;  %v8164_v58 = vsub.f32 %v307_v1, %v8140_v46  ;;  %v9728_v9 = vand.u32 4294901760, %v8179_v29 }
  0xff   : > { %v2292_v34 = vand.u32 4294901760, %v2291_v32  ;;  %v2137_v44 = vand.u32 4294901760, %v2136_v18  ;;  %v9727_v32 = vand.u32 4294901760, %v8204_v60 }
 0x100   : > { %2011 = vmatmul.mubr.f32.gmra.mrb[86].mxu1 %v7654_v16  ;;  %v2116_v16 = vsub.f32 %v8107_v54, %v9740_v12  ;;  %v9732_v7 = vand.u32 4294901760, %v8164_v58 }
 0x101   : > { %1816 = vmatmul.mubr.f32.gmra.mrb[90].mxu0 %v7699_v8  ;;  %2016 = vmatprep.mubr.f32.mxu1 %v7656_v33  ;;  %v319_v33 = vsel %vm293_vm0, %v228_v6, 0  ;;  %v6362_v6 = vpack.c.bf16 %v2299_v38, %v2292_v34  ;;  %v8243_v34 = vsub.f32 %v325_v53, %v8220_v43  ;;  %v8245_v38 = vand.u32 4294901760, %v331_v35 }
 0x102   : > { %1821 = vmatprep.mubr.f32.mxu0 %v7701_v30  ;;  %v8190_v19 = vand.u32 4294901760, %v319_v33  ;;  %v2117_v17 = vand.u32 4294901760, %v2116_v16  ;;  %v2156_v4 = vsub.f32 %v8164_v58, %v9732_v7  ;;  %v243_v16 = vld [vmem:[%s7334_s28 + $0x148] sm:$0xff]  ;;  %s6904_s28 = scalar_lea.vmem %s9508_s20, 2048 }
 0x103   : > { %10042 = vst [vmem:[#allocation24_spill] sm:$0xff] %v8245_v38  ;;  %p6905_p11 = scmp.ne.s32.totalorder %s9508_s20, %s6904_s28  ;;  %p6912_p1 = scmp.lt.s32.totalorder %s6910_s5, %s6904_s28 }
 0x104   : > { %2018 = vmatmul.mubr.f32.gmra.mrb[88].mxu1 %v7672_v13  ;;  %v9735_v13 = vand.u32 4294901760, %v8155_v56  ;;  %10038 = vst [vmem:[#allocation11_spill] sm:$0xff] %v8190_v19  ;;  %v2157_v18 = vand.u32 4294901760, %v2156_v4 }
 0x105   : > { %1823 = vmatmul.mubr.f32.gmra.mrb[92].mxu0 %v7726_v48  ;;  %2023 = vmatprep.mubr.f32.mxu1 %v7685_v63  ;;  %v322_v63 = vsel %vm293_vm0, %v231_v36, 0  ;;  %v2176_v36 = vsub.f32 %v8179_v29, %v9728_v9  ;;  %p6906_p12 = pnand %p6905_p11, %p7034_p5  ;;  %p6913_p2 = por %p6912_p1, %p6911_p0 }
 0x106   : > { %1828 = vmatprep.mubr.f32.mxu0 %v7742_v22  ;;  %v2146_v10 = vsub.f32 %v8155_v56, %v9735_v13  ;;  %v8215_v1 = vand.u32 4294901760, %v322_v63 }
 0x107   : > { %p6907_p13 = pneg %p6906_p12 }
 0x108   : > { %2025 = vmatmul.mubr.f32.gmra.mrb[90].mxu1 %v7699_v8  ;;  %v8213_v8 = vsub.f32 %v319_v33, %v8190_v19  ;;  %10039 = vst [vmem:[#allocation12_spill] sm:$0xff] %v8215_v1  ;;  %v2166_v33 = vsub.f32 %v8176_v25, %v9730_v55  ;;  %v2147_v26 = vand.u32 4294901760, %v2146_v10 }
 0x109   : > { %1830 = vmatmul.mubr.f32.gmra.mrb[94].mxu0 %v7764_v39  ;;  %2030 = vmatprep.mubr.f32.mxu1 %v7701_v30  ;;  %v328_v30 = vsel %vm293_vm0, %v237_v41, 0  ;;  %v334_v41 = vsel %vm293_vm0, %v243_v16, 0  ;;  %v8265_v16 = vsub.f32 %v331_v35, %v8245_v38  ;;  %p6914_p3 = pnand %p6913_p2, %p6907_p13 }
 0x10a   : > { %5638 = vmatprep.mubr.f32.mxu0 %v2117_v17  ;;  %v9724_v37 = vand.u32 4294901760, %v8213_v8  ;;  %v8239_v17 = vand.u32 4294901760, %v328_v30  ;;  %v8261_v4 = vand.u32 4294901760, %v334_v41 }
 0x10c   : > { %2032 = vmatmul.mubr.f32.gmra.mrb[92].mxu1 %v7726_v48  ;;  %v8237_v48 = vsub.f32 %v322_v63, %v8215_v1  ;;  %10041 = vst [vmem:[#allocation23_spill] sm:$0xff] %v8239_v17  ;;  %v2167_v63 = vand.u32 4294901760, %v2166_v33  ;;  %v2196_v53 = vsub.f32 %v8213_v8, %v9724_v37  ;;  %10043 = vst [vmem:[#allocation25_spill] sm:$0xff] %v8261_v4 }
 0x10d   : > { %5639 = vmatmul.mubr.f32.vlgmr.msra.gmra.mrb[96].mxu0 %v2127_v15  ;;  %2037 = vmatprep.mubr.f32.mxu1 %v7742_v22  ;;  %v337_v22 = vsel %vm293_vm0, %v246_v45, 0  ;;  %v2177_v15 = vand.u32 4294901760, %v2176_v36  ;;  %v340_v36 = vsel %vm293_vm0, %v249_v57, 0 }
 0x10e   : > { %6361 = vmatpush3.bf16.msra.mxu0 %v8045_v0  ;;  %5641 = vmatprep.mubr.f32.mxu0 %v2137_v44  ;;  %v2186_v0 = vsub.f32 %v8204_v60, %v9727_v32  ;;  %v9723_v10 = vand.u32 4294901760, %v8237_v48  ;;  %v8259_v44 = vsub.f32 %v328_v30, %v8239_v17  ;;  %v8267_v33 = vand.u32 4294901760, %v337_v22 }
 0x10f   : > { %6363 = vmatprep.subr.bf16.mxu0 %v6362_v6  ;;  %v2197_v35 = vand.u32 4294901760, %v2196_v53 }
 0x110   : > { %2039 = vmatmul.mubr.f32.gmra.mrb[94].mxu1 %v7764_v39  ;;  %v9725_v39 = vand.u32 4294901760, %v8243_v34  ;;  %10044 = vst [vmem:[#allocation26_spill] sm:$0xff] %v8267_v33  ;;  %v2187_v45 = vand.u32 4294901760, %v2186_v0  ;;  %v2206_v30 = vsub.f32 %v8237_v48, %v9723_v10  ;;  %v9729_v0 = vand.u32 4294901760, %v8265_v16 }
 0x111   : > { %5642 = vmatmul.mubr.f32.gmra.mrb[98].mxu0 %v2147_v26  ;;  %v9726_v26 = vand.u32 4294901760, %v8259_v44 }
 0x112   : > { %5644 = vmatprep.mubr.f32.mxu0 %v2157_v18  ;;  %6365 = vmatpush3.bf16.msra.mxu0 %v6362_v6  ;;  %v8276_v6 = vsub.f32 %v334_v41, %v8261_v4  ;;  %v8278_v18 = vand.u32 4294901760, %v340_v36  ;;  %v2216_v57 = vsub.f32 %v8243_v34, %v9725_v39  ;;  %v2207_v10 = vand.u32 4294901760, %v2206_v30 }
 0x113   : > { %6367 = vmatprep.subr.bf16.mxu0 %v7968_v42  ;;  %v2226_v41 = vsub.f32 %v8259_v44, %v9726_v26  ;;  %v2236_v39 = vsub.f32 %v8265_v16, %v9729_v0 }
 0x114   : > { %10045 = vst [vmem:[#allocation27_spill] sm:$0xff] %v8278_v18  ;;  %v9731_v37 = vand.u32 4294901760, %v8276_v6  ;;  %v2217_v53 = vand.u32 4294901760, %v2216_v57 }
 0x115   : > { %5645 = vmatmul.mubr.f32.gmra.mrb[100].mxu0 %v2167_v63  ;;  %v8285_v63 = vsub.f32 %v337_v22, %v8267_v33  ;;  %v2227_v30 = vand.u32 4294901760, %v2226_v41  ;;  %v2237_v9 = vand.u32 4294901760, %v2236_v39  ;;  %v8311_v39 = vld [vmem:[%s9558_s2] ss:$0 sm:$0xff] }
 0x116   : > { %5647 = vmatprep.mubr.f32.mxu0 %v2177_v15  ;;  %v8292_v15 = vsub.f32 %v340_v36, %v8278_v18  ;;  %v2246_v26 = vsub.f32 %v8276_v6, %v9731_v37 }
 0x117   : > { %v9733_v22 = vand.u32 4294901760, %v8285_v63 }
 0x118   : > { %v9734_v32 = vand.u32 4294901760, %v8292_v15  ;;  %v2247_v0 = vand.u32 4294901760, %v2246_v26 }
 0x119   : > { %5648 = vmatmul.mubr.f32.gmra.mrb[102].mxu0 %v2187_v45 }
 0x11a   : > { %5650 = vmatprep.mubr.f32.mxu0 %v2197_v35  ;;  %v2256_v35 = vsub.f32 %v8285_v63, %v9733_v22 }
 0x11c   : > { %v4870_v45 = vpop.f32.mrb[0].mxu0  ;;  %v2257_v41 = vand.u32 4294901760, %v2256_v35 }
 0x11d   : > { %5651 = vmatmul.mubr.f32.gmra.mrb[104].mxu0 %v2207_v10  ;;  %v4871_v36 = vpop.f32.mrb[1].mxu0  ;;  %v2266_v10 = vsub.f32 %v8292_v15, %v9734_v32 }
 0x11e   : > { %5653 = vmatprep.mubr.f32.mxu0 %v2217_v53  ;;  %v4872_v57 = vadd.f32 %v4871_v36, %v4870_v45 }
 0x11f   : > { %v2267_v53 = vand.u32 4294901760, %v2266_v10 }
 0x120   : > { %v451_v22 = vadd.f32 %v4872_v57, %v8311_v39 }
 0x121   : > { %5654 = vmatmul.mubr.f32.gmra.mrb[106].mxu0 %v2227_v30 }
 0x122   : > { %5656 = vmatprep.mubr.f32.mxu0 %v2237_v9  ;;  %v4873_v55 = vpop.f32.mrb[2].mxu0 }
 0x123   : > { %v4874_v37 = vpop.f32.mrb[3].mxu0 }
 0x124   : > { %v4875_v7 = vadd.f32 %v4874_v37, %v4873_v55 }
 0x125   : > { %5657 = vmatmul.mubr.f32.gmra.mrb[108].mxu0 %v2247_v0  ;;  %v6370_v0 = vpack.c.bf16 %v8123_v59, %v8118_v21 }
 0x126   : > { %5659 = vmatprep.mubr.f32.mxu0 %v2257_v41  ;;  %v4950_v30 = vpop.f32.mrb[0].mxu1  ;;  %v466_v41 = vadd.f32 %v4875_v7, %v8311_v39 }
 0x127   : > { %v4876_v45 = vpop.f32.mrb[4].mxu0  ;;  %v4951_v36 = vpop.f32.mrb[1].mxu1 }
 0x128   : > { %v4877_v26 = vpop.f32.mrb[5].mxu0  ;;  %v4952_v9 = vadd.f32 %v4951_v36, %v4950_v30 }
 0x129   : > { %v4878_v32 = vadd.f32 %v4877_v26, %v4876_v45  ;;  %5660 = vmatmul.mubr.f32.gmra.mrb[110].mxu0 %v2267_v53 }
 0x12a   : > { %5670 = vmatprep.mubr.f32.mxu0 %v8094_v28  ;;  %v8315_v55 = vadd.f32 %v4952_v9, %v451_v22  ;;  %v4953_v37 = vpop.f32.mrb[2].mxu1 }
 0x12b   : > { %v4954_v10 = vpop.f32.mrb[3].mxu1  ;;  %v481_v26 = vadd.f32 %v4878_v32, %v8311_v39 }
 0x12c   : > { %v4879_v35 = vpop.f32.mrb[6].mxu0  ;;  %v4955_v24 = vadd.f32 %v4954_v10, %v4953_v37 }
 0x12d   : > { %v4880_v13 = vpop.f32.mrb[7].mxu0  ;;  %5671 = vmatmul.mubr.f32.vlgmr.msra.gmra.mrb[96].mxu0 %v8103_v51 }
 0x12e   : > { %v4881_v57 = vadd.f32 %v4880_v13, %v4879_v35  ;;  %6369 = vmatpush3.bf16.msra.mxu0 %v7968_v42  ;;  %5673 = vmatprep.mubr.f32.mxu0 %v8109_v2  ;;  %v8323_v53 = vadd.f32 %v4955_v24, %v466_v41 }
 0x12f   : > { %v4956_v22 = vpop.f32.mrb[4].mxu1  ;;  %6371 = vmatprep.subr.bf16.mxu0 %v6370_v0 }
 0x130   : > { %v4882_v45 = vpop.f32.mrb[8].mxu0  ;;  %v4957_v30 = vpop.f32.mrb[5].mxu1  ;;  %v496_v35 = vadd.f32 %v4881_v57, %v8311_v39 }
 0x131   : > { %v4883_v36 = vpop.f32.mrb[9].mxu0  ;;  %v4958_v9 = vadd.f32 %v4957_v30, %v4956_v22  ;;  %5674 = vmatmul.mubr.f32.gmra.mrb[98].mxu0 %v8131_v14 }
 0x132   : > { %v4884_v7 = vadd.f32 %v4883_v36, %v4882_v45  ;;  %5676 = vmatprep.mubr.f32.mxu0 %v8140_v46  ;;  %6373 = vmatpush3.bf16.msra.mxu0 %v6370_v0 }
 0x133   : > { %v8328_v13 = vadd.f32 %v4958_v9, %v481_v26  ;;  %v4959_v42 = vpop.f32.mrb[6].mxu1  ;;  %6375 = vmatprep.subr.bf16.mxu0 %v7939_v31 }
 0x134   : > { %v4885_v24 = vpop.f32.mrb[10].mxu0  ;;  %v4960_v37 = vpop.f32.mrb[7].mxu1  ;;  %v511_v26 = vadd.f32 %v4884_v7, %v8311_v39 }
 0x135   : > { %v4886_v10 = vpop.f32.mrb[11].mxu0  ;;  %v4961_v41 = vadd.f32 %v4960_v37, %v4959_v42  ;;  %5677 = vmatmul.mubr.f32.gmra.mrb[100].mxu0 %v8147_v61 }
 0x136   : > { %v4887_v32 = vadd.f32 %v4886_v10, %v4885_v24  ;;  %5679 = vmatprep.mubr.f32.mxu0 %v8149_v50 }
 0x137   : > { %v8334_v22 = vadd.f32 %v4961_v41, %v496_v35  ;;  %v4962_v45 = vpop.f32.mrb[8].mxu1 }
 0x138   : > { %v4888_v0 = vpop.f32.mrb[12].mxu0  ;;  %v4963_v30 = vpop.f32.mrb[9].mxu1  ;;  %v526_v35 = vadd.f32 %v4887_v32, %v8311_v39 }
 0x139   : > { %v4889_v36 = vpop.f32.mrb[13].mxu0  ;;  %v4964_v9 = vadd.f32 %v4963_v30, %v4962_v45  ;;  %5680 = vmatmul.mubr.f32.gmra.mrb[102].mxu0 %v8181_v20 }
 0x13a   : > { %v4890_v47 = vadd.f32 %v4889_v36, %v4888_v0  ;;  %5682 = vmatprep.mubr.f32.mxu0 %v8190_v19 }
 0x13b   : > { %v8339_v57 = vadd.f32 %v4964_v9, %v511_v26  ;;  %v4965_v42 = vpop.f32.mrb[10].mxu1 }
 0x13c   : > { %v4891_v24 = vpop.f32.mrb[14].mxu0  ;;  %v4966_v37 = vpop.f32.mrb[11].mxu1  ;;  %v541_v26 = vadd.f32 %v4890_v47, %v8311_v39 }
 0x13d   : > { %v4892_v10 = vpop.f32.mrb[15].mxu0  ;;  %v4967_v41 = vadd.f32 %v4966_v37, %v4965_v42  ;;  %5683 = vmatmul.mubr.f32.gmra.mrb[104].mxu0 %v8215_v1 }
 0x13e   : > { %v4893_v62 = vadd.f32 %v4892_v10, %v4891_v24  ;;  %5685 = vmatprep.mubr.f32.mxu0 %v8220_v43 }
 0x13f   : > { %v8344_v7 = vadd.f32 %v4967_v41, %v526_v35  ;;  %v4968_v45 = vpop.f32.mrb[12].mxu1 }
 0x140   : > { %v4894_v0 = vpop.f32.mrb[16].mxu0  ;;  %v4969_v30 = vpop.f32.mrb[13].mxu1  ;;  %v556_v35 = vadd.f32 %v4893_v62, %v8311_v39 }
 0x141   : > { %v4895_v36 = vpop.f32.mrb[17].mxu0  ;;  %v4970_v9 = vadd.f32 %v4969_v30, %v4968_v45  ;;  %5686 = vmatmul.mubr.f32.gmra.mrb[106].mxu0 %v8239_v17 }
 0x142   : > { %v4896_v23 = vadd.f32 %v4895_v36, %v4894_v0  ;;  %5688 = vmatprep.mubr.f32.mxu0 %v8245_v38 }
 0x143   : > { %v8349_v32 = vadd.f32 %v4970_v9, %v541_v26  ;;  %v4971_v42 = vpop.f32.mrb[14].mxu1 }
 0x144   : > { %v4897_v24 = vpop.f32.mrb[18].mxu0  ;;  %v4972_v37 = vpop.f32.mrb[15].mxu1  ;;  %v571_v26 = vadd.f32 %v4896_v23, %v8311_v39 }
 0x145   : > { %v4898_v10 = vpop.f32.mrb[19].mxu0  ;;  %v4973_v41 = vadd.f32 %v4972_v37, %v4971_v42  ;;  %5689 = vmatmul.mubr.f32.gmra.mrb[108].mxu0 %v8261_v4 }
 0x146   : > { %v4899_v12 = vadd.f32 %v4898_v10, %v4897_v24  ;;  %5691 = vmatprep.mubr.f32.mxu0 %v8267_v33 }
 0x147   : > { %v8354_v47 = vadd.f32 %v4973_v41, %v556_v35  ;;  %v4974_v45 = vpop.f32.mrb[16].mxu1 }
 0x148   : > { %v4900_v0 = vpop.f32.mrb[20].mxu0  ;;  %v4975_v30 = vpop.f32.mrb[17].mxu1  ;;  %v586_v35 = vadd.f32 %v4899_v12, %v8311_v39 }
 0x149   : > { %v4901_v36 = vpop.f32.mrb[21].mxu0  ;;  %v4976_v9 = vadd.f32 %v4975_v30, %v4974_v45  ;;  %5692 = vmatmul.mubr.f32.gmra.mrb[110].mxu0 %v8278_v18  ;;  %v10047_v30 = vand.u32 4294901760, %v7960_v49 }
 0x14a   : > { %v4902_v5 = vadd.f32 %v4901_v36, %v4900_v0  ;;  %5702 = vmatprep.mubr.f32.mxu0 %v8107_v54  ;;  %v10046_v0 = vand.u32 4294901760, %v7958_v27 }
 0x14b   : > { %v8359_v62 = vadd.f32 %v4976_v9, %v571_v26  ;;  %v4977_v42 = vpop.f32.mrb[18].mxu1 }
 0x14c   : > { %v4903_v24 = vpop.f32.mrb[22].mxu0  ;;  %v4978_v37 = vpop.f32.mrb[19].mxu1  ;;  %v8372_v26 = vpack.c.bf16 %v10047_v30, %v10046_v0  ;;  %v601_v9 = vadd.f32 %v4902_v5, %v8311_v39 }
 0x14d   : > { %v4904_v10 = vpop.f32.mrb[23].mxu0  ;;  %v4979_v41 = vadd.f32 %v4978_v37, %v4977_v42  ;;  %5703 = vmatmul.mubr.f32.vlgmr.msra.gmra.mrb[96].mxu0 %v8129_v11 }
 0x14e   : > { %v4905_v40 = vadd.f32 %v4904_v10, %v4903_v24  ;;  %6377 = vmatpush3.bf16.msra.mxu0 %v7939_v31  ;;  %5705 = vmatprep.mubr.f32.mxu0 %v8138_v3 }
 0x14f   : > { %v8365_v23 = vadd.f32 %v4979_v41, %v586_v35  ;;  %v4980_v45 = vpop.f32.mrb[20].mxu1  ;;  %6379 = vmatprep.subr.bf16.mxu0 %v8035_v52 }
 0x150   : > { %v4906_v12 = vpop.f32.mrb[24].mxu0  ;;  %v4981_v36 = vpop.f32.mrb[21].mxu1  ;;  %v616_v41 = vadd.f32 %v4905_v40, %v8311_v39 }
 0x151   : > { %v4907_v42 = vpop.f32.mrb[25].mxu0  ;;  %v4982_v24 = vadd.f32 %v4981_v36, %v4980_v45  ;;  %5706 = vmatmul.mubr.f32.gmra.mrb[98].mxu0 %v8155_v56 }
 0x152   : > { %v4908_v37 = vadd.f32 %v4907_v42, %v4906_v12  ;;  %5708 = vmatprep.mubr.f32.mxu0 %v8164_v58  ;;  %6381 = vmatpush3.bf16.msra.mxu0 %v8035_v52 }
 0x153   : > { %v8378_v35 = vadd.f32 %v4982_v24, %v601_v9  ;;  %v4983_v27 = vpop.f32.mrb[22].mxu1  ;;  %6383 = vmatprep.subr.bf16.mxu0 %v8372_v26 }
 0x154   : > { %v4909_v49 = vpop.f32.mrb[26].mxu0  ;;  %v4984_v10 = vpop.f32.mrb[23].mxu1  ;;  %v631_v42 = vadd.f32 %v4908_v37, %v8311_v39 }
 0x155   : > { %v4910_v0 = vpop.f32.mrb[27].mxu0  ;;  %v4985_v5 = vadd.f32 %v4984_v10, %v4983_v27  ;;  %5709 = vmatmul.mubr.f32.gmra.mrb[100].mxu0 %v8176_v25 }
 0x156   : > { %v4911_v45 = vadd.f32 %v4910_v0, %v4909_v49  ;;  %5711 = vmatprep.mubr.f32.mxu0 %v8179_v29 }
 0x157   : > { %v8384_v30 = vadd.f32 %v4985_v5, %v616_v41  ;;  %v4986_v12 = vpop.f32.mrb[24].mxu1 }
 0x158   : > { %v4912_v36 = vpop.f32.mrb[28].mxu0  ;;  %v4987_v9 = vpop.f32.mrb[25].mxu1  ;;  %v646_v41 = vadd.f32 %v4911_v45, %v8311_v39 }
 0x159   : > { %v4913_v24 = vpop.f32.mrb[29].mxu0  ;;  %v4988_v18 = vadd.f32 %v4987_v9, %v4986_v12  ;;  %5712 = vmatmul.mubr.f32.gmra.mrb[102].mxu0 %v8204_v60 }
 0x15a   : > { %v4914_v33 = vadd.f32 %v4913_v24, %v4912_v36  ;;  %5714 = vmatprep.mubr.f32.mxu0 %v8213_v8 }
 0x15b   : > { %v8389_v40 = vadd.f32 %v4988_v18, %v631_v42  ;;  %v4989_v27 = vpop.f32.mrb[26].mxu1 }
 0x15c   : > { %v4915_v49 = vpop.f32.mrb[30].mxu0  ;;  %v4990_v10 = vpop.f32.mrb[27].mxu1  ;;  %v661_v18 = vadd.f32 %v4914_v33, %v8311_v39  ;;  %v8407_v33 = vld [vmem:[%s9559_s3] sm:$0xff] }
 0x15d   : > { %v4916_v0 = vpop.f32.mrb[31].mxu0  ;;  %v4991_v5 = vadd.f32 %v4990_v10, %v4989_v27  ;;  %5715 = vmatmul.mubr.f32.gmra.mrb[104].mxu0 %v8237_v48 }
 0x15e   : > { %v4917_v4 = vadd.f32 %v4916_v0, %v4915_v49  ;;  %5717 = vmatprep.mubr.f32.mxu0 %v8243_v34 }
 0x15f   : > { %v8394_v37 = vadd.f32 %v4991_v5, %v646_v41  ;;  %v4992_v12 = vpop.f32.mrb[28].mxu1 }
 0x160   : > { %v5030_v36 = vpop.f32.mrb[32].mxu0  ;;  %v4993_v9 = vpop.f32.mrb[29].mxu1  ;;  %v676_v0 = vadd.f32 %v4917_v4, %v8311_v39  ;;  %v9759_v39 = vand.u32 4294901760, %v8407_v33 }
 0x161   : > { %v4994_v42 = vadd.f32 %v4993_v9, %v4992_v12  ;;  %v5031_v24 = vpop.f32.mrb[33].mxu0  ;;  %5718 = vmatmul.mubr.f32.gmra.mrb[106].mxu0 %v8259_v44  ;;  %v8412_v12 = vld [vmem:[%s9559_s3 + $0x8] sm:$0xff] }
 0x162   : > { %v5032_v38 = vadd.f32 %v5031_v24, %v5030_v36  ;;  %5720 = vmatprep.mubr.f32.mxu0 %v8265_v16  ;;  %10049 = vst [vmem:[#allocation5_spill] sm:$0xff] %v8412_v12  ;;  %v8425_v36 = vld [vmem:[%s9559_s3 + $0x18] sm:$0xff]  ;;  %v10052_v9 = vand.u32 4294901760, %v8412_v12 }
 0x163   : > { %v8399_v45 = vadd.f32 %v4994_v42, %v661_v18  ;;  %v4995_v27 = vpop.f32.mrb[30].mxu1  ;;  %10051 = vst [vmem:[#allocation31_spill] sm:$0xff] %v8425_v36  ;;  %v8431_v18 = vld [vmem:[%s9559_s3 + $0x20] sm:$0xff] }
 0x164   : > { %v1151_v49 = vadd.f32 %v5032_v38, %v8315_v55  ;;  %v5033_v10 = vpop.f32.mrb[34].mxu0  ;;  %v4996_v41 = vpop.f32.mrb[31].mxu1  ;;  %v8417_v38 = vld [vmem:[%s9559_s3 + $0x10] sm:$0xff]  ;;  %v8446_v43 = vpack.c.bf16 %v10052_v9, %v9759_v39  ;;  %v8465_v9 = vld [vmem:[%s9559_s3 + $0x38] sm:$0xff] }
 0x165   : > { %10048 = vst [vmem:[#allocation30_spill] sm:$0xff] %v8399_v45  ;;  %v4997_v5 = vadd.f32 %v4996_v41, %v4995_v27  ;;  %v5034_v17 = vpop.f32.mrb[35].mxu0  ;;  %5721 = vmatmul.mubr.f32.gmra.mrb[108].mxu0 %v8276_v6  ;;  %10050 = vst [vmem:[#allocation7_spill] sm:$0xff] %v8417_v38  ;;  %v9760_v27 = vand.u32 4294901760, %v8425_v36  ;;  %v10056_v45 = vand.u32 4294901760, %v8123_v59 }
 0x166   : > { %v5035_v4 = vadd.f32 %v5034_v17, %v5033_v10  ;;  %5723 = vmatprep.mubr.f32.mxu0 %v8285_v63  ;;  %v8436_v17 = vld [vmem:[%s9559_s3 + $0x28] sm:$0xff]  ;;  %6399 = vmatprep.subr.bf16.mxu1 %v8446_v43 }
 0x167   : > { %v8438_v42 = vadd.f32 %v4997_v5, %v676_v0  ;;  %v5110_v24 = vpop.f32.mrb[32].mxu1  ;;  %v10053_v5 = vand.u32 4294901760, %v8417_v38  ;;  %6401 = vmatpush3.bf16.msra.mxu1 %v8446_v43 }
 0x168   : > { %v1160_v10 = vadd.f32 %v5035_v4, %v8323_v53  ;;  %v5036_v41 = vpop.f32.mrb[36].mxu0  ;;  %v5111_v55 = vpop.f32.mrb[33].mxu1  ;;  %v8460_v4 = vld [vmem:[%s9559_s3 + $0x30] sm:$0xff] }
 0x169   : > { %v5037_v19 = vpop.f32.mrb[37].mxu0  ;;  %v5112_v0 = vadd.f32 %v5111_v55, %v5110_v24  ;;  %5724 = vmatmul.mubr.f32.gmra.mrb[110].mxu0 %v8292_v15  ;;  %v8455_v53 = vpack.c.bf16 %v9760_v27, %v10053_v5  ;;  %v10054_v55 = vand.u32 4294901760, %v8107_v54  ;;  %v10055_v27 = vand.u32 4294901760, %v8118_v21 }
 0x16a   : > { %v5038_v39 = vadd.f32 %v5037_v19, %v5036_v41  ;;  %v10057_v54 = vand.u32 4294901760, %v8431_v18  ;;  %v10058_v19 = vand.u32 4294901760, %v8436_v17  ;;  %v9768_v41 = vand.u32 4294901760, %v8460_v4 }
 0x16b   : > { %5734 = vmatprep.mubr.f32.mxu0 %v10054_v55  ;;  %v8470_v24 = vadd.f32 %v5112_v0, %v1151_v49  ;;  %v5113_v5 = vpop.f32.mrb[34].mxu1  ;;  %v6386_v1 = vpack.c.bf16 %v10056_v45, %v10055_v27  ;;  %6403 = vmatprep.subr.bf16.mxu1 %v8455_v53  ;;  %v9767_v21 = vand.u32 4294901760, %v8465_v9  ;;  %v10059_v27 = vand.u32 4294901760, %v8129_v11 }
 0x16c   : > { %v1169_v36 = vadd.f32 %v5038_v39, %v8328_v13  ;;  %v5039_v38 = vpop.f32.mrb[38].mxu0  ;;  %v5114_v12 = vpop.f32.mrb[35].mxu1  ;;  %v8483_v49 = vpack.c.bf16 %v10058_v19, %v10057_v54  ;;  %v8492_v13 = vld [vmem:[%s9559_s3 + $0x40] sm:$0xff]  ;;  %v8497_v39 = vld [vmem:[%s9559_s3 + $0x48] sm:$0xff]  ;;  %v10060_v55 = vand.u32 4294901760, %v8138_v3  ;;  %6405 = vmatpush3.bf16.msra.mxu1 %v8455_v53 }
 0x16d   : > { %v5040_v59 = vpop.f32.mrb[39].mxu0  ;;  %v5115_v45 = vadd.f32 %v5114_v12, %v5113_v5  ;;  %5735 = vmatmul.mubr.f32.vlgmr.msra.gmra.mrb[96].mxu0 %v10059_v27  ;;  %v9770_v3 = vand.u32 4294901760, %v8492_v13  ;;  %v8525_v27 = vld [vmem:[%s9559_s3 + $0x58] sm:$0xff] }
 0x16e   : > { %v5041_v0 = vadd.f32 %v5040_v59, %v5039_v38  ;;  %6385 = vmatpush3.bf16.msra.mxu0 %v8372_v26  ;;  %5737 = vmatprep.mubr.f32.mxu0 %v10060_v55  ;;  %v8511_v26 = vpack.c.bf16 %v9767_v21, %v9768_v41  ;;  %v9769_v38 = vand.u32 4294901760, %v8497_v39  ;;  %v10062_v55 = vand.u32 4294901760, %v8164_v58 }
 0x16f   : > { %v8502_v12 = vadd.f32 %v5115_v45, %v1160_v10  ;;  %v5116_v11 = vpop.f32.mrb[36].mxu1  ;;  %6387 = vmatprep.subr.bf16.mxu0 %v6386_v1  ;;  %6407 = vmatprep.subr.bf16.mxu1 %v8483_v49  ;;  %v10061_v45 = vand.u32 4294901760, %v8155_v56 }
 0x170   : > { %v1178_v5 = vadd.f32 %v5041_v0, %v8334_v22  ;;  %v5042_v54 = vpop.f32.mrb[40].mxu0  ;;  %v5117_v19 = vpop.f32.mrb[37].mxu1  ;;  %v8520_v22 = vld [vmem:[%s9559_s3 + $0x50] sm:$0xff]  ;;  %6409 = vmatpush3.bf16.msra.mxu1 %v8483_v49  ;;  %v8539_v58 = vpack.c.bf16 %v9769_v38, %v9770_v3 }
 0x171   : > { %v5043_v10 = vpop.f32.mrb[41].mxu0  ;;  %v5118_v59 = vadd.f32 %v5117_v19, %v5116_v11  ;;  %5738 = vmatmul.mubr.f32.gmra.mrb[98].mxu0 %v10061_v45  ;;  %6411 = vmatprep.subr.bf16.mxu1 %v8511_v26 }
 0x172   : > { %v5044_v0 = vadd.f32 %v5043_v10, %v5042_v54  ;;  %5740 = vmatprep.mubr.f32.mxu0 %v10062_v55  ;;  %6389 = vmatpush3.bf16.msra.mxu0 %v6386_v1  ;;  %10063 = vst [vmem:[#allocation34_spill] sm:$0xff] %v8539_v58 }
 0x173   : > { %v8529_v21 = vadd.f32 %v5118_v59, %v1169_v36  ;;  %v5119_v11 = vpop.f32.mrb[38].mxu1  ;;  %6391 = vmatprep.subr.bf16.mxu0 %v7939_v31  ;;  %v9782_v36 = vand.u32 4294901760, %v8525_v27  ;;  %v10064_v59 = vand.u32 4294901760, %v8176_v25 }
 0x174   : > { %v1187_v56 = vadd.f32 %v5044_v0, %v8339_v57  ;;  %v5045_v19 = vpop.f32.mrb[42].mxu0  ;;  %v5120_v45 = vpop.f32.mrb[39].mxu1  ;;  %v10065_v0 = vand.u32 4294901760, %v8179_v29  ;;  %6413 = vmatpush3.bf16.msra.mxu1 %v8511_v26 }
 0x175   : > { %v5046_v54 = vpop.f32.mrb[43].mxu0  ;;  %v5121_v10 = vadd.f32 %v5120_v45, %v5119_v11  ;;  %5741 = vmatmul.mubr.f32.gmra.mrb[100].mxu0 %v10064_v59  ;;  %6415 = vmatprep.subr.bf16.mxu1 %v8539_v58  ;;  %v10066_v11 = vand.u32 4294901760, %v8520_v22 }
 0x176   : > { %v5047_v57 = vadd.f32 %v5046_v54, %v5045_v19  ;;  %5743 = vmatprep.mubr.f32.mxu0 %v10065_v0  ;;  %v10069_v54 = vand.u32 4294901760, %v8213_v8  ;;  %v10071_v8 = vand.u32 4294901760, %v8243_v34 }
 0x177   : > { %v8547_v55 = vadd.f32 %v5121_v10, %v1178_v5  ;;  %v5122_v41 = vpop.f32.mrb[40].mxu1  ;;  %v8556_v25 = vpack.c.bf16 %v9782_v36, %v10066_v11  ;;  %v10068_v5 = vand.u32 4294901760, %v8204_v60  ;;  %v10070_v60 = vand.u32 4294901760, %v8237_v48 }
 0x178   : > { %v1196_v38 = vadd.f32 %v5047_v57, %v8344_v7  ;;  %v5048_v3 = vpop.f32.mrb[44].mxu0  ;;  %v5123_v1 = vpop.f32.mrb[41].mxu1  ;;  %6417 = vmatpush3.bf16.msra.mxu1 %v8539_v58 }
 0x179   : > { %10067 = vst [vmem:[#allocation10_spill] sm:$0xff] %v8556_v25  ;;  %v5049_v19 = vpop.f32.mrb[45].mxu0  ;;  %v5124_v29 = vadd.f32 %v5123_v1, %v5122_v41  ;;  %5744 = vmatmul.mubr.f32.gmra.mrb[102].mxu0 %v10068_v5  ;;  %6419 = vmatprep.subr.bf16.mxu1 %v8556_v25 }
 0x17a   : > { %v5050_v45 = vadd.f32 %v5049_v19, %v5048_v3  ;;  %5746 = vmatprep.mubr.f32.mxu0 %v10069_v54  ;;  %v10072_v54 = vand.u32 4294901760, %v8259_v44  ;;  %v10075_v44 = vand.u32 4294901760, %v8285_v63 }
 0x17b   : > { %v8562_v7 = vadd.f32 %v5124_v29, %v1187_v56  ;;  %v5125_v10 = vpop.f32.mrb[42].mxu1 }
 0x17c   : > { %v1205_v59 = vadd.f32 %v5050_v45, %v8349_v32  ;;  %v5051_v57 = vpop.f32.mrb[46].mxu0  ;;  %v5126_v0 = vpop.f32.mrb[43].mxu1  ;;  %6421 = vmatpush3.bf16.msra.mxu1 %v8556_v25 }
 0x17d   : > { %v5052_v11 = vpop.f32.mrb[47].mxu0  ;;  %v5127_v41 = vadd.f32 %v5126_v0, %v5125_v10  ;;  %5747 = vmatmul.mubr.f32.gmra.mrb[104].mxu0 %v10070_v60  ;;  %v10073_v10 = vand.u32 4294901760, %v8265_v16  ;;  %v10074_v60 = vand.u32 4294901760, %v8276_v6 }
 0x17e   : > { %v5053_v3 = vadd.f32 %v5052_v11, %v5051_v57  ;;  %5749 = vmatprep.mubr.f32.mxu0 %v10071_v8 }
 0x17f   : > { %v8571_v56 = vadd.f32 %v5127_v41, %v1196_v38  ;;  %v5128_v1 = vpop.f32.mrb[44].mxu1 }
 0x180   : > { %v1214_v32 = vadd.f32 %v5053_v3, %v8354_v47  ;;  %v5054_v19 = vpop.f32.mrb[48].mxu0  ;;  %v5129_v29 = vpop.f32.mrb[45].mxu1 }
 0x181   : > { %v5055_v5 = vpop.f32.mrb[49].mxu0  ;;  %v5130_v45 = vadd.f32 %v5129_v29, %v5128_v1  ;;  %5750 = vmatmul.mubr.f32.gmra.mrb[106].mxu0 %v10072_v54 }
 0x182   : > { %v5056_v48 = vadd.f32 %v5055_v5, %v5054_v19  ;;  %5752 = vmatprep.mubr.f32.mxu0 %v10073_v10  ;;  %v10076_v5 = vand.u32 4294901760, %v8292_v15 }
 0x183   : > { %v8579_v34 = vadd.f32 %v5130_v45, %v1205_v59  ;;  %v5131_v38 = vpop.f32.mrb[46].mxu1 }
 0x184   : > { %v1223_v57 = vadd.f32 %v5056_v48, %v8359_v62  ;;  %v5057_v0 = vpop.f32.mrb[50].mxu0  ;;  %v5132_v11 = vpop.f32.mrb[47].mxu1 }
 0x185   : > { %v5058_v41 = vpop.f32.mrb[51].mxu0  ;;  %v5133_v47 = vadd.f32 %v5132_v11, %v5131_v38  ;;  %5753 = vmatmul.mubr.f32.gmra.mrb[108].mxu0 %v10074_v60 }
 0x186   : > { %v5059_v3 = vadd.f32 %v5058_v41, %v5057_v0  ;;  %5755 = vmatprep.mubr.f32.mxu0 %v10075_v44 }
 0x187   : > { %v8586_v8 = vadd.f32 %v5133_v47, %v1214_v32  ;;  %v5134_v16 = vpop.f32.mrb[48].mxu1 }
 0x188   : > { %v1232_v59 = vadd.f32 %v5059_v3, %v8365_v23  ;;  %v5060_v1 = vpop.f32.mrb[52].mxu0  ;;  %v5135_v19 = vpop.f32.mrb[49].mxu1 }
 0x189   : > { %v5061_v29 = vpop.f32.mrb[53].mxu0  ;;  %v5136_v62 = vadd.f32 %v5135_v19, %v5134_v16  ;;  %5756 = vmatmul.mubr.f32.gmra.mrb[110].mxu0 %v10076_v5 }
 0x18a   : > { %v5062_v45 = vadd.f32 %v5061_v29, %v5060_v1  ;;  %5766 = vmatprep.mubr.f32.mxu0 %v8094_v28 }
 0x18b   : > { %v8592_v6 = vadd.f32 %v5136_v62, %v1223_v57  ;;  %v5137_v54 = vpop.f32.mrb[50].mxu1 }
 0x18c   : > { %v1241_v63 = vadd.f32 %v5062_v45, %v8378_v35  ;;  %v5063_v32 = vpop.f32.mrb[54].mxu0  ;;  %v5138_v48 = vpop.f32.mrb[51].mxu1 }
 0x18d   : > { %v5064_v10 = vpop.f32.mrb[55].mxu0  ;;  %v5139_v38 = vadd.f32 %v5138_v48, %v5137_v54  ;;  %5767 = vmatmul.mubr.f32.vlgmr.msra.gmra.mrb[96].mxu0 %v8103_v51 }
 0x18e   : > { %v5065_v23 = vadd.f32 %v5064_v10, %v5063_v32  ;;  %6393 = vmatpush3.bf16.msra.mxu0 %v7939_v31  ;;  %5769 = vmatprep.mubr.f32.mxu0 %v8109_v2  ;;  %v10077_v32 = vld [vmem:[#allocation11_spill] sm:$0xff] }
 0x18f   : > { %v8598_v15 = vadd.f32 %v5139_v38, %v1232_v59  ;;  %v5140_v0 = vpop.f32.mrb[52].mxu1  ;;  %6395 = vmatprep.subr.bf16.mxu0 %v8035_v52  ;;  %v10078_v38 = vld [vmem:[#allocation30_spill] sm:$0xff] }
 0x190   : > { %v1250_v57 = vadd.f32 %v5065_v23, %v8384_v30  ;;  %v5066_v11 = vpop.f32.mrb[56].mxu0  ;;  %v5141_v35 = vpop.f32.mrb[53].mxu1 }
 0x191   : > { %v5067_v41 = vpop.f32.mrb[57].mxu0  ;;  %v5142_v47 = vadd.f32 %v5141_v35, %v5140_v0  ;;  %5770 = vmatmul.mubr.f32.gmra.mrb[98].mxu0 %v8131_v14 }
 0x192   : > { %v5068_v60 = vadd.f32 %v5067_v41, %v5066_v11  ;;  %5772 = vmatprep.mubr.f32.mxu0 %v8140_v46  ;;  %6397 = vmatpush3.bf16.msra.mxu0 %v8035_v52  ;;  %v10079_v41 = vld [vmem:[#allocation12_spill] sm:$0xff] }
 0x193   : > { %v8605_v31 = vadd.f32 %v5142_v47, %v1241_v63  ;;  %v5143_v3 = vpop.f32.mrb[54].mxu1  ;;  %v10080_v47 = vld [vmem:[#allocation22_spill] sm:$0xff] }
 0x194   : > { %v1259_v44 = vadd.f32 %v5068_v60, %v8389_v40  ;;  %v5069_v16 = vpop.f32.mrb[58].mxu0  ;;  %v5144_v59 = vpop.f32.mrb[55].mxu1 }
 0x195   : > { %v5070_v1 = vpop.f32.mrb[59].mxu0  ;;  %v5145_v30 = vadd.f32 %v5144_v59, %v5143_v3  ;;  %5773 = vmatmul.mubr.f32.gmra.mrb[100].mxu0 %v8147_v61 }
 0x196   : > { %v5071_v19 = vadd.f32 %v5070_v1, %v5069_v16  ;;  %5775 = vmatprep.mubr.f32.mxu0 %v8149_v50 }
 0x197   : > { %v8610_v29 = vadd.f32 %v5145_v30, %v1250_v57  ;;  %v5146_v62 = vpop.f32.mrb[56].mxu1 }
 0x198   : > { %v1268_v5 = vadd.f32 %v5071_v19, %v8394_v37  ;;  %v5072_v52 = vpop.f32.mrb[60].mxu0  ;;  %v5147_v45 = vpop.f32.mrb[57].mxu1  ;;  %v10081_v19 = vld [vmem:[#allocation23_spill] sm:$0xff] }
 0x199   : > { %v5073_v54 = vpop.f32.mrb[61].mxu0  ;;  %v5148_v63 = vadd.f32 %v5147_v45, %v5146_v62  ;;  %5776 = vmatmul.mubr.f32.gmra.mrb[102].mxu0 %v8181_v20 }
 0x19a   : > { %v5074_v40 = vadd.f32 %v5073_v54, %v5072_v52  ;;  %5778 = vmatprep.mubr.f32.mxu0 %v10077_v32  ;;  %v10082_v52 = vld [vmem:[#allocation24_spill] sm:$0xff] }
 0x19b   : > { %v8615_v48 = vadd.f32 %v5148_v63, %v1259_v44  ;;  %v5149_v10 = vpop.f32.mrb[58].mxu1 }
 0x19c   : > { %v1277_v23 = vadd.f32 %v5074_v40, %v10078_v38  ;;  %v5075_v0 = vpop.f32.mrb[62].mxu0  ;;  %v5150_v57 = vpop.f32.mrb[59].mxu1 }
 0x19d   : > { %v5076_v11 = vpop.f32.mrb[63].mxu0  ;;  %v5151_v35 = vadd.f32 %v5150_v57, %v5149_v10  ;;  %5779 = vmatmul.mubr.f32.gmra.mrb[104].mxu0 %v10079_v41  ;;  %v10084_v57 = vld [vmem:[#allocation26_spill] sm:$0xff] }
 0x19e   : > { %v5077_v37 = vadd.f32 %v5076_v11, %v5075_v0  ;;  %5781 = vmatprep.mubr.f32.mxu0 %v10080_v47  ;;  %v10083_v0 = vld [vmem:[#allocation25_spill] sm:$0xff] }
 0x19f   : > { %v8620_v60 = vadd.f32 %v5151_v35, %v1268_v5  ;;  %v5152_v3 = vpop.f32.mrb[60].mxu1 }
 0x1a0   : > { %v1286_v16 = vadd.f32 %v5077_v37, %v8438_v42  ;;  %v5190_v59 = vpop.f32.mrb[64].mxu0  ;;  %v5153_v44 = vpop.f32.mrb[61].mxu1 }
 0x1a1   : > { %v5154_v1 = vadd.f32 %v5153_v44, %v5152_v3  ;;  %v5191_v30 = vpop.f32.mrb[65].mxu0  ;;  %5782 = vmatmul.mubr.f32.gmra.mrb[106].mxu0 %v10081_v19 }
 0x1a2   : > { %v5192_v62 = vadd.f32 %v5191_v30, %v5190_v59  ;;  %5784 = vmatprep.mubr.f32.mxu0 %v10082_v52 }
 0x1a3   : > { %v8625_v45 = vadd.f32 %v5154_v1, %v1277_v23  ;;  %v5155_v54 = vpop.f32.mrb[62].mxu1  ;;  %v10085_v1 = vld [vmem:[#allocation27_spill] sm:$0xff] }
 0x1a4   : > { %v1727_v63 = vadd.f32 %v5192_v62, %v8470_v24  ;;  %v5193_v40 = vpop.f32.mrb[66].mxu0  ;;  %v5156_v5 = vpop.f32.mrb[63].mxu1 }
 0x1a5   : > { %v5157_v10 = vadd.f32 %v5156_v5, %v5155_v54  ;;  %v5194_v38 = vpop.f32.mrb[67].mxu0  ;;  %5785 = vmatmul.mubr.f32.gmra.mrb[108].mxu0 %v10083_v0 }
 0x1a6   : > { %v5195_v42 = vadd.f32 %v5194_v38, %v5193_v40  ;;  %5787 = vmatprep.mubr.f32.mxu0 %v10084_v57 }
 0x1a7   : > { %v8630_v11 = vadd.f32 %v5157_v10, %v1286_v16  ;;  %v5270_v35 = vpop.f32.mrb[64].mxu1 }
 0x1a8   : > { %v1734_v37 = vadd.f32 %v5195_v42, %v8502_v12  ;;  %v5196_v3 = vpop.f32.mrb[68].mxu0  ;;  %v5271_v23 = vpop.f32.mrb[65].mxu1 }
 0x1a9   : > { %v5197_v59 = vpop.f32.mrb[69].mxu0  ;;  %v5272_v44 = vadd.f32 %v5271_v23, %v5270_v35  ;;  %5788 = vmatmul.mubr.f32.gmra.mrb[110].mxu0 %v10085_v1 }
 0x1aa   : > { %v5198_v24 = vadd.f32 %v5197_v59, %v5196_v3  ;;  %5798 = vmatprep.mubr.f32.mxu0 %v8094_v28 }
 0x1ab   : > { %v5273_v30 = vpop.f32.mrb[66].mxu1  ;;  %v8635_v62 = vadd.f32 %v5272_v44, %v1727_v63 }
 0x1ac   : > { %v1741_v54 = vadd.f32 %v5198_v24, %v8529_v21  ;;  %v5199_v40 = vpop.f32.mrb[70].mxu0  ;;  %v5274_v16 = vpop.f32.mrb[67].mxu1 }
 0x1ad   : > { %v5200_v5 = vpop.f32.mrb[71].mxu0  ;;  %v5275_v10 = vadd.f32 %v5274_v16, %v5273_v30  ;;  %5799 = vmatmul.mubr.f32.vlgmr.msra.gmra.mrb[96].mxu0 %v8103_v51 }
 0x1ae   : > { %v5201_v12 = vadd.f32 %v5200_v5, %v5199_v40  ;;  %5801 = vmatprep.mubr.f32.mxu0 %v8109_v2 }
 0x1af   : > { %v5276_v38 = vpop.f32.mrb[68].mxu1  ;;  %v8640_v42 = vadd.f32 %v5275_v10, %v1734_v37 }
 0x1b0   : > { %v1748_v35 = vadd.f32 %v5201_v12, %v8547_v55  ;;  %v5202_v28 = vpop.f32.mrb[72].mxu0  ;;  %v5277_v3 = vpop.f32.mrb[69].mxu1 }
 0x1b1   : > { %v5203_v63 = vpop.f32.mrb[73].mxu0  ;;  %v5278_v23 = vadd.f32 %v5277_v3, %v5276_v38  ;;  %5802 = vmatmul.mubr.f32.gmra.mrb[98].mxu0 %v8131_v14 }
 0x1b2   : > { %v5204_v21 = vadd.f32 %v5203_v63, %v5202_v28  ;;  %5804 = vmatprep.mubr.f32.mxu0 %v8140_v46 }
 0x1b3   : > { %v5279_v59 = vpop.f32.mrb[70].mxu1  ;;  %v8645_v44 = vadd.f32 %v5278_v23, %v1741_v54 }
 0x1b4   : > { %v1755_v51 = vadd.f32 %v5204_v21, %v8562_v7  ;;  %v5205_v2 = vpop.f32.mrb[74].mxu0  ;;  %v5280_v24 = vpop.f32.mrb[71].mxu1 }
 0x1b5   : > { %v5206_v37 = vpop.f32.mrb[75].mxu0  ;;  %v5281_v30 = vadd.f32 %v5280_v24, %v5279_v59  ;;  %5805 = vmatmul.mubr.f32.gmra.mrb[100].mxu0 %v8147_v61 }
 0x1b6   : > { %v5207_v55 = vadd.f32 %v5206_v37, %v5205_v2  ;;  %5807 = vmatprep.mubr.f32.mxu0 %v8149_v50 }
 0x1b7   : > { %v5282_v40 = vpop.f32.mrb[72].mxu1  ;;  %v8650_v16 = vadd.f32 %v5281_v30, %v1748_v35 }
 0x1b8   : > { %v1762_v14 = vadd.f32 %v5207_v55, %v8571_v56  ;;  %v5208_v46 = vpop.f32.mrb[76].mxu0  ;;  %v5283_v5 = vpop.f32.mrb[73].mxu1 }
 0x1b9   : > { %v5209_v54 = vpop.f32.mrb[77].mxu0  ;;  %v5284_v10 = vadd.f32 %v5283_v5, %v5282_v40  ;;  %5808 = vmatmul.mubr.f32.gmra.mrb[102].mxu0 %v8181_v20 }
 0x1ba   : > { %v5210_v7 = vadd.f32 %v5209_v54, %v5208_v46  ;;  %5810 = vmatprep.mubr.f32.mxu0 %v10077_v32 }
 0x1bb   : > { %v5285_v12 = vpop.f32.mrb[74].mxu1  ;;  %v8655_v38 = vadd.f32 %v5284_v10, %v1755_v51 }
 0x1bc   : > { %v1769_v61 = vadd.f32 %v5210_v7, %v8579_v34  ;;  %v5211_v50 = vpop.f32.mrb[78].mxu0  ;;  %v5286_v28 = vpop.f32.mrb[75].mxu1 }
 0x1bd   : > { %v5212_v35 = vpop.f32.mrb[79].mxu0  ;;  %v5287_v3 = vadd.f32 %v5286_v28, %v5285_v12  ;;  %5811 = vmatmul.mubr.f32.gmra.mrb[104].mxu0 %v10079_v41 }
 0x1be   : > { %v5213_v56 = vadd.f32 %v5212_v35, %v5211_v50  ;;  %5813 = vmatprep.mubr.f32.mxu0 %v10080_v47 }
 0x1bf   : > { %v5288_v63 = vpop.f32.mrb[76].mxu1  ;;  %v8660_v23 = vadd.f32 %v5287_v3, %v1762_v14 }
 0x1c0   : > { %v1776_v20 = vadd.f32 %v5213_v56, %v8586_v8  ;;  %v5214_v32 = vpop.f32.mrb[80].mxu0  ;;  %v5289_v21 = vpop.f32.mrb[77].mxu1 }
 0x1c1   : > { %v5215_v59 = vpop.f32.mrb[81].mxu0  ;;  %v5290_v51 = vadd.f32 %v5289_v21, %v5288_v63  ;;  %5814 = vmatmul.mubr.f32.gmra.mrb[106].mxu0 %v10081_v19 }
 0x1c2   : > { %v5216_v34 = vadd.f32 %v5215_v59, %v5214_v32  ;;  %5816 = vmatprep.mubr.f32.mxu0 %v10082_v52 }
 0x1c3   : > { %v5291_v2 = vpop.f32.mrb[78].mxu1  ;;  %v8665_v24 = vadd.f32 %v5290_v51, %v1769_v61 }
 0x1c4   : > { %v1783_v41 = vadd.f32 %v5216_v34, %v8592_v6  ;;  %v5217_v47 = vpop.f32.mrb[82].mxu0  ;;  %v5292_v37 = vpop.f32.mrb[79].mxu1 }
 0x1c5   : > { %v5218_v30 = vpop.f32.mrb[83].mxu0  ;;  %v5293_v55 = vadd.f32 %v5292_v37, %v5291_v2  ;;  %5817 = vmatmul.mubr.f32.gmra.mrb[108].mxu0 %v10083_v0 }
 0x1c6   : > { %v5219_v8 = vadd.f32 %v5218_v30, %v5217_v47  ;;  %5819 = vmatprep.mubr.f32.mxu0 %v10084_v57 }
 0x1c7   : > { %v5294_v40 = vpop.f32.mrb[80].mxu1  ;;  %v8670_v14 = vadd.f32 %v5293_v55, %v1776_v20 }
 0x1c8   : > { %v1790_v19 = vadd.f32 %v5219_v8, %v8598_v15  ;;  %v5220_v52 = vpop.f32.mrb[84].mxu0  ;;  %v5295_v46 = vpop.f32.mrb[81].mxu1 }
 0x1c9   : > { %v5221_v5 = vpop.f32.mrb[85].mxu0  ;;  %v5296_v54 = vadd.f32 %v5295_v46, %v5294_v40  ;;  %5820 = vmatmul.mubr.f32.gmra.mrb[110].mxu0 %v10085_v1 }
 0x1ca   : > { %v5222_v6 = vadd.f32 %v5221_v5, %v5220_v52 }
 0x1cb   : > { %v5297_v10 = vpop.f32.mrb[82].mxu1  ;;  %v8674_v7 = vadd.f32 %v5296_v54, %v1783_v41 }
 0x1cc   : > { %v1797_v0 = vadd.f32 %v5222_v6, %v8605_v31  ;;  %v5223_v12 = vpop.f32.mrb[86].mxu0  ;;  %v5298_v61 = vpop.f32.mrb[83].mxu1 }
 0x1cd   : > { %v5224_v57 = vpop.f32.mrb[87].mxu0  ;;  %v5299_v50 = vadd.f32 %v5298_v61, %v5297_v10 }
 0x1ce   : > { %v5225_v28 = vadd.f32 %v5224_v57, %v5223_v12 }
 0x1cf   : > { %v5300_v35 = vpop.f32.mrb[84].mxu1  ;;  %v8677_v3 = vadd.f32 %v5299_v50, %v1790_v19 }
 0x1d0   : > { %v1804_v15 = vadd.f32 %v5225_v28, %v8610_v29  ;;  %v5226_v56 = vpop.f32.mrb[88].mxu0  ;;  %v5301_v63 = vpop.f32.mrb[85].mxu1 }
 0x1d1   : > { %v5227_v20 = vpop.f32.mrb[89].mxu0  ;;  %v5302_v1 = vadd.f32 %v5301_v63, %v5300_v35 }
 0x1d2   : > { %v5228_v32 = vadd.f32 %v5227_v20, %v5226_v56 }
 0x1d3   : > { %v5303_v21 = vpop.f32.mrb[86].mxu1  ;;  %v8680_v59 = vadd.f32 %v5302_v1, %v1797_v0  ;;  %v3203_v1 = vld [vmem:[%s9559_s3 + $0x68] sm:$0xff] }
 0x1d4   : > { %v1811_v31 = vadd.f32 %v5228_v32, %v8615_v48  ;;  %v5229_v51 = vpop.f32.mrb[90].mxu0  ;;  %v5304_v34 = vpop.f32.mrb[87].mxu1 }
 0x1d5   : > { %v5230_v2 = vpop.f32.mrb[91].mxu0  ;;  %v5305_v41 = vadd.f32 %v5304_v34, %v5303_v21  ;;  %v3246_v21 = vand.u32 4294901760, %v3203_v1  ;;  %v10089_v34 = vld [vmem:[#allocation5_spill] sm:$0xff] }
 0x1d6   : > { %v5231_v47 = vadd.f32 %v5230_v2, %v5229_v51  ;;  %v10090_v2 = vand.u32 4294901760, %v10089_v34 }
 0x1d7   : > { %v5306_v37 = vpop.f32.mrb[88].mxu1  ;;  %v8683_v30 = vadd.f32 %v5305_v41, %v1804_v15 }
 0x1d8   : > { %v1818_v29 = vadd.f32 %v5231_v47, %v8620_v60  ;;  %v5232_v55 = vpop.f32.mrb[92].mxu0  ;;  %v5307_v8 = vpop.f32.mrb[89].mxu1  ;;  %v8712_v41 = vsub.f32 %v10089_v34, %v10090_v2  ;;  %v3204_v47 = vld [vmem:[%s9559_s3 + $0x70] sm:$0xff] }
 0x1d9   : > { %v5233_v40 = vpop.f32.mrb[93].mxu0  ;;  %v5308_v19 = vadd.f32 %v5307_v8, %v5306_v37  ;;  %v3205_v37 = vld [vmem:[%s9559_s3 + $0x78] sm:$0xff] }
 0x1da   : > { %v5234_v52 = vadd.f32 %v5233_v40, %v5232_v55  ;;  %10091 = vst [vmem:[#allocation38_spill] sm:$0xff] %v8712_v41  ;;  %v3252_v55 = vand.u32 4294901760, %v3205_v37  ;;  %v9779_v8 = vand.u32 4294901760, %v8712_v41 }
 0x1db   : > { %v5309_v46 = vpop.f32.mrb[90].mxu1  ;;  %v8686_v5 = vadd.f32 %v5308_v19, %v1811_v31  ;;  %v10087_v31 = vand.u32 4294901760, %v8407_v33 }
 0x1dc   : > { %v1825_v48 = vadd.f32 %v5234_v52, %v8625_v45  ;;  %v5235_v54 = vpop.f32.mrb[94].mxu0  ;;  %v5310_v6 = vpop.f32.mrb[91].mxu1  ;;  %v3202_v45 = vld [vmem:[%s9559_s3 + $0x60] sm:$0xff]  ;;  %v3458_v52 = vsub.f32 %v8712_v41, %v9779_v8 }
 0x1dd   : > { %v5236_v10 = vpop.f32.mrb[95].mxu0  ;;  %v5311_v0 = vadd.f32 %v5310_v6, %v5309_v46  ;;  %v3243_v32 = vand.u32 4294901760, %v3202_v45  ;;  %v8707_v51 = vsub.f32 %v8407_v33, %v10087_v31 }
 0x1de   : > { %v5237_v12 = vadd.f32 %v5236_v10, %v5235_v54  ;;  %v8739_v10 = vsub.f32 %v3203_v1, %v3246_v21 }
 0x1df   : > { %v5312_v61 = vpop.f32.mrb[92].mxu1  ;;  %v8689_v57 = vadd.f32 %v5311_v0, %v1818_v29  ;;  %10088 = vst [vmem:[#allocation35_spill] sm:$0xff] %v8707_v51  ;;  %v3249_v29 = vand.u32 4294901760, %v3204_v47  ;;  %v9781_v33 = vand.u32 4294901760, %v8707_v51  ;;  %v8737_v6 = vsub.f32 %v3202_v45, %v3243_v32 }
 0x1e0   : > { %v1832_v60 = vadd.f32 %v5237_v12, %v8630_v11  ;;  %v5313_v50 = vpop.f32.mrb[93].mxu1  ;;  %v8702_v11 = vpack.c.bf16 %v3246_v21, %v3243_v32  ;;  %10094 = vst [vmem:[#allocation39_spill] sm:$0xff] %v8739_v10  ;;  %v9773_v12 = vand.u32 4294901760, %v8739_v10 }
 0x1e1   : > { %v5314_v28 = vadd.f32 %v5313_v50, %v5312_v61  ;;  %v8724_v40 = vpack.c.bf16 %v3252_v55, %v3249_v29  ;;  %v3451_v19 = vsub.f32 %v8707_v51, %v9781_v33  ;;  %10093 = vst [vmem:[#allocation17_spill] sm:$0xff] %v8737_v6  ;;  %v9774_v0 = vand.u32 4294901760, %v8737_v6 }
 0x1e2   : > { %10086 = vst [vmem:[#allocation14_spill] sm:$0xff] %v8702_v11  ;;  %6423 = vmatprep.subr.bf16.mxu1 %v8702_v11  ;;  %v8749_v50 = vsub.f32 %v3204_v47, %v3249_v29  ;;  %v8767_v47 = vpack.c.bf16 %v8712_v41, %v8707_v51 }
 0x1e3   : > { %v5315_v35 = vpop.f32.mrb[94].mxu1  ;;  %v8692_v15 = vadd.f32 %v5314_v28, %v1825_v48  ;;  %6425 = vmatpush3.bf16.msra.mxu1 %v8702_v11  ;;  %10092 = vst [vmem:[#allocation16_spill] sm:$0xff] %v8724_v40  ;;  %v3452_v46 = vand.u32 4294901760, %v3451_v19  ;;  %v3459_v48 = vand.u32 4294901760, %v3458_v52  ;;  %v3535_v61 = vsub.f32 %v8737_v6, %v9774_v0 }
 0x1e4   : > { %v5316_v56 = vpop.f32.mrb[95].mxu1  ;;  %6427 = vmatprep.subr.bf16.mxu1 %v8724_v40  ;;  %10095 = vst [vmem:[#allocation43_spill] sm:$0xff] %v8749_v50  ;;  %v8751_v28 = vsub.f32 %v3205_v37, %v3252_v55  ;;  %v8771_v37 = vpack.c.bf16 %v8739_v10, %v8737_v6  ;;  %v10097_v55 = vld [vmem:[#allocation7_spill] sm:$0xff] }
 0x1e5   : > { %v5317_v63 = vadd.f32 %v5316_v56, %v5315_v35  ;;  %v8734_v54 = vpack.c.bf16 %v3459_v48, %v3452_v46  ;;  %v3536_v35 = vand.u32 4294901760, %v3535_v61  ;;  %v10098_v19 = vand.u32 4294901760, %v10097_v55  ;;  %v10099_v46 = vld [vmem:[#allocation31_spill] sm:$0xff] }
 0x1e6   : > { %10096 = vst [vmem:[#allocation6_spill] sm:$0xff] %v8751_v28  ;;  %v9771_v45 = vand.u32 4294901760, %v8751_v28  ;;  %v8775_v29 = vpack.c.bf16 %v8751_v28, %v8749_v50  ;;  %v10100_v48 = vand.u32 4294901760, %v10099_v46 }
 0x1e7   : > { %v8694_v20 = vadd.f32 %v5317_v63, %v1832_v60  ;;  %6429 = vmatpush3.bf16.msra.mxu1 %v8724_v40  ;;  %v3542_v60 = vsub.f32 %v8739_v10, %v9773_v12  ;;  %v9772_v63 = vand.u32 4294901760, %v8749_v50  ;;  %v8780_v52 = vsub.f32 %v10097_v55, %v10098_v19 }
 0x1e8   : > { %6431 = vmatprep.subr.bf16.mxu1 %v8734_v54  ;;  %v3556_v21 = vsub.f32 %v8751_v28, %v9771_v45  ;;  %v8785_v61 = vsub.f32 %v10099_v46, %v10100_v48 }
 0x1e9   : > { %v3543_v56 = vand.u32 4294901760, %v3542_v60  ;;  %v3549_v32 = vsub.f32 %v8749_v50, %v9772_v63  ;;  %v10101_v60 = vand.u32 4294901760, %v8431_v18  ;;  %v9778_v19 = vand.u32 4294901760, %v8780_v52 }
 0x1ea   : > { %v3557_v34 = vand.u32 4294901760, %v3556_v21  ;;  %v10103_v21 = vand.u32 4294901760, %v8460_v4 }
 0x1eb   : > { %v8755_v1 = vpack.c.bf16 %v3543_v56, %v3536_v35  ;;  %v3550_v31 = vand.u32 4294901760, %v3549_v32  ;;  %v8790_v35 = vsub.f32 %v8431_v18, %v10101_v60  ;;  %v10102_v56 = vand.u32 4294901760, %v8436_v17 }
 0x1ec   : > { %v9776_v18 = vand.u32 4294901760, %v8785_v61 }
 0x1ed   : > { %v8763_v2 = vpack.c.bf16 %v3557_v34, %v3550_v31  ;;  %v8795_v32 = vsub.f32 %v8436_v17, %v10102_v56  ;;  %v8800_v31 = vsub.f32 %v8460_v4, %v10103_v21  ;;  %v10104_v34 = vand.u32 4294901760, %v8465_v9 }
 0x1ee   : > { %v9775_v46 = vand.u32 4294901760, %v8790_v35  ;;  %v3465_v4 = vsub.f32 %v8780_v52, %v9778_v19 }
 0x1ef   : > { %v8805_v55 = vsub.f32 %v8465_v9, %v10104_v34  ;;  %v9777_v48 = vand.u32 4294901760, %v8795_v32  ;;  %v9780_v17 = vand.u32 4294901760, %v8800_v31  ;;  %v3472_v9 = vsub.f32 %v8785_v61, %v9776_v18 }
 0x1f0   : > { %v3479_v56 = vsub.f32 %v8790_v35, %v9775_v46  ;;  %v10105_v34 = vand.u32 4294901760, %v8492_v13  ;;  %v3466_v19 = vand.u32 4294901760, %v3465_v4 }
 0x1f1   : > { %v9783_v60 = vand.u32 4294901760, %v8805_v55  ;;  %v3486_v21 = vsub.f32 %v8795_v32, %v9777_v48  ;;  %v3493_v12 = vsub.f32 %v8800_v31, %v9780_v17  ;;  %v3473_v8 = vand.u32 4294901760, %v3472_v9 }
 0x1f2   : > { %v8828_v45 = vsub.f32 %v8492_v13, %v10105_v34  ;;  %v10108_v13 = vand.u32 4294901760, %v8497_v39  ;;  %v3480_v33 = vand.u32 4294901760, %v3479_v56 }
 0x1f3   : > { %v3500_v0 = vsub.f32 %v8805_v55, %v9783_v60  ;;  %v3487_v36 = vand.u32 4294901760, %v3486_v21  ;;  %v8862_v56 = vpack.c.bf16 %v3473_v8, %v3466_v19 }
 0x1f4   : > { %v8845_v34 = vsub.f32 %v8497_v39, %v10108_v13 }
 0x280   : > { %v5800_v63 = vpop.f32.mrb[96].mxu0 }
 0x281   : > { %v8837_v46 = vadd.f32 %v5800_v63, %v8640_v42  ;;  %v3080_v18 = vpop.f32.mrb[97].mxu0 }
 0x282   : > { %v8840_v48 = vadd.f32 %v3080_v18, %v8635_v62  ;;  %v3494_v62 = vand.u32 4294901760, %v3493_v12  ;;  %v3501_v18 = vand.u32 4294901760, %v3500_v0  ;;  %v8870_v12 = vpack.c.bf16 %v3487_v36, %v3480_v33 }
 0x283   : > { %10106 = vst [vmem:[#allocation8_spill] sm:$0xff] %v8837_v46  ;;  %v3175_v17 = vmul.f32 %v8837_v46, %v8837_v46 }
 0x284   : > { %10107 = vst [vmem:[#allocation45_spill] sm:$0xff] %v8840_v48  ;;  %v3174_v42 = vmul.f32 %v8840_v48, %v8840_v48  ;;  %v5803_v63 = vpop.f32.mrb[98].mxu0 }
 0x285   : > { %v8852_v4 = vand.u32 4294901760, %v3175_v17  ;;  %v8855_v9 = vadd.f32 %v5803_v63, %v8650_v16  ;;  %v3092_v39 = vpop.f32.mrb[99].mxu0  ;;  %v10111_v16 = vand.u32 4294901760, %v8828_v45 }
 0x286   : > { %v8857_v13 = vand.u32 4294901760, %v3174_v42  ;;  %v8860_v46 = vadd.f32 %v3092_v39, %v8645_v44  ;;  %v8882_v39 = vpack.c.bf16 %v3501_v18, %v3494_v62 }
 0x287   : > { %10109 = vst [vmem:[#allocation46_spill] sm:$0xff] %v8855_v9  ;;  %v8866_v60 = vsub.f32 %v3175_v17, %v8852_v4  ;;  %v3177_v0 = vmul.f32 %v8855_v9, %v8855_v9  ;;  %v8875_v63 = vsub.f32 %v8828_v45, %v10111_v16  ;;  %v10112_v17 = vand.u32 4294901760, %v8520_v22 }
 0x288   : > { %10110 = vst [vmem:[#allocation9_spill] sm:$0xff] %v8860_v46  ;;  %v8878_v44 = vsub.f32 %v3174_v42, %v8857_v13  ;;  %v3176_v8 = vmul.f32 %v8860_v46, %v8860_v46  ;;  %v5806_v19 = vpop.f32.mrb[100].mxu0  ;;  %v10114_v9 = vand.u32 4294901760, %v8525_v27 }
 0x289   : > { %v8887_v21 = vsub.f32 %v8520_v22, %v10112_v17  ;;  %v8890_v33 = vand.u32 4294901760, %v3177_v0  ;;  %v8893_v16 = vadd.f32 %v5806_v19, %v8660_v23  ;;  %v3104_v42 = vpop.f32.mrb[101].mxu0  ;;  %v10116_v17 = vand.u32 4294901760, %v8845_v34 }
 0x28a   : > { %v8898_v46 = vsub.f32 %v8525_v27, %v10114_v9  ;;  %v8900_v62 = vand.u32 4294901760, %v3176_v8  ;;  %v8903_v18 = vadd.f32 %v3104_v42, %v8655_v38  ;;  %v10117_v23 = vand.u32 4294901760, %v8866_v60 }
 0x28b   : > { %10113 = vst [vmem:[#allocation13_spill] sm:$0xff] %v8893_v16  ;;  %v3514_v36 = vsub.f32 %v8845_v34, %v10116_v17  ;;  %v8913_v48 = vsub.f32 %v3177_v0, %v8890_v33  ;;  %v3179_v27 = vmul.f32 %v8893_v16, %v8893_v16  ;;  %v3508_v9 = vand.u32 4294901760, %v8875_v63 }
 0x28c   : > { %10115 = vst [vmem:[#allocation47_spill] sm:$0xff] %v8903_v18  ;;  %v3300_v19 = vsub.f32 %v8866_v60, %v10117_v23  ;;  %v8919_v38 = vsub.f32 %v3176_v8, %v8900_v62  ;;  %v3178_v42 = vmul.f32 %v8903_v18, %v8903_v18  ;;  %v5809_v22 = vpop.f32.mrb[102].mxu0  ;;  %v10118_v17 = vand.u32 4294901760, %v8878_v44 }
 0x28d   : > { %v8927_v0 = vand.u32 4294901760, %v3179_v27  ;;  %v8930_v50 = vadd.f32 %v5809_v22, %v8670_v14  ;;  %v3116_v16 = vpop.f32.mrb[103].mxu0  ;;  %v9797_v63 = vand.u32 4294901760, %v8913_v48 }
 0x28e   : > { %v3290_v28 = vsub.f32 %v8878_v44, %v10118_v17  ;;  %v8934_v10 = vand.u32 4294901760, %v3178_v42  ;;  %v8937_v18 = vadd.f32 %v3116_v16, %v8665_v24  ;;  %v9801_v17 = vand.u32 4294901760, %v8919_v38 }
 0x28f   : > { %10119 = vst [vmem:[#allocation51_spill] sm:$0xff] %v8930_v50  ;;  %v3301_v41 = vand.u32 4294901760, %v3300_v19  ;;  %v8941_v23 = vsub.f32 %v3179_v27, %v8927_v0  ;;  %v3181_v14 = vmul.f32 %v8930_v50, %v8930_v50  ;;  %v3320_v22 = vsub.f32 %v8913_v48, %v9797_v63 }
 0x290   : > { %10120 = vst [vmem:[#allocation15_spill] sm:$0xff] %v8937_v18  ;;  %v3291_v6 = vand.u32 4294901760, %v3290_v28  ;;  %v8949_v8 = vsub.f32 %v3178_v42, %v8934_v10  ;;  %v3180_v24 = vmul.f32 %v8937_v18, %v8937_v18  ;;  %v5812_v28 = vpop.f32.mrb[104].mxu0  ;;  %v3310_v16 = vsub.f32 %v8919_v38, %v9801_v17 }
 0x291   : > { %v3515_v19 = vand.u32 4294901760, %v3514_v36  ;;  %v8956_v27 = vand.u32 4294901760, %v3181_v14  ;;  %v8959_v50 = vadd.f32 %v5812_v28, %v8677_v3  ;;  %v3128_v51 = vpop.f32.mrb[105].mxu0  ;;  %v9803_v42 = vand.u32 4294901760, %v8941_v23 }
 0x292   : > { %5854 = vmatprep.mubr.f32.mxu1 %v3291_v6  ;;  %v10122_v63 = vand.u32 4294901760, %v8887_v21  ;;  %v8967_v6 = vand.u32 4294901760, %v3180_v24  ;;  %v8970_v40 = vadd.f32 %v3128_v51, %v8674_v7  ;;  %v3311_v36 = vand.u32 4294901760, %v3310_v16 }
 0x293   : > { %10121 = vst [vmem:[#allocation18_spill] sm:$0xff] %v8959_v50  ;;  %5855 = vmatmul.mubr.f32.vlgmr.msra.gmra.mrb[96].mxu1 %v3301_v41  ;;  %v9809_v3 = vand.u32 4294901760, %v8949_v8  ;;  %v8975_v28 = vsub.f32 %v3181_v14, %v8956_v27  ;;  %v3183_v41 = vmul.f32 %v8959_v50, %v8959_v50  ;;  %v3321_v17 = vand.u32 4294901760, %v3320_v22 }
 0x294   : > { %v8965_v18 = vsub.f32 %v8887_v21, %v10122_v63  ;;  %10123 = vst [vmem:[#allocation53_spill] sm:$0xff] %v8970_v40  ;;  %6433 = vmatpush3.bf16.msra.mxu1 %v8734_v54  ;;  %v3340_v63 = vsub.f32 %v8941_v23, %v9803_v42  ;;  %v8984_v7 = vsub.f32 %v3180_v24, %v8967_v6  ;;  %v5815_v54 = vpop.f32.mrb[106].mxu0  ;;  %v10124_v22 = vand.u32 4294901760, %v8898_v46 }
 0x295   : > { %6435 = vmatprep.subr.bf16.mxu1 %v8862_v56  ;;  %v3182_v51 = vmul.f32 %v8970_v40, %v8970_v40  ;;  %5857 = vmatprep.mubr.f32.mxu1 %v3311_v36  ;;  %v3330_v14 = vsub.f32 %v8949_v8, %v9809_v3  ;;  %v8994_v50 = vand.u32 4294901760, %v3183_v41  ;;  %v8997_v42 = vadd.f32 %v5815_v54, %v8683_v30  ;;  %v3140_v24 = vpop.f32.mrb[107].mxu0 }
 0x296   : > { %v3528_v16 = vsub.f32 %v8898_v46, %v10124_v22  ;;  %v9812_v11 = vand.u32 4294901760, %v8975_v28  ;;  %v6446_v40 = vpack.c.bf16 %v3515_v19, %v3508_v9  ;;  %v9003_v36 = vadd.f32 %v3140_v24, %v8680_v59 }
 0x297   : > { %10125 = vst [vmem:[#allocation55_spill] sm:$0xff] %v8997_v42  ;;  %5858 = vmatmul.mubr.f32.gmra.mrb[98].mxu1 %v3321_v17  ;;  %v9000_v25 = vand.u32 4294901760, %v3182_v51  ;;  %v3331_v3 = vand.u32 4294901760, %v3330_v14  ;;  %v9814_v22 = vand.u32 4294901760, %v8984_v7  ;;  %v9008_v58 = vsub.f32 %v3183_v41, %v8994_v50 }
 0x298   : > { %10126 = vst [vmem:[#allocation19_spill] sm:$0xff] %v9003_v36  ;;  %6437 = vmatpush3.bf16.msra.mxu1 %v8862_v56  ;;  %v3185_v30 = vmul.f32 %v8997_v42, %v8997_v42  ;;  %v3341_v17 = vand.u32 4294901760, %v3340_v63  ;;  %v3360_v9 = vsub.f32 %v8975_v28, %v9812_v11  ;;  %v3184_v56 = vmul.f32 %v9003_v36, %v9003_v36  ;;  %v5818_v19 = vpop.f32.mrb[108].mxu0 }
 0x299   : > { %10127 = vst [vmem:[#allocation20_spill] sm:$0xff] %v9008_v58  ;;  %6439 = vmatprep.subr.bf16.mxu1 %v8870_v12  ;;  %v9017_v59 = vsub.f32 %v3182_v51, %v9000_v25  ;;  %5860 = vmatprep.mubr.f32.mxu1 %v3331_v3  ;;  %v3350_v41 = vsub.f32 %v8984_v7, %v9814_v22  ;;  %v3522_v63 = vand.u32 4294901760, %v8965_v18  ;;  %v3152_v24 = vpop.f32.mrb[109].mxu0  ;;  %v9816_v51 = vand.u32 4294901760, %v9008_v58 }
 0x29a   : > { %v9025_v54 = vand.u32 4294901760, %v3185_v30  ;;  %v9028_v14 = vadd.f32 %v5818_v19, %v8689_v57  ;;  %v3529_v11 = vand.u32 4294901760, %v3528_v16  ;;  %v9031_v42 = vand.u32 4294901760, %v3184_v56 }
 0x29b   : > { %5861 = vmatmul.mubr.f32.gmra.mrb[100].mxu1 %v3341_v17  ;;  %v9034_v3 = vadd.f32 %v3152_v24, %v8686_v5  ;;  %v3351_v22 = vand.u32 4294901760, %v3350_v41  ;;  %v9819_v18 = vand.u32 4294901760, %v9017_v59  ;;  %v3361_v17 = vand.u32 4294901760, %v3360_v9 }
 0x29c   : > { %10128 = vst [vmem:[#allocation56_spill] sm:$0xff] %v9028_v14  ;;  %6441 = vmatpush3.bf16.msra.mxu1 %v8870_v12  ;;  %v9039_v36 = vsub.f32 %v3185_v30, %v9025_v54  ;;  %v3187_v57 = vmul.f32 %v9028_v14, %v9028_v14  ;;  %v3380_v16 = vsub.f32 %v9008_v58, %v9816_v51  ;;  %v5821_v19 = vpop.f32.mrb[110].mxu0 }
 0x29d   : > { %10129 = vst [vmem:[#allocation57_spill] sm:$0xff] %v9034_v3  ;;  %6443 = vmatprep.subr.bf16.mxu1 %v8882_v39  ;;  %v9048_v5 = vsub.f32 %v3184_v56, %v9031_v42  ;;  %v3186_v12 = vmul.f32 %v9034_v3, %v9034_v3  ;;  %5863 = vmatprep.mubr.f32.mxu1 %v3351_v22  ;;  %v3164_v24 = vpop.f32.mrb[111].mxu0 }
 0x29e   : > { %v3370_v30 = vsub.f32 %v9017_v59, %v9819_v18  ;;  %v9055_v41 = vand.u32 4294901760, %v3187_v57  ;;  %v9058_v9 = vadd.f32 %v5821_v19, %v8694_v20  ;;  %v9822_v51 = vand.u32 4294901760, %v9039_v36 }
 0x29f   : > { %5864 = vmatmul.mubr.f32.gmra.mrb[102].mxu1 %v3361_v17  ;;  %v6450_v56 = vpack.c.bf16 %v3529_v11, %v3522_v63  ;;  %v9061_v14 = vand.u32 4294901760, %v3186_v12  ;;  %v9064_v3 = vadd.f32 %v3164_v24, %v8692_v15  ;;  %v9823_v18 = vand.u32 4294901760, %v9048_v5 }
 0x2a0   : > { %6445 = vmatpush3.bf16.msra.mxu1 %v8882_v39  ;;  %v3371_v22 = vand.u32 4294901760, %v3370_v30  ;;  %v9069_v58 = vsub.f32 %v3187_v57, %v9055_v41  ;;  %v3189_v20 = vmul.f32 %v9058_v9, %v9058_v9  ;;  %v3381_v17 = vand.u32 4294901760, %v3380_v16 }
 0x2a1   : > { %6447 = vmatprep.subr.bf16.mxu1 %v6446_v40  ;;  %v3400_v11 = vsub.f32 %v9039_v36, %v9822_v51  ;;  %v9077_v15 = vsub.f32 %v3186_v12, %v9061_v14  ;;  %v3188_v39 = vmul.f32 %v9064_v3, %v9064_v3  ;;  %v3390_v63 = vsub.f32 %v9048_v5, %v9823_v18 }
 0x2a2   : > { %5866 = vmatprep.mubr.f32.mxu1 %v3371_v22  ;;  %v9084_v57 = vand.u32 4294901760, %v3189_v20  ;;  %v3419_v16 = vand.u32 4294901760, %v9069_v58 }
 0x2a3   : > { %5867 = vmatmul.mubr.f32.gmra.mrb[104].mxu1 %v3381_v17  ;;  %v9087_v19 = vand.u32 4294901760, %v3188_v39  ;;  %v3391_v30 = vand.u32 4294901760, %v3390_v63  ;;  %v3409_v12 = vand.u32 4294901760, %v9077_v15  ;;  %v3401_v51 = vand.u32 4294901760, %v3400_v11 }
 0x2a4   : > { %6449 = vmatpush3.bf16.msra.mxu1 %v6446_v40  ;;  %v9091_v24 = vsub.f32 %v3189_v20, %v9084_v57  ;;  %v3420_v22 = vsub.f32 %v9069_v58, %v3419_v16 }
 0x2a5   : > { %6451 = vmatprep.subr.bf16.mxu1 %v6450_v56  ;;  %v9097_v18 = vsub.f32 %v3188_v39, %v9087_v19  ;;  %5869 = vmatprep.mubr.f32.mxu1 %v3391_v30  ;;  %v3410_v40 = vsub.f32 %v9077_v15, %v3409_v12 }
 0x2a6   : > { %v9824_v17 = vand.u32 4294901760, %v9091_v24  ;;  %v3421_v63 = vand.u32 4294901760, %v3420_v22  ;;  %v6466_v22 = vpack.c.bf16 %v8785_v61, %v8780_v52 }
 0x2a7   : > { %5870 = vmatmul.mubr.f32.gmra.mrb[106].mxu1 %v3401_v51  ;;  %v3411_v20 = vand.u32 4294901760, %v3410_v40  ;;  %v9825_v11 = vand.u32 4294901760, %v9097_v18  ;;  %v6482_v40 = vpack.c.bf16 %v8898_v46, %v8887_v21 }
 0x2a8   : > { %6453 = vmatpush3.bf16.msra.mxu1 %v6450_v56  ;;  %v3440_v39 = vsub.f32 %v9091_v24, %v9824_v17 }
 0x2a9   : > { %6455 = vmatprep.subr.bf16.mxu1 %v8755_v1  ;;  %5872 = vmatprep.mubr.f32.mxu1 %v3411_v20  ;;  %v3430_v30 = vsub.f32 %v9097_v18, %v9825_v11  ;;  %v10132_v20 = vld [vmem:[#allocation10_spill] sm:$0xff]  ;;  %v10142_v11 = vand.u32 4294901760, %v8866_v60 }
 0x2aa   : > { %v3441_v56 = vand.u32 4294901760, %v3440_v39  ;;  %v10134_v39 = vld [vmem:[#allocation16_spill] sm:$0xff] }
 0x2ab   : > { %5873 = vmatmul.mubr.f32.gmra.mrb[108].mxu1 %v3421_v63  ;;  %v3431_v51 = vand.u32 4294901760, %v3430_v30  ;;  %v10133_v63 = vld [vmem:[#allocation14_spill] sm:$0xff]  ;;  %v10135_v30 = vld [vmem:[#allocation35_spill] sm:$0xff] }
 0x2ac   : > { %6457 = vmatpush3.bf16.msra.mxu1 %v8755_v1  ;;  %v6470_v1 = vpack.c.bf16 %v8795_v32, %v8790_v35 }
 0x2ad   : > { %6459 = vmatprep.subr.bf16.mxu1 %v8763_v2  ;;  %5875 = vmatprep.mubr.f32.mxu1 %v3431_v51  ;;  %v10136_v51 = vand.u32 4294901760, %v10135_v30  ;;  %v10143_v30 = vand.u32 4294901760, %v8919_v38 }
 0x2af   : > { %5876 = vmatmul.mubr.f32.gmra.mrb[110].mxu1 %v3441_v56  ;;  %v10137_v56 = vld [vmem:[#allocation38_spill] sm:$0xff] }
 0x2b0   : > { %6461 = vmatpush3.bf16.msra.mxu1 %v8763_v2  ;;  %5910 = vmatprep.mubr.f32.mxu1 %v8857_v13  ;;  %v6474_v2 = vpack.c.bf16 %v8805_v55, %v8800_v31 }
 0x2b1   : > { %6463 = vmatprep.subr.bf16.mxu1 %v8767_v47 }
 0x2b3   : > { %5911 = vmatmul.mubr.f32.vlgmr.msra.gmra.mrb[96].mxu1 %v8852_v4 }
 0x2b4   : > { %5913 = vmatprep.mubr.f32.mxu1 %v8900_v62  ;;  %6465 = vmatpush3.bf16.msra.mxu1 %v8767_v47  ;;  %v6478_v47 = vpack.c.bf16 %v8845_v34, %v8828_v45 }
 0x2b5   : > { %6467 = vmatprep.subr.bf16.mxu1 %v6466_v22 }
 0x2b7   : > { %5914 = vmatmul.mubr.f32.gmra.mrb[98].mxu1 %v8890_v33 }
 0x2b8   : > { %5916 = vmatprep.mubr.f32.mxu1 %v8934_v10  ;;  %6469 = vmatpush3.bf16.msra.mxu1 %v6466_v22  ;;  %v10138_v22 = vand.u32 4294901760, %v10137_v56  ;;  %v10145_v56 = vand.u32 4294901760, %v8795_v32  ;;  %v10152_v32 = vand.u32 4294901760, %v8828_v45  ;;  %v10159_v45 = vand.u32 4294901760, %v9048_v5 }
 0x2b9   : > { %6471 = vmatprep.subr.bf16.mxu1 %v6470_v1 }
 0x2bb   : > { %5917 = vmatmul.mubr.f32.gmra.mrb[100].mxu1 %v8927_v0 }
 0x2bc   : > { %5919 = vmatprep.mubr.f32.mxu1 %v8967_v6  ;;  %6473 = vmatpush3.bf16.msra.mxu1 %v6470_v1  ;;  %v6526_v1 = vpack.c.bf16 %v10138_v22, %v10136_v51  ;;  %v10144_v51 = vand.u32 4294901760, %v8790_v35  ;;  %v10146_v22 = vand.u32 4294901760, %v8913_v48  ;;  %v10151_v35 = vand.u32 4294901760, %v8984_v7 }
 0x2bd   : > { %6475 = vmatprep.subr.bf16.mxu1 %v6474_v2 }
 0x2bf   : > { %5920 = vmatmul.mubr.f32.gmra.mrb[102].mxu1 %v8956_v27 }
 0x2c0   : > { %5922 = vmatprep.mubr.f32.mxu1 %v9000_v25  ;;  %6477 = vmatpush3.bf16.msra.mxu1 %v6474_v2  ;;  %v10139_v2 = vand.u32 4294901760, %v8878_v44 }
 0x2c1   : > { %6479 = vmatprep.subr.bf16.mxu1 %v6478_v47 }
 0x2c3   : > { %5923 = vmatmul.mubr.f32.gmra.mrb[104].mxu1 %v8994_v50 }
 0x2c4   : > { %5925 = vmatprep.mubr.f32.mxu1 %v9031_v42  ;;  %6481 = vmatpush3.bf16.msra.mxu1 %v6478_v47  ;;  %v10140_v47 = vand.u32 4294901760, %v8780_v52  ;;  %v10147_v52 = vand.u32 4294901760, %v8949_v8 }
 0x2c5   : > { %6483 = vmatprep.subr.bf16.mxu1 %v6482_v40 }
 0x2c7   : > { %5926 = vmatmul.mubr.f32.gmra.mrb[106].mxu1 %v9025_v54 }
 0x2c8   : > { %5928 = vmatprep.mubr.f32.mxu1 %v9061_v14  ;;  %6485 = vmatpush3.bf16.msra.mxu1 %v6482_v40  ;;  %v10141_v40 = vand.u32 4294901760, %v8785_v61  ;;  %v10148_v61 = vand.u32 4294901760, %v8800_v31  ;;  %v10155_v31 = vand.u32 4294901760, %v9017_v59 }
 0x2c9   : > { %6487 = vmatprep.subr.bf16.mxu1 %v8771_v37 }
 0x2ca   : > { %v6530_v17 = vpack.c.bf16 %v10141_v40, %v10140_v47  ;;  %v10164_v40 = vand.u32 4294901760, %v9039_v36 }
 0x2cb   : > { %5929 = vmatmul.mubr.f32.gmra.mrb[108].mxu1 %v9055_v41 }
 0x2cc   : > { %5931 = vmatprep.mubr.f32.mxu1 %v9087_v19  ;;  %6489 = vmatpush3.bf16.msra.mxu1 %v8771_v37  ;;  %v10130_v37 = vld [vmem:[#allocation34_spill] sm:$0xff] }
 0x2cd   : > { %6491 = vmatprep.subr.bf16.mxu1 %v8775_v29 }
 0x2cf   : > { %5932 = vmatmul.mubr.f32.gmra.mrb[110].mxu1 %v9084_v57 }
 0x2d0   : > { %6493 = vmatpush3.bf16.msra.mxu1 %v8775_v29  ;;  %5966 = vmatprep.mubr.f32.mxu1 %v8878_v44  ;;  %v10131_v29 = vld [vmem:[#allocation20_spill] sm:$0xff]  ;;  %v6534_v44 = vpack.c.bf16 %v10145_v56, %v10144_v51  ;;  %v10169_v51 = vand.u32 4294901760, %v9097_v18 }
 0x2d1   : > { %6495 = vmatprep.subr.bf16.mxu1 %v8446_v43 }
 0x2d3   : > { %5967 = vmatmul.mubr.f32.vlgmr.msra.gmra.mrb[96].mxu1 %v8866_v60  ;;  %v10149_v60 = vand.u32 4294901760, %v8805_v55  ;;  %v10156_v55 = vand.u32 4294901760, %v8887_v21 }
 0x2d4   : > { %5969 = vmatprep.mubr.f32.mxu1 %v8919_v38  ;;  %6497 = vmatpush3.bf16.msra.mxu1 %v8446_v43 }
 0x2d5   : > { %6499 = vmatprep.subr.bf16.mxu1 %v8455_v53  ;;  %v6538_v38 = vpack.c.bf16 %v10149_v60, %v10148_v61 }
 0x2d7   : > { %5970 = vmatmul.mubr.f32.gmra.mrb[98].mxu1 %v8913_v48  ;;  %v10153_v48 = vand.u32 4294901760, %v8845_v34  ;;  %v10160_v34 = vld [vmem:[#allocation17_spill] sm:$0xff] }
 0x2d8   : > { %5972 = vmatprep.mubr.f32.mxu1 %v8949_v8  ;;  %6501 = vmatpush3.bf16.msra.mxu1 %v8455_v53 }
 0x2d9   : > { %6503 = vmatprep.subr.bf16.mxu1 %v8483_v49  ;;  %v6542_v8 = vpack.c.bf16 %v10153_v48, %v10152_v32 }
 0x2db   : > { %5973 = vmatmul.mubr.f32.gmra.mrb[100].mxu1 %v8941_v23 }
 0x2dc   : > { %5975 = vmatprep.mubr.f32.mxu1 %v8984_v7  ;;  %6505 = vmatpush3.bf16.msra.mxu1 %v8483_v49 }
 0x2dd   : > { %6507 = vmatprep.subr.bf16.mxu1 %v8511_v26 }
 0x2df   : > { %5976 = vmatmul.mubr.f32.gmra.mrb[102].mxu1 %v8975_v28 }
 0x2e0   : > { %5978 = vmatprep.mubr.f32.mxu1 %v9017_v59  ;;  %6509 = vmatpush3.bf16.msra.mxu1 %v8511_v26 }
 0x2e1   : > { %6511 = vmatprep.subr.bf16.mxu1 %v10130_v37 }
 0x2e3   : > { %5979 = vmatmul.mubr.f32.gmra.mrb[104].mxu1 %v10131_v29 }
 0x2e4   : > { %5981 = vmatprep.mubr.f32.mxu1 %v9048_v5  ;;  %6513 = vmatpush3.bf16.msra.mxu1 %v10130_v37 }
 0x2e5   : > { %6515 = vmatprep.subr.bf16.mxu1 %v10132_v20 }
 0x2e7   : > { %5982 = vmatmul.mubr.f32.gmra.mrb[106].mxu1 %v9039_v36  ;;  %v10170_v36 = vand.u32 4294901760, %v9091_v24 }
 0x2e8   : > { %5984 = vmatprep.mubr.f32.mxu1 %v9077_v15  ;;  %6517 = vmatpush3.bf16.msra.mxu1 %v10132_v20 }
 0x2e9   : > { %6519 = vmatprep.subr.bf16.mxu1 %v10133_v63 }
 0x2eb   : > { %5985 = vmatmul.mubr.f32.gmra.mrb[108].mxu1 %v9069_v58 }
 0x2ec   : > { %5987 = vmatprep.mubr.f32.mxu1 %v9097_v18  ;;  %6521 = vmatpush3.bf16.msra.mxu1 %v10133_v63 }
 0x2ed   : > { %6523 = vmatprep.subr.bf16.mxu1 %v10134_v39 }
 0x2ef   : > { %5988 = vmatmul.mubr.f32.gmra.mrb[110].mxu1 %v9091_v24 }
 0x2f0   : > { %6525 = vmatpush3.bf16.msra.mxu1 %v10134_v39  ;;  %6022 = vmatprep.mubr.f32.mxu1 %v10139_v2  ;;  %v10162_v2 = vld [vmem:[#allocation39_spill] sm:$0xff] }
 0x2f1   : > { %6527 = vmatprep.subr.bf16.mxu1 %v6526_v1  ;;  %v10163_v59 = vand.u32 4294901760, %v10162_v2 }
 0x2f3   : > { %6023 = vmatmul.mubr.f32.vlgmr.msra.gmra.mrb[96].mxu1 %v10142_v11  ;;  %v10150_v11 = vand.u32 4294901760, %v8941_v23  ;;  %v10157_v23 = vand.u32 4294901760, %v8898_v46  ;;  %v10165_v46 = vld [vmem:[#allocation43_spill] sm:$0xff] }
 0x2f4   : > { %6025 = vmatprep.mubr.f32.mxu1 %v10143_v30  ;;  %6529 = vmatpush3.bf16.msra.mxu1 %v6526_v1  ;;  %v10158_v1 = vand.u32 4294901760, %v10131_v29  ;;  %v10166_v21 = vand.u32 4294901760, %v10165_v46  ;;  %v10167_v29 = vld [vmem:[#allocation6_spill] sm:$0xff] }
 0x2f5   : > { %6531 = vmatprep.subr.bf16.mxu1 %v6530_v17  ;;  %v6546_v7 = vpack.c.bf16 %v10157_v23, %v10156_v55  ;;  %v10168_v5 = vand.u32 4294901760, %v10167_v29 }
 0x2f7   : > { %6026 = vmatmul.mubr.f32.gmra.mrb[98].mxu1 %v10146_v22  ;;  %v6554_v30 = vpack.c.bf16 %v10168_v5, %v10166_v21 }
 0x2f8   : > { %6028 = vmatprep.mubr.f32.mxu1 %v10147_v52  ;;  %6533 = vmatpush3.bf16.msra.mxu1 %v6530_v17  ;;  %v10154_v17 = vand.u32 4294901760, %v8975_v28  ;;  %v10161_v28 = vand.u32 4294901760, %v10160_v34 }
 0x2f9   : > { %6535 = vmatprep.subr.bf16.mxu1 %v6534_v44 }
 0x2fa   : > { %v6550_v47 = vpack.c.bf16 %v10163_v59, %v10161_v28 }
 0x2fb   : > { %6029 = vmatmul.mubr.f32.gmra.mrb[100].mxu1 %v10150_v11 }
 0x2fc   : > { %6031 = vmatprep.mubr.f32.mxu1 %v10151_v35  ;;  %6537 = vmatpush3.bf16.msra.mxu1 %v6534_v44 }
 0x2fd   : > { %6539 = vmatprep.subr.bf16.mxu1 %v6538_v38 }
 0x2ff   : > { %6032 = vmatmul.mubr.f32.gmra.mrb[102].mxu1 %v10154_v17 }
 0x300   : > { %6034 = vmatprep.mubr.f32.mxu1 %v10155_v31  ;;  %6541 = vmatpush3.bf16.msra.mxu1 %v6538_v38 }
 0x301   : > { %6543 = vmatprep.subr.bf16.mxu1 %v6542_v8 }
 0x303   : > { %6035 = vmatmul.mubr.f32.gmra.mrb[104].mxu1 %v10158_v1 }
 0x304   : > { %6037 = vmatprep.mubr.f32.mxu1 %v10159_v45  ;;  %6545 = vmatpush3.bf16.msra.mxu1 %v6542_v8 }
 0x305   : > { %6547 = vmatprep.subr.bf16.mxu1 %v6546_v7 }
 0x307   : > { %6038 = vmatmul.mubr.f32.gmra.mrb[106].mxu1 %v10164_v40 }
 0x308   : > { %6040 = vmatprep.mubr.f32.mxu1 %v3409_v12  ;;  %6549 = vmatpush3.bf16.msra.mxu1 %v6546_v7 }
 0x309   : > { %6551 = vmatprep.subr.bf16.mxu1 %v6550_v47 }
 0x30b   : > { %6041 = vmatmul.mubr.f32.gmra.mrb[108].mxu1 %v3419_v16 }
 0x30c   : > { %6043 = vmatprep.mubr.f32.mxu1 %v10169_v51  ;;  %6553 = vmatpush3.bf16.msra.mxu1 %v6550_v47 }
 0x30d   : > { %6555 = vmatprep.subr.bf16.mxu1 %v6554_v30 }
 0x30f   : > { %6044 = vmatmul.mubr.f32.gmra.mrb[110].mxu1 %v10170_v36 }
 0x310   : > { %6557 = vmatpush3.bf16.msra.mxu1 %v6554_v30  ;;  %6078 = vmatprep.mubr.f32.mxu1 %v8857_v13 }
 0x311   : > { %6559 = vmatprep.subr.bf16.mxu1 %v8446_v43 }
 0x313   : > { %6079 = vmatmul.mubr.f32.vlgmr.msra.gmra.mrb[96].mxu1 %v8852_v4 }
 0x314   : > { %6081 = vmatprep.mubr.f32.mxu1 %v8900_v62  ;;  %6561 = vmatpush3.bf16.msra.mxu1 %v8446_v43 }
 0x315   : > { %6563 = vmatprep.subr.bf16.mxu1 %v8455_v53 }
 0x317   : > { %6082 = vmatmul.mubr.f32.gmra.mrb[98].mxu1 %v8890_v33 }
 0x318   : > { %6084 = vmatprep.mubr.f32.mxu1 %v8934_v10  ;;  %6565 = vmatpush3.bf16.msra.mxu1 %v8455_v53 }
 0x319   : > { %6567 = vmatprep.subr.bf16.mxu1 %v8483_v49 }
 0x31b   : > { %6085 = vmatmul.mubr.f32.gmra.mrb[100].mxu1 %v8927_v0 }
 0x31c   : > { %6087 = vmatprep.mubr.f32.mxu1 %v8967_v6  ;;  %6569 = vmatpush3.bf16.msra.mxu1 %v8483_v49 }
 0x31d   : > { %6571 = vmatprep.subr.bf16.mxu1 %v8511_v26 }
 0x31f   : > { %6088 = vmatmul.mubr.f32.gmra.mrb[102].mxu1 %v8956_v27 }
 0x320   : > { %6090 = vmatprep.mubr.f32.mxu1 %v9000_v25  ;;  %6573 = vmatpush3.bf16.msra.mxu1 %v8511_v26 }
 0x321   : > { %6575 = vmatprep.subr.bf16.mxu1 %v10130_v37 }
 0x323   : > { %6091 = vmatmul.mubr.f32.gmra.mrb[104].mxu1 %v8994_v50 }
 0x324   : > { %6093 = vmatprep.mubr.f32.mxu1 %v9031_v42  ;;  %6577 = vmatpush3.bf16.msra.mxu1 %v10130_v37 }
 0x325   : > { %6579 = vmatprep.subr.bf16.mxu1 %v10132_v20 }
 0x327   : > { %6094 = vmatmul.mubr.f32.gmra.mrb[106].mxu1 %v9025_v54 }
 0x328   : > { %6096 = vmatprep.mubr.f32.mxu1 %v9061_v14  ;;  %6581 = vmatpush3.bf16.msra.mxu1 %v10132_v20 }
 0x329   : > { %6583 = vmatprep.subr.bf16.mxu1 %v10133_v63 }
 0x32b   : > { %6097 = vmatmul.mubr.f32.gmra.mrb[108].mxu1 %v9055_v41 }
 0x32c   : > { %6099 = vmatprep.mubr.f32.mxu1 %v9087_v19  ;;  %6585 = vmatpush3.bf16.msra.mxu1 %v10133_v63 }
 0x32d   : > { %6587 = vmatprep.subr.bf16.mxu1 %v10134_v39 }
 0x32f   : > { %6100 = vmatmul.mubr.f32.gmra.mrb[110].mxu1 %v9084_v57 }
 0x330   : > { %6589 = vmatpush3.bf16.msra.mxu1 %v10134_v39  ;;  %6134 = vmatprep.mubr.f32.mxu1 %v8857_v13 }
 0x333   : > { %6135 = vmatmul.mubr.f32.vlgmr.msra.gmra.mrb[96].mxu1 %v8852_v4 }
 0x334   : > { %6137 = vmatprep.mubr.f32.mxu1 %v8900_v62 }
 0x337   : > { %6138 = vmatmul.mubr.f32.gmra.mrb[98].mxu1 %v8890_v33 }
 0x338   : > { %6140 = vmatprep.mubr.f32.mxu1 %v8934_v10 }
 0x33b   : > { %6141 = vmatmul.mubr.f32.gmra.mrb[100].mxu1 %v8927_v0 }
 0x33c   : > { %6143 = vmatprep.mubr.f32.mxu1 %v8967_v6 }
 0x33f   : > { %6144 = vmatmul.mubr.f32.gmra.mrb[102].mxu1 %v8956_v27 }
 0x340   : > { %6146 = vmatprep.mubr.f32.mxu1 %v9000_v25 }
 0x343   : > { %6147 = vmatmul.mubr.f32.gmra.mrb[104].mxu1 %v8994_v50 }
 0x344   : > { %6149 = vmatprep.mubr.f32.mxu1 %v9031_v42 }
 0x347   : > { %6150 = vmatmul.mubr.f32.gmra.mrb[106].mxu1 %v9025_v54 }
 0x348   : > { %6152 = vmatprep.mubr.f32.mxu1 %v9061_v14 }
 0x34b   : > { %6153 = vmatmul.mubr.f32.gmra.mrb[108].mxu1 %v9055_v41 }
 0x34c   : > { %6155 = vmatprep.mubr.f32.mxu1 %v9087_v19 }
 0x34f   : > { %6156 = vmatmul.mubr.f32.gmra.mrb[110].mxu1 %v9084_v57 }
 0x406   : > { %v6136_v43 = vpop.f32.mrb[96].mxu1 }
 0x407   : > { %6808 = vrsqrt.f32 %v6136_v43  ;;  %v4398_v53 = vpop.f32.mrb[97].mxu1  ;;  %v4669_v49 = vadd.f32 1e-20, %v6136_v43  ;;  %vm4501_vm1 = vcmp.eq.f32.partialorder %v6136_v43, inf  ;;  %vm4503_vm2 = vcmp.eq.f32.partialorder %v6136_v43, 0.0 }
 0x408   : > { %6810 = vrsqrt.f32 %v4398_v53  ;;  %v4668_v58 = vadd.f32 1e-20, %v4398_v53  ;;  %v4504_v4 = vand.u32 2147483648, %v6136_v43  ;;  %vm4494_vm3 = vcmp.eq.f32.partialorder %v4398_v53, inf }
 0x409   : > { %vm4496_vm4 = vcmp.eq.f32.partialorder %v4398_v53, 0.0  ;;  %v4497_v62 = vand.u32 2147483648, %v4398_v53 }
 0x40a   : > { %v9290_v26 = vpop.f32.mrb[98].mxu1 }
 0x40b   : > { %v9292_v25 = vpop.f32.mrb[99].mxu1  ;;  %6812 = vrsqrt.f32 %v9290_v26  ;;  %v4671_v10 = vadd.f32 1e-20, %v9290_v26  ;;  %vm4515_vm5 = vcmp.eq.f32.partialorder %v9290_v26, inf  ;;  %vm4517_vm6 = vcmp.eq.f32.partialorder %v9290_v26, 0.0 }
 0x40c   : > { %6814 = vrsqrt.f32 %v9292_v25  ;;  %v4670_v13 = vadd.f32 1e-20, %v9292_v25  ;;  %v4518_v27 = vand.u32 2147483648, %v9290_v26  ;;  %vm4508_vm7 = vcmp.eq.f32.partialorder %v9292_v25, inf }
 0x40d   : > { %6816 = vrsqrt.f32 %v4669_v49  ;;  %vm4510_vm8 = vcmp.eq.f32.partialorder %v9292_v25, 0.0  ;;  %v4511_v41 = vand.u32 2147483648, %v9292_v25 }
 0x40e   : > { %v9297_v50 = vpop.f32.mrb[100].mxu1  ;;  %6818 = vrsqrt.f32 %v4668_v58 }
 0x40f   : > { %v9300_v33 = vpop.f32.mrb[101].mxu1  ;;  %6820 = vrsqrt.f32 %v9297_v50  ;;  %v4673_v54 = vadd.f32 1e-20, %v9297_v50  ;;  %vm4529_vm9 = vcmp.eq.f32.partialorder %v9297_v50, inf  ;;  %v4532_v19 = vand.u32 2147483648, %v9297_v50 }
 0x410   : > { %6822 = vrsqrt.f32 %v9300_v33  ;;  %v4672_v15 = vadd.f32 1e-20, %v9300_v33  ;;  %vm4531_vm10 = vcmp.eq.f32.partialorder %v9297_v50, 0.0  ;;  %vm4522_vm11 = vcmp.eq.f32.partialorder %v9300_v33, inf }
 0x411   : > { %v6809_v0 = vpop.eup %6808  ;;  %6824 = vrsqrt.f32 %v4671_v10  ;;  %vm4524_vm12 = vcmp.eq.f32.partialorder %v9300_v33, 0.0  ;;  %v4525_v52 = vand.u32 2147483648, %v9300_v33 }
 0x412   : > { %v6811_v42 = vpop.eup %6810  ;;  %v4500_v6 = vmul.f32 %v6809_v0, %v6136_v43  ;;  %v9310_v14 = vpop.f32.mrb[102].mxu1  ;;  %6826 = vrsqrt.f32 %v4670_v13 }
 0x413   : > { %v4493_v18 = vmul.f32 %v6811_v42, %v4398_v53  ;;  %v9314_v57 = vpop.f32.mrb[103].mxu1  ;;  %6828 = vrsqrt.f32 %v9310_v14  ;;  %vm4543_vm13 = vcmp.eq.f32.partialorder %v9310_v14, inf  ;;  %vm4545_vm14 = vcmp.eq.f32.partialorder %v9310_v14, 0.0 }
 0x414   : > { %v4502_v16 = vsel %vm4501_vm1, %v6136_v43, %v4500_v6  ;;  %6830 = vrsqrt.f32 %v9314_v57  ;;  %v4675_v8 = vadd.f32 1e-20, %v9310_v14  ;;  %v4546_v23 = vand.u32 2147483648, %v9310_v14 }
 0x415   : > { %v4505_v12 = vsel %vm4503_vm2, %v4504_v4, %v4502_v16  ;;  %v4495_v24 = vsel %vm4494_vm3, %v4398_v53, %v4493_v18  ;;  %v6813_v37 = vpop.eup %6812  ;;  %6832 = vrsqrt.f32 %v4673_v54  ;;  %vm4536_vm15 = vcmp.eq.f32.partialorder %v9314_v57, inf }
 0x416   : > { %v4605_v20 = vsub.f32 0.0, %v4505_v12  ;;  %v4498_v63 = vsel %vm4496_vm4, %v4497_v62, %v4495_v24  ;;  %v9327_v39 = vpop.f32.mrb[104].mxu1  ;;  %v6815_v56 = vpop.eup %6814  ;;  %v4514_v22 = vmul.f32 %v6813_v37, %v9290_v26  ;;  %6834 = vrsqrt.f32 %v4672_v15 }
 0x417   : > { %v4604_v44 = vsub.f32 0.0, %v4498_v63  ;;  %v9331_v61 = vpop.f32.mrb[105].mxu1  ;;  %v9333_v60 = vpop.eup %6816  ;;  %v4507_v11 = vmul.f32 %v6815_v56, %v9292_v25  ;;  %6836 = vrsqrt.f32 %v9327_v39  ;;  %vm4538_vm0 = vcmp.eq.f32.partialorder %v9314_v57, 0.0 }
 0x418   : > { %v4622_v38 = vmul.f32 1.442695, %v4605_v20  ;;  %v9338_v35 = vpop.eup %6818  ;;  %v4516_v48 = vsel %vm4515_vm5, %v9290_v26, %v4514_v22  ;;  %v4674_v43 = vadd.f32 1e-20, %v9314_v57  ;;  %v4539_v62 = vand.u32 2147483648, %v9314_v57 }
 0x419   : > { %v4620_v32 = vmul.f32 1.442695, %v4604_v44  ;;  %v6821_v17 = vpop.eup %6820  ;;  %v4519_v31 = vsel %vm4517_vm6, %v4518_v27, %v4516_v48  ;;  %v4509_v55 = vsel %vm4508_vm7, %v9292_v25, %v4507_v11  ;;  %vm4557_vm1 = vcmp.eq.f32.partialorder %v9327_v39, inf }
 0x41a   : > { %6838 = vpow2.f32 %v4622_v38  ;;  %v9351_v7 = vpop.f32.mrb[106].mxu1  ;;  %v6823_v1 = vpop.eup %6822  ;;  %v4607_v45 = vsub.f32 0.0, %v4519_v31  ;;  %v4512_v34 = vsel %vm4510_vm8, %v4511_v41, %v4509_v55  ;;  %v4528_v28 = vmul.f32 %v6821_v17, %v9297_v50 }
 0x41b   : > { %6840 = vpow2.f32 %v4620_v32  ;;  %v9356_v2 = vpop.f32.mrb[107].mxu1  ;;  %v9358_v59 = vpop.eup %6824  ;;  %v4606_v47 = vsub.f32 0.0, %v4512_v34  ;;  %v4521_v40 = vmul.f32 %v6823_v1, %v9300_v33  ;;  %vm4559_vm2 = vcmp.eq.f32.partialorder %v9327_v39, 0.0 }
 0x41c   : > { %6842 = vrsqrt.f32 %v9331_v61  ;;  %v9363_v46 = vpop.eup %6826  ;;  %v4626_v21 = vmul.f32 1.442695, %v4607_v45  ;;  %v4530_v29 = vsel %vm4529_vm9, %v9297_v50, %v4528_v28  ;;  %v4560_v37 = vand.u32 2147483648, %v9327_v39 }
 0x41d   : > { %6844 = vrsqrt.f32 %v4675_v8  ;;  %v6829_v5 = vpop.eup %6828  ;;  %v4624_v30 = vmul.f32 1.442695, %v4606_v47  ;;  %v4533_v51 = vsel %vm4531_vm10, %v4532_v19, %v4530_v29  ;;  %v4523_v36 = vsel %vm4522_vm11, %v9300_v33, %v4521_v40 }
 0x41e   : > { %v9375_v53 = vpop.f32.mrb[108].mxu1  ;;  %v6831_v49 = vpop.eup %6830  ;;  %6846 = vpow2.f32 %v4626_v21  ;;  %v4609_v26 = vsub.f32 0.0, %v4533_v51  ;;  %v4526_v58 = vsel %vm4524_vm12, %v4525_v52, %v4523_v36  ;;  %v4542_v25 = vmul.f32 %v6829_v5, %v9310_v14 }
 0x41f   : > { %v9380_v10 = vpop.f32.mrb[109].mxu1  ;;  %v9382_v50 = vpop.eup %6832  ;;  %6848 = vpow2.f32 %v4624_v30  ;;  %v4608_v4 = vsub.f32 0.0, %v4526_v58  ;;  %v4535_v13 = vmul.f32 %v6831_v49, %v9314_v57  ;;  %v4677_v44 = vadd.f32 1e-20, %v9327_v39 }
 0x420   : > { %v9386_v0 = vpop.eup %6834  ;;  %v4630_v27 = vmul.f32 1.442695, %v4609_v26  ;;  %v4544_v33 = vsel %vm4543_vm13, %v9310_v14, %v4542_v25  ;;  %6850 = vrsqrt.f32 %v9351_v7  ;;  %vm4550_vm3 = vcmp.eq.f32.partialorder %v9331_v61, inf }
 0x421   : > { %v6837_v42 = vpop.eup %6836  ;;  %v4628_v6 = vmul.f32 1.442695, %v4608_v4  ;;  %v4547_v54 = vsel %vm4545_vm14, %v4546_v23, %v4544_v33  ;;  %v4537_v18 = vsel %vm4536_vm15, %v9314_v57, %v4535_v13  ;;  %6852 = vrsqrt.f32 %v4674_v43  ;;  %v10171_v23 = vld [vmem:[#allocation8_spill] sm:$0xff]  ;;  %v10173_v13 = vld [vmem:[#allocation46_spill] sm:$0xff] }
 0x422   : > { %v9399_v41 = vpop.f32.mrb[110].mxu1  ;;  %6854 = vpow2.f32 %v4630_v27  ;;  %v4611_v15 = vsub.f32 0.0, %v4547_v54  ;;  %v4540_v16 = vsel %vm4538_vm0, %v4539_v62, %v4537_v18  ;;  %v4556_v19 = vmul.f32 %v6837_v42, %v9327_v39  ;;  %v10174_v27 = vld [vmem:[#allocation9_spill] sm:$0xff] }
 0x423   : > { %v9404_v12 = vpop.f32.mrb[111].mxu1  ;;  %6856 = vpow2.f32 %v4628_v6  ;;  %v4610_v14 = vsub.f32 0.0, %v4540_v16  ;;  %vm4552_vm4 = vcmp.eq.f32.partialorder %v9331_v61, 0.0  ;;  %v4676_v36 = vadd.f32 1e-20, %v9331_v61 }
 0x424   : > { %v6839_v24 = vpop.eup %6838  ;;  %v4634_v56 = vmul.f32 1.442695, %v4611_v15  ;;  %v4558_v57 = vsel %vm4557_vm1, %v9327_v39, %v4556_v19  ;;  %v4553_v39 = vand.u32 2147483648, %v9331_v61  ;;  %vm4571_vm5 = vcmp.eq.f32.partialorder %v9351_v7, inf }
 0x425   : > { %v6841_v20 = vpop.eup %6840  ;;  %v4653_v63 = vsub.f32 1.0, %v6839_v24  ;;  %v4632_v38 = vmul.f32 1.442695, %v4610_v14  ;;  %v4561_v11 = vsel %vm4559_vm2, %v4560_v37, %v4558_v57  ;;  %v4574_v25 = vand.u32 2147483648, %v9351_v7  ;;  %v10175_v24 = vld [vmem:[#allocation13_spill] sm:$0xff] }
 0x426   : > { %v6843_v22 = vpop.eup %6842  ;;  %v4652_v52 = vsub.f32 1.0, %v6841_v20  ;;  %6858 = vpow2.f32 %v4634_v56  ;;  %v4613_v8 = vsub.f32 0.0, %v4561_v11  ;;  %vm4573_vm6 = vcmp.eq.f32.partialorder %v9351_v7, 0.0  ;;  %v10176_v56 = vld [vmem:[#allocation47_spill] sm:$0xff] }
 0x427   : > { %v9415_v32 = vpop.eup %6844  ;;  %v4701_v48 = vmul.f32 %v9333_v60, %v4653_v63  ;;  %v4549_v17 = vmul.f32 %v6843_v22, %v9331_v61  ;;  %6860 = vpow2.f32 %v4632_v38  ;;  %v10172_v60 = vld [vmem:[#allocation45_spill] sm:$0xff]  ;;  %v4679_v16 = vadd.f32 1e-20, %v9351_v7  ;;  %v10177_v11 = vld [vmem:[#allocation51_spill] sm:$0xff] }
 0x428   : > { %v4700_v31 = vmul.f32 %v9338_v35, %v4652_v52  ;;  %v6847_v55 = vpop.eup %6846  ;;  %v4638_v45 = vmul.f32 1.442695, %v4613_v8  ;;  %6862 = vrsqrt.f32 %v4677_v44  ;;  %vm4564_vm7 = vcmp.eq.f32.partialorder %v9356_v2, inf }
 0x429   : > { %v4717_v1 = vmul.f32 %v10171_v23, %v4701_v48  ;;  %v4551_v34 = vsel %vm4550_vm3, %v9331_v61, %v4549_v17  ;;  %v6849_v28 = vpop.eup %6848  ;;  %v4655_v40 = vsub.f32 1.0, %v6847_v55  ;;  %6864 = vrsqrt.f32 %v9356_v2 }
 0x42a   : > { %v4716_v47 = vmul.f32 %v10172_v60, %v4700_v31  ;;  %v4554_v21 = vsel %vm4552_vm4, %v4553_v39, %v4551_v34  ;;  %v6851_v35 = vpop.eup %6850  ;;  %v4654_v29 = vsub.f32 1.0, %v6849_v28  ;;  %6866 = vpow2.f32 %v4638_v45 }
 0x42b   : > { %4733 = vst [vmem:[%s9426_s11 + $0x8] sm:$0xff] %v4717_v1  ;;  %v4612_v5 = vsub.f32 0.0, %v4554_v21  ;;  %v6853_v30 = vpop.eup %6852  ;;  %v4703_v51 = vmul.f32 %v9358_v59, %v4655_v40  ;;  %v4570_v43 = vmul.f32 %v6851_v35, %v9351_v7  ;;  %6868 = vrsqrt.f32 %v9375_v53  ;;  %v10179_v40 = vld [vmem:[#allocation18_spill] sm:$0xff] }
 0x42c   : > { %4732 = vst [vmem:[%s9426_s11] sm:$0xff] %v4716_v47  ;;  %v6855_v49 = vpop.eup %6854  ;;  %v4702_v26 = vmul.f32 %v9363_v46, %v4654_v29  ;;  %vm4566_vm8 = vcmp.eq.f32.partialorder %v9356_v2, 0.0  ;;  %v4567_v17 = vand.u32 2147483648, %v9356_v2  ;;  %vm4585_vm9 = vcmp.eq.f32.partialorder %v9375_v53, inf }
 0x42d   : > { %v4636_v58 = vmul.f32 1.442695, %v4612_v5  ;;  %v6857_v4 = vpop.eup %6856  ;;  %v4719_v62 = vmul.f32 %v10173_v13, %v4703_v51  ;;  %v4657_v59 = vsub.f32 1.0, %v6855_v49  ;;  %v4572_v61 = vsel %vm4571_vm5, %v9351_v7, %v4570_v43  ;;  %v10180_v13 = vld [vmem:[#allocation53_spill] sm:$0xff] }
 0x42e   : > { %v4718_v33 = vmul.f32 %v10174_v27, %v4702_v26  ;;  %v4656_v42 = vsub.f32 1.0, %v6857_v4  ;;  %v4575_v6 = vsel %vm4573_vm6, %v4574_v25, %v4572_v61  ;;  %v4588_v45 = vand.u32 2147483648, %v9375_v53 }
 0x42f   : > { %6870 = vpow2.f32 %v4636_v58  ;;  %4735 = vst [vmem:[%s9426_s11 + $0x18] sm:$0xff] %v4719_v62  ;;  %v4705_v46 = vmul.f32 %v9382_v50, %v4657_v59  ;;  %v4615_v54 = vsub.f32 0.0, %v4575_v6  ;;  %vm4587_vm10 = vcmp.eq.f32.partialorder %v9375_v53, 0.0 }
 0x430   : > { %6872 = vrsqrt.f32 %v4676_v36  ;;  %v6859_v18 = vpop.eup %6858  ;;  %4734 = vst [vmem:[%s9426_s11 + $0x10] sm:$0xff] %v4718_v33  ;;  %v4704_v15 = vmul.f32 %v9386_v0, %v4656_v42  ;;  %v4678_v29 = vadd.f32 1e-20, %v9356_v2  ;;  %v4681_v49 = vadd.f32 1e-20, %v9375_v53 }
 0x431   : > { %6874 = vrsqrt.f32 %v9380_v10  ;;  %v6861_v19 = vpop.eup %6860  ;;  %v4721_v14 = vmul.f32 %v10175_v24, %v4705_v46  ;;  %v4659_v37 = vsub.f32 1.0, %v6859_v18  ;;  %v4642_v20 = vmul.f32 1.442695, %v4615_v54 }
 0x432   : > { %v6863_v63 = vpop.eup %6862  ;;  %v4720_v50 = vmul.f32 %v10176_v56, %v4704_v15  ;;  %v4658_v57 = vsub.f32 1.0, %v6861_v19  ;;  %vm4578_vm11 = vcmp.eq.f32.partialorder %v9380_v10, inf  ;;  %v4581_v25 = vand.u32 2147483648, %v9380_v10  ;;  %v10181_v19 = vld [vmem:[#allocation55_spill] sm:$0xff] }
 0x433   : > { %v6865_v44 = vpop.eup %6864  ;;  %4737 = vst [vmem:[%s9426_s11 + $0x28] sm:$0xff] %v4721_v14  ;;  %v4707_v22 = vmul.f32 %v9415_v32, %v4659_v37  ;;  %6876 = vpow2.f32 %v4642_v20  ;;  %v10178_v32 = vld [vmem:[#allocation15_spill] sm:$0xff]  ;;  %vm4580_vm12 = vcmp.eq.f32.partialorder %v9380_v10, 0.0  ;;  %v4680_v46 = vadd.f32 1e-20, %v9380_v10 }
 0x434   : > { %v6867_v7 = vpop.eup %6866  ;;  %4736 = vst [vmem:[%s9426_s11 + $0x20] sm:$0xff] %v4720_v50  ;;  %v4706_v0 = vmul.f32 %v6853_v30, %v4658_v57  ;;  %6878 = vrsqrt.f32 %v4679_v16  ;;  %v4563_v52 = vmul.f32 %v6865_v44, %v9356_v2  ;;  %vm4599_vm13 = vcmp.eq.f32.partialorder %v9399_v41, inf }
 0x435   : > { %v6869_v38 = vpop.eup %6868  ;;  %v4723_v48 = vmul.f32 %v10177_v11, %v4707_v22  ;;  %v4661_v8 = vsub.f32 1.0, %v6867_v7  ;;  %6880 = vrsqrt.f32 %v9399_v41  ;;  %vm4601_vm14 = vcmp.eq.f32.partialorder %v9399_v41, 0.0 }
 0x436   : > { %v4722_v31 = vmul.f32 %v10178_v32, %v4706_v0  ;;  %v4565_v39 = vsel %vm4564_vm7, %v9356_v2, %v4563_v52  ;;  %v4584_v55 = vmul.f32 %v6869_v38, %v9375_v53  ;;  %6882 = vrsqrt.f32 %v9404_v12  ;;  %v10182_v32 = vld [vmem:[#allocation19_spill] sm:$0xff] }
 0x437   : > { %4739 = vst [vmem:[%s9426_s11 + $0x38] sm:$0xff] %v4723_v48  ;;  %v4709_v23 = vmul.f32 %v6863_v63, %v4661_v8  ;;  %v4568_v1 = vsel %vm4566_vm8, %v4567_v17, %v4565_v39  ;;  %v4602_v15 = vand.u32 2147483648, %v9399_v41  ;;  %vm4592_vm15 = vcmp.eq.f32.partialorder %v9404_v12, inf }
 0x438   : > { %4738 = vst [vmem:[%s9426_s11 + $0x30] sm:$0xff] %v4722_v31  ;;  %v4614_v28 = vsub.f32 0.0, %v4568_v1  ;;  %v4586_v60 = vsel %vm4585_vm9, %v9375_v53, %v4584_v55  ;;  %v4595_v37 = vand.u32 2147483648, %v9404_v12  ;;  %vm4594_vm0 = vcmp.eq.f32.partialorder %v9404_v12, 0.0  ;;  %v10183_v55 = vld [vmem:[#allocation56_spill] sm:$0xff] }
 0x439   : > { %v6871_v34 = vpop.eup %6870  ;;  %v4725_v21 = vmul.f32 %v10179_v40, %v4709_v23  ;;  %v4589_v5 = vsel %vm4587_vm10, %v4588_v45, %v4586_v60  ;;  %v4683_v22 = vadd.f32 1e-20, %v9399_v41  ;;  %v4682_v38 = vadd.f32 1e-20, %v9404_v12 }
 0x43a   : > { %v6873_v47 = vpop.eup %6872  ;;  %v4660_v35 = vsub.f32 1.0, %v6871_v34  ;;  %v4640_v51 = vmul.f32 1.442695, %v4614_v28  ;;  %v4617_v36 = vsub.f32 0.0, %v4589_v5  ;;  %v10184_v28 = vld [vmem:[#allocation57_spill] sm:$0xff] }
 0x43b   : > { %v6875_v30 = vpop.eup %6874  ;;  %4741 = vst [vmem:[%s9426_s11 + $0x48] sm:$0xff] %v4725_v21 }
 0x43c   : > { %v4708_v43 = vmul.f32 %v6873_v47, %v4660_v35  ;;  %v4577_v26 = vmul.f32 %v6875_v30, %v9380_v10  ;;  %6884 = vpow2.f32 %v4640_v51  ;;  %v4646_v58 = vmul.f32 1.442695, %v4617_v36 }
 0x43d   : > { %v6877_v4 = vpop.eup %6876  ;;  %6886 = vrsqrt.f32 %v4678_v29 }
 0x43e   : > { %v4724_v2 = vmul.f32 %v10180_v13, %v4708_v43  ;;  %v4579_v62 = vsel %vm4578_vm11, %v9380_v10, %v4577_v26  ;;  %v6879_v59 = vpop.eup %6878  ;;  %v4663_v61 = vsub.f32 1.0, %v6877_v4  ;;  %6888 = vpow2.f32 %v4646_v58 }
 0x43f   : > { %v4582_v53 = vsel %vm4580_vm12, %v4581_v25, %v4579_v62  ;;  %v6881_v27 = vpop.eup %6880  ;;  %6890 = vrsqrt.f32 %v4681_v49 }
 0x440   : > { %4740 = vst [vmem:[%s9426_s11 + $0x40] sm:$0xff] %v4724_v2  ;;  %v4616_v33 = vsub.f32 0.0, %v4582_v53  ;;  %v6883_v42 = vpop.eup %6882  ;;  %v4711_v6 = vmul.f32 %v6879_v59, %v4663_v61  ;;  %v4598_v54 = vmul.f32 %v6881_v27, %v9399_v41 }
 0x441   : > { %v4591_v16 = vmul.f32 %v6883_v42, %v9404_v12 }
 0x442   : > { %v4644_v18 = vmul.f32 1.442695, %v4616_v33  ;;  %v4727_v24 = vmul.f32 %v10181_v19, %v4711_v6  ;;  %v4600_v14 = vsel %vm4599_vm13, %v9399_v41, %v4598_v54 }
 0x443   : > { %v4603_v10 = vsel %vm4601_vm14, %v4602_v15, %v4600_v14  ;;  %v4593_v20 = vsel %vm4592_vm15, %v9404_v12, %v4591_v16 }
 0x444   : > { %6892 = vpow2.f32 %v4644_v18  ;;  %4743 = vst [vmem:[%s9426_s11 + $0x58] sm:$0xff] %v4727_v24  ;;  %v4619_v63 = vsub.f32 0.0, %v4603_v10  ;;  %v4596_v56 = vsel %vm4594_vm0, %v4595_v37, %v4593_v20 }
 0x445   : > { %6894 = vrsqrt.f32 %v4680_v46  ;;  %v4618_v50 = vsub.f32 0.0, %v4596_v56 }
 0x446   : > { %v6885_v57 = vpop.eup %6884  ;;  %v4650_v44 = vmul.f32 1.442695, %v4619_v63 }
 0x447   : > { %v6887_v7 = vpop.eup %6886  ;;  %v4662_v0 = vsub.f32 1.0, %v6885_v57  ;;  %v4648_v52 = vmul.f32 1.442695, %v4618_v50 }
 0x448   : > { %v6889_v11 = vpop.eup %6888  ;;  %6896 = vpow2.f32 %v4650_v44 }
 0x449   : > { %v6891_v48 = vpop.eup %6890  ;;  %v4710_v8 = vmul.f32 %v6887_v7, %v4662_v0  ;;  %v4665_v17 = vsub.f32 1.0, %v6889_v11  ;;  %6898 = vpow2.f32 %v4648_v52 }
 0x44a   : > { %6900 = vrsqrt.f32 %v4683_v22 }
 0x44b   : > { %v4726_v31 = vmul.f32 %v10182_v32, %v4710_v8  ;;  %v4713_v39 = vmul.f32 %v6891_v48, %v4665_v17  ;;  %6902 = vrsqrt.f32 %v4682_v38 }
 0x44d   : > { %4742 = vst [vmem:[%s9426_s11 + $0x50] sm:$0xff] %v4726_v31  ;;  %v4729_v23 = vmul.f32 %v10183_v55, %v4713_v39 }
 0x44e   : > { %v6893_v41 = vpop.eup %6892 }
 0x44f   : > { %v4664_v12 = vsub.f32 1.0, %v6893_v41  ;;  %v6895_v1 = vpop.eup %6894  ;;  %4745 = vst [vmem:[%s9426_s11 + $0x68] sm:$0xff] %v4729_v23 }
 0x451   : > { %v4712_v45 = vmul.f32 %v6895_v1, %v4664_v12 }
 0x452   : > { %v6897_v34 = vpop.eup %6896 }
 0x453   : > { %v4728_v60 = vmul.f32 %v10184_v28, %v4712_v45  ;;  %v6899_v47 = vpop.eup %6898  ;;  %v4667_v40 = vsub.f32 1.0, %v6897_v34 }
 0x454   : > { %v6901_v21 = vpop.eup %6900  ;;  %v4666_v35 = vsub.f32 1.0, %v6899_v47 }
 0x455   : > { %4744 = vst [vmem:[%s9426_s11 + $0x60] sm:$0xff] %v4728_v60  ;;  %v6903_v29 = vpop.eup %6902  ;;  %v4715_v5 = vmul.f32 %v6901_v21, %v4667_v40 }
 0x456   : > { %v4714_v30 = vmul.f32 %v6903_v29, %v4666_v35 }
 0x457   : > { %v4731_v51 = vmul.f32 %v9058_v9, %v4715_v5 }
 0x458   : > { %v4730_v36 = vmul.f32 %v9064_v3, %v4714_v30 }
 0x459   : > { %4747 = vst [vmem:[%s9426_s11 + $0x78] sm:$0xff] %v4731_v51 }
 0x45a   : > { %4746 = vst [vmem:[%s9426_s11 + $0x70] sm:$0xff] %v4730_v36 }
 0x45b   : > { %6917 = shalt.err (!%p6914_p3)
}
 0x45c   : > { %s6918_s6 = scalar_lea.hbm %s9506_s27, 2048  ;;  %s6922_s9 = scalar_lea.hbm %s9560_s4, 4096 }
 0x45d   : > { %p6919_p4 = scmp.ne.s32.totalorder %s9506_s27, %s6918_s6  ;;  %p6923_p9 = scmp.lt.u32.totalorder %s9506_s27, %s9560_s4 }
 0x45e   : > { %p6924_p10 = scmp.lt.u32.totalorder %s6922_s9, %s6918_s6  ;;  %p6926_p12 = scmp.lt.u32.totalorder %s6918_s6, %s9506_s27 }
 0x45f   : > { %p6920_p7 = pnand %p6919_p4, %p7034_p5 }
 0x460   : > { %p6925_p11 = por %p6924_p10, %p6923_p9 }
 0x461   : > { %p6921_p8 = pneg %p6920_p7 }
 0x462   : > { %p6927_p13 = por %p6926_p12, %p6925_p11 }
 0x464   : > { %p6928_p0 = pnand %p6927_p13, %p6921_p8 }
 0x466   : > { %6931 = shalt.err (!%p6928_p0)
}
 0x467   : > { %s6969_s13 = smov 128   ;;  %s6970_s11 = smov 8  }
 0x468   : > { %6767 = dma.vmem_to_hbm [thread:$0]  (%p7034_p5), %s9508_s20, 2048, %s9506_s27, %s9515_s19, %s6969_s13, %s6969_s13, %s6970_s11  }
 0x469 PF: > { %p6773_p1 = scmp.ge.s32.totalorder %s6966_s18, 2  ;;  %s4777_s14 = sand.u32 1, %s6954_s15  }
 0x46a   : > { %s4778_s22 = scalar_lea.sflag [#allocation3], %s4777_s14 }
 0x46b   : > { %p6770_p2 = pnand %p6773_p1, %p7038_p6 }
 0x46d   : > { %6949 = dma.done.wait (!%p6770_p2), %s4778_s22, 2048  }
 0x46e   : > { %6951 = vsyncadd (!%p6770_p2), %s4778_s22, 4294965248  ;;  %p14_p3 = scmp.ge.s32.totalorder %s7021_s21, 4   ;;  %s10185_s15 = smov %s6958_s16 }
 0x46f   : > { %s10186_s16 = smov %s6962_s17  ;;  %s10187_s17 = smov %s7032_s24 }
 0x470   : > { %s10188_s18 = smov %s7021_s21  ;;  %16 = sbr.rel (!%p14_p3) target bundleno = 3 (0x3), region = 71 }
 0x477   :  { %4783 = vsyncpa [#allocation3], 1 }
 0x478   :  { %4785 = vsyncpa [#allocation3 + $0x1], 1 }

</bundles_post_ra>
